<compile_context>
chip_gen: v5e
topology: v5e:2x2
jax: 0.10.0
libtpu: 0.0.40
codegen_flags: <defaults>
</compile_context>

<pallas_src>
import functools

import jax
import jax.numpy as jnp
from jax.experimental import pallas as pl
from jax.experimental.pallas import tpu as pltpu


def _lstm_kernel(x_ref, wih_ref, whh_ref, b_ref, wlin_ref, blin_ref,
                 out_ref, layer_buf, y_buf, *, hidden, batch, steps,
                 num_layers):
    """Whole forward pass in one invocation.

    x_ref:     (T, B, H)    time-major input
    wih_ref:   (L, H, 4H)   input->gates weights (transposed, gates [i,f,o,g])
    whh_ref:   (L, H, 4H)   hidden->gates weights (transposed, gates [i,f,o,g])
    b_ref:     (L, 1, 4H)   b_ih + b_hh (gates [i,f,o,g])
    wlin_ref:  (H, 1)       final Linear weight (transposed)
    blin_ref:  (1, 1)       final Linear bias
    out_ref:   (B*T, 1)     flattened output; row b*T + i == output[b, i, 0]
    layer_buf: (B, H)       VMEM scratch: per-layer hidden-state "sequence"
    y_buf:     (B*T, H)     VMEM scratch: pre-Linear hidden states, all steps
    """
    H = hidden
    # Lane mask selecting the tanh (g) gate region; gates packed [i, f, o, g].
    # Hoisted out of all loops (broadcasts are not CSE'd).
    lane = jax.lax.broadcasted_iota(jnp.int32, (1, 4 * H), 1)
    g_lane = lane >= 3 * H

    def activate(gates):  # one full-vreg sigmoid + one tanh + one select
        return jnp.where(g_lane, jnp.tanh(gates), jax.nn.sigmoid(gates))

    inp = None                                     # teacher-forcing carry (B, H)
    for i in range(steps):                         # fully unrolled outer loop
        x_i = x_ref[i]                             # (B, H)
        if i == 0:
            inp = x_i                              # input = x[:, 0, :]
        layer_in = inp
        for layer in range(num_layers):
            wih = wih_ref[layer]                   # (H, 4H)
            whh = whh_ref[layer]                   # (H, 4H)
            b = b_ref[layer]                       # (1, 4H)
            # Input projection for the whole (length-B) "sequence" at once (MXU).
            xproj = jnp.dot(layer_in, wih,
                            preferred_element_type=jnp.float32) + b   # (B, 4H)

            # t == 0 peeled: h = c = 0, so h@whh and f*c vanish exactly.
            act = activate(xproj[0:1, :])
            i_g = act[:, 0:H]
            o_g = act[:, 2 * H:3 * H]
            g_g = act[:, 3 * H:4 * H]
            c = i_g * g_g
            h = o_g * jnp.tanh(c)
            layer_buf[pl.ds(0, 1), :] = h

            for t in range(1, batch):              # remaining serial recurrence
                gates = xproj[t:t + 1, :] + jnp.dot(
                    h, whh, preferred_element_type=jnp.float32)        # (1, 4H)
                act = activate(gates)
                i_g = act[:, 0:H]
                f_g = act[:, H:2 * H]
                o_g = act[:, 2 * H:3 * H]
                g_g = act[:, 3 * H:4 * H]
                c = f_g * c + i_g * g_g
                h = o_g * jnp.tanh(c)
                layer_buf[pl.ds(t, 1), :] = h

            layer_in = layer_buf[...]              # (B, H) -> next layer / out

        y = layer_in                               # out[:, i, :]
        for t in range(batch):                     # stash rows batch-major
            y_buf[pl.ds(t * steps + i, 1), :] = y[t:t + 1, :]
        inp = y + (x_i - y) * 0.5                  # teacher-forcing blend

    # Final Linear fused: one batched matmul + one store covering all B*T rows.
    out_ref[...] = jnp.dot(y_buf[...], wlin_ref[...],
                           preferred_element_type=jnp.float32) + blin_ref[...]


def _repack_gates(w):
    """Permute gate columns [i, f, g, o] -> [i, f, o, g] along the last axis."""
    H = w.shape[-1] // 4
    return jnp.concatenate(
        [w[..., 0:2 * H], w[..., 3 * H:4 * H], w[..., 2 * H:3 * H]], axis=-1)


def lstm_forward(x, params):
    """x: (B, T, H) float32  ->  (B, T, 1) float32."""
    B, T, H = x.shape
    wih, whh, b, wlin, blin = params
    num_layers = wih.shape[0]

    # One-time gate-column repack (must hit wih, whh AND b consistently).
    wih_p = _repack_gates(wih)
    whh_p = _repack_gates(whh)
    b_p = _repack_gates(b)

    x_tm = jnp.transpose(x, (1, 0, 2))             # time-major (T, B, H), 2 KB

    kernel = functools.partial(_lstm_kernel, hidden=H, batch=B, steps=T,
                               num_layers=num_layers)

    vmem = pl.BlockSpec(memory_space=pltpu.MemorySpace.VMEM)
    out_flat = pl.pallas_call(
        kernel,
        out_shape=jax.ShapeDtypeStruct((B * T, 1), jnp.float32),
        in_specs=[vmem, vmem, vmem, vmem, vmem, vmem],
        out_specs=vmem,
        scratch_shapes=[pltpu.VMEM((B, H), jnp.float32),       # layer_buf
                        pltpu.VMEM((B * T, H), jnp.float32)],  # y_buf
    )(x_tm, wih_p, whh_p, b_p, wlin, blin)

    return out_flat.reshape(B, T, 1)               # row b*T+i -> out[b, i, 0]


def init_params(key, hidden, num_layers=3):
    """Deterministic init mirroring nn.LSTM / kaiming_normal_ shapes & scales."""
    keys = jax.random.split(key, 4 * num_layers + 2)
    bound = 1.0 / float(jnp.sqrt(hidden))
    wih, whh, bias = [], [], []
    idx = 0
    for _ in range(num_layers):
        wih.append(jax.random.uniform(keys[idx], (hidden, 4 * hidden),
                                      jnp.float32, -bound, bound)); idx += 1
        whh.append(jax.random.uniform(keys[idx], (hidden, 4 * hidden),
                                      jnp.float32, -bound, bound)); idx += 1
        b_ih = jax.random.uniform(keys[idx], (4 * hidden,),
                                  jnp.float32, -bound, bound); idx += 1
        b_hh = jax.random.uniform(keys[idx], (4 * hidden,),
                                  jnp.float32, -bound, bound); idx += 1
        bias.append((b_ih + b_hh).reshape(1, 4 * hidden))
    # Linear: kaiming_normal_(mode='fan_in') -> std = sqrt(2 / fan_in)
    wlin = jax.random.normal(keys[idx], (hidden, 1), jnp.float32) * float(
        jnp.sqrt(2.0 / hidden)); idx += 1
    blin = jax.random.uniform(keys[idx], (1, 1), jnp.float32, -bound, bound)
    return (jnp.stack(wih), jnp.stack(whh), jnp.stack(bias), wlin, blin)


def reference_forward(x, params):
    """Pure-JAX reference reproducing the PyTorch forward (canonical gates)."""
    wih, whh, b, wlin, blin = params
    B, T, H = x.shape
    L = wih.shape[0]

    def run_lstm(seq):                             # seq: (B, H), zero init state
        layer_in = seq
        for l in range(L):
            xproj = layer_in @ wih[l] + b[l]       # (B, 4H)
            h = jnp.zeros((H,), jnp.float32)
            c = jnp.zeros((H,), jnp.float32)
            hs = []
            for t in range(B):
                gates = xproj[t] + h @ whh[l]
                i_g = jax.nn.sigmoid(gates[0:H])
                f_g = jax.nn.sigmoid(gates[H:2 * H])
                g_g = jnp.tanh(gates[2 * H:3 * H])
                o_g = jax.nn.sigmoid(gates[3 * H:4 * H])
                c = f_g * c + i_g * g_g
                h = o_g * jnp.tanh(c)
                hs.append(h)
            layer_in = jnp.stack(hs, axis=0)
        return layer_in

    inp = x[:, 0, :]
    outs = []
    for i in range(T):
        y = run_lstm(inp)
        outs.append(y)
        inp = y + (x[:, i, :] - y) * 0.5
    out = jnp.stack(outs, axis=1)                  # (B, T, H)
    return out @ wlin + blin[0]


if __name__ == "__main__":
    B, T, H = 2, 8, 32                             # batch, days (seq), hidden=out
    key = jax.random.PRNGKey(0)
    kx, kp = jax.random.split(key)
    x = jax.random.normal(kx, (B, T, H), jnp.float32)
    params = init_params(kp, H, num_layers=3)

    out = jax.jit(lstm_forward)(x, params)
    out = jax.block_until_ready(out)

    ref = reference_forward(x, params)
    assert out.shape == (B, T, 1), out.shape
    max_err = float(jnp.max(jnp.abs(out - ref)))
    if max_err > 1e-4:
        raise AssertionError(f"Pallas kernel mismatch vs reference: {max_err}")

    print("KERNEL_OK")
</pallas_src>

<mosaic_0001>
module attributes {stable_mosaic.version = 11 : i64} {
  func.func @_lstm_kernel(%arg0: memref<8x2x32xf32, #tpu.memory_space<vmem>>, %arg1: memref<3x32x128xf32, #tpu.memory_space<vmem>>, %arg2: memref<3x32x128xf32, #tpu.memory_space<vmem>>, %arg3: memref<3x1x128xf32, #tpu.memory_space<vmem>>, %arg4: memref<32x1xf32, #tpu.memory_space<vmem>>, %arg5: memref<1x1xf32, #tpu.memory_space<vmem>>, %arg6: memref<16x1xf32, #tpu.memory_space<vmem>>, %arg7: memref<2x32xf32, #tpu.memory_space<vmem>>, %arg8: memref<16x32xf32, #tpu.memory_space<vmem>>) attributes {dimension_semantics = [], scalar_prefetch = 0 : i64, scratch_operands = 2 : i64, tpu.core_type = #tpu.core_type<tc>} {
    %0 = tpu.iota {dimensions = array<i32: 1>} : vector<1x128xi32>
    %c96_i32 = arith.constant 96 : i32
    %1 = vector.broadcast %c96_i32 : i32 to vector<1x128xi32>
    %2 = arith.cmpi sge, %0, %1 : vector<1x128xi32>
    %c0 = arith.constant 0 : index
    %c0_0 = arith.constant 0 : index
    %c0_1 = arith.constant 0 : index
    %3 = vector.load %arg0[%c0, %c0_0, %c0_1] : memref<8x2x32xf32, #tpu.memory_space<vmem>>, vector<1x2x32xf32>
    %4 = vector.shape_cast %3 : vector<1x2x32xf32> to vector<2x32xf32>
    %c0_2 = arith.constant 0 : index
    %c0_3 = arith.constant 0 : index
    %c0_4 = arith.constant 0 : index
    %5 = vector.load %arg1[%c0_2, %c0_3, %c0_4] : memref<3x32x128xf32, #tpu.memory_space<vmem>>, vector<1x32x128xf32>
    %6 = vector.shape_cast %5 : vector<1x32x128xf32> to vector<32x128xf32>
    %c0_5 = arith.constant 0 : index
    %c0_6 = arith.constant 0 : index
    %c0_7 = arith.constant 0 : index
    %7 = vector.load %arg2[%c0_5, %c0_6, %c0_7] : memref<3x32x128xf32, #tpu.memory_space<vmem>>, vector<1x32x128xf32>
    %8 = vector.shape_cast %7 : vector<1x32x128xf32> to vector<32x128xf32>
    %c0_8 = arith.constant 0 : index
    %c0_9 = arith.constant 0 : index
    %c0_10 = arith.constant 0 : index
    %9 = vector.load %arg3[%c0_8, %c0_9, %c0_10] : memref<3x1x128xf32, #tpu.memory_space<vmem>>, vector<1x1x128xf32>
    %10 = vector.shape_cast %9 : vector<1x1x128xf32> to vector<1x128xf32>
    %cst = arith.constant dense<0.000000e+00> : vector<2x128xf32>
    %11 = tpu.matmul %4, %6, %cst {dimension_numbers = #tpu.dot_dimension_numbers<[1], [0], [0], [1], [0, 0, 1, 1], [], []>} : vector<2x32xf32>, vector<32x128xf32>, vector<2x128xf32> -> vector<2x128xf32>
    %12 = vector.broadcast %10 : vector<1x128xf32> to vector<2x128xf32>
    %13 = arith.addf %11, %12 : vector<2x128xf32>
    %14 = vector.extract_strided_slice %13 {offsets = [0, 0], sizes = [1, 128], strides = [1, 1]} : vector<2x128xf32> to vector<1x128xf32>
    %15 = math.tanh %14 : vector<1x128xf32>
    %16 = arith.negf %14 : vector<1x128xf32>
    %17 = math.exp %16 : vector<1x128xf32>
    %cst_11 = arith.constant 1.000000e+00 : f32
    %18 = vector.broadcast %cst_11 : f32 to vector<1x128xf32>
    %19 = arith.addf %18, %17 : vector<1x128xf32>
    %20 = arith.divf %18, %19 : vector<1x128xf32>
    %21 = arith.select %2, %15, %20 : vector<1x128xi1>, vector<1x128xf32>
    %22 = vector.extract_strided_slice %21 {offsets = [0, 0], sizes = [1, 32], strides = [1, 1]} : vector<1x128xf32> to vector<1x32xf32>
    %23 = vector.extract_strided_slice %21 {offsets = [0, 64], sizes = [1, 32], strides = [1, 1]} : vector<1x128xf32> to vector<1x32xf32>
    %24 = vector.extract_strided_slice %21 {offsets = [0, 96], sizes = [1, 32], strides = [1, 1]} : vector<1x128xf32> to vector<1x32xf32>
    %25 = arith.mulf %22, %24 : vector<1x32xf32>
    %26 = math.tanh %25 : vector<1x32xf32>
    %27 = arith.mulf %23, %26 : vector<1x32xf32>
    %c0_12 = arith.constant 0 : index
    %c0_13 = arith.constant 0 : index
    %28 = vector.load %arg7[%c0_12, %c0_13] : memref<2x32xf32, #tpu.memory_space<vmem>>, vector<1x32xf32>
    tpu.vector_store %arg7[%c0_12, %c0_13], %27 {strides = array<i32>} : memref<2x32xf32, #tpu.memory_space<vmem>>, vector<1x32xf32>,
    %29 = vector.extract_strided_slice %13 {offsets = [1, 0], sizes = [1, 128], strides = [1, 1]} : vector<2x128xf32> to vector<1x128xf32>
    %cst_14 = arith.constant dense<0.000000e+00> : vector<1x128xf32>
    %30 = tpu.matmul %27, %8, %cst_14 {dimension_numbers = #tpu.dot_dimension_numbers<[1], [0], [0], [1], [0, 0, 1, 1], [], []>} : vector<1x32xf32>, vector<32x128xf32>, vector<1x128xf32> -> vector<1x128xf32>
    %31 = arith.addf %29, %30 : vector<1x128xf32>
    %32 = math.tanh %31 : vector<1x128xf32>
    %33 = arith.negf %31 : vector<1x128xf32>
    %34 = math.exp %33 : vector<1x128xf32>
    %cst_15 = arith.constant 1.000000e+00 : f32
    %35 = vector.broadcast %cst_15 : f32 to vector<1x128xf32>
    %36 = arith.addf %35, %34 : vector<1x128xf32>
    %37 = arith.divf %35, %36 : vector<1x128xf32>
    %38 = arith.select %2, %32, %37 : vector<1x128xi1>, vector<1x128xf32>
    %39 = vector.extract_strided_slice %38 {offsets = [0, 0], sizes = [1, 32], strides = [1, 1]} : vector<1x128xf32> to vector<1x32xf32>
    %40 = vector.extract_strided_slice %38 {offsets = [0, 32], sizes = [1, 32], strides = [1, 1]} : vector<1x128xf32> to vector<1x32xf32>
    %41 = vector.extract_strided_slice %38 {offsets = [0, 64], sizes = [1, 32], strides = [1, 1]} : vector<1x128xf32> to vector<1x32xf32>
    %42 = vector.extract_strided_slice %38 {offsets = [0, 96], sizes = [1, 32], strides = [1, 1]} : vector<1x128xf32> to vector<1x32xf32>
    %43 = arith.mulf %40, %25 : vector<1x32xf32>
    %44 = arith.mulf %39, %42 : vector<1x32xf32>
    %45 = arith.addf %43, %44 : vector<1x32xf32>
    %46 = math.tanh %45 : vector<1x32xf32>
    %47 = arith.mulf %41, %46 : vector<1x32xf32>
    %c1 = arith.constant 1 : index
    %c0_16 = arith.constant 0 : index
    %48 = vector.load %arg7[%c1, %c0_16] : memref<2x32xf32, #tpu.memory_space<vmem>>, vector<1x32xf32>
    tpu.vector_store %arg7[%c1, %c0_16], %47 {strides = array<i32>} : memref<2x32xf32, #tpu.memory_space<vmem>>, vector<1x32xf32>,
    %c0_17 = arith.constant 0 : index
    %c0_18 = arith.constant 0 : index
    %49 = vector.load %arg7[%c0_17, %c0_18] : memref<2x32xf32, #tpu.memory_space<vmem>>, vector<2x32xf32>
    %c1_19 = arith.constant 1 : index
    %c0_20 = arith.constant 0 : index
    %c0_21 = arith.constant 0 : index
    %50 = vector.load %arg1[%c1_19, %c0_20, %c0_21] : memref<3x32x128xf32, #tpu.memory_space<vmem>>, vector<1x32x128xf32>
    %51 = vector.shape_cast %50 : vector<1x32x128xf32> to vector<32x128xf32>
    %c1_22 = arith.constant 1 : index
    %c0_23 = arith.constant 0 : index
    %c0_24 = arith.constant 0 : index
    %52 = vector.load %arg2[%c1_22, %c0_23, %c0_24] : memref<3x32x128xf32, #tpu.memory_space<vmem>>, vector<1x32x128xf32>
    %53 = vector.shape_cast %52 : vector<1x32x128xf32> to vector<32x128xf32>
    %c1_25 = arith.constant 1 : index
    %c0_26 = arith.constant 0 : index
    %c0_27 = arith.constant 0 : index
    %54 = vector.load %arg3[%c1_25, %c0_26, %c0_27] : memref<3x1x128xf32, #tpu.memory_space<vmem>>, vector<1x1x128xf32>
    %55 = vector.shape_cast %54 : vector<1x1x128xf32> to vector<1x128xf32>
    %cst_28 = arith.constant dense<0.000000e+00> : vector<2x128xf32>
    %56 = tpu.matmul %49, %51, %cst_28 {dimension_numbers = #tpu.dot_dimension_numbers<[1], [0], [0], [1], [0, 0, 1, 1], [], []>} : vector<2x32xf32>, vector<32x128xf32>, vector<2x128xf32> -> vector<2x128xf32>
    %57 = vector.broadcast %55 : vector<1x128xf32> to vector<2x128xf32>
    %58 = arith.addf %56, %57 : vector<2x128xf32>
    %59 = vector.extract_strided_slice %58 {offsets = [0, 0], sizes = [1, 128], strides = [1, 1]} : vector<2x128xf32> to vector<1x128xf32>
    %60 = math.tanh %59 : vector<1x128xf32>
    %61 = arith.negf %59 : vector<1x128xf32>
    %62 = math.exp %61 : vector<1x128xf32>
    %cst_29 = arith.constant 1.000000e+00 : f32
    %63 = vector.broadcast %cst_29 : f32 to vector<1x128xf32>
    %64 = arith.addf %63, %62 : vector<1x128xf32>
    %65 = arith.divf %63, %64 : vector<1x128xf32>
    %66 = arith.select %2, %60, %65 : vector<1x128xi1>, vector<1x128xf32>
    %67 = vector.extract_strided_slice %66 {offsets = [0, 0], sizes = [1, 32], strides = [1, 1]} : vector<1x128xf32> to vector<1x32xf32>
    %68 = vector.extract_strided_slice %66 {offsets = [0, 64], sizes = [1, 32], strides = [1, 1]} : vector<1x128xf32> to vector<1x32xf32>
    %69 = vector.extract_strided_slice %66 {offsets = [0, 96], sizes = [1, 32], strides = [1, 1]} : vector<1x128xf32> to vector<1x32xf32>
    %70 = arith.mulf %67, %69 : vector<1x32xf32>
    %71 = math.tanh %70 : vector<1x32xf32>
    %72 = arith.mulf %68, %71 : vector<1x32xf32>
    %c0_30 = arith.constant 0 : index
    %c0_31 = arith.constant 0 : index
    %73 = vector.load %arg7[%c0_30, %c0_31] : memref<2x32xf32, #tpu.memory_space<vmem>>, vector<1x32xf32>
    tpu.vector_store %arg7[%c0_30, %c0_31], %72 {strides = array<i32>} : memref<2x32xf32, #tpu.memory_space<vmem>>, vector<1x32xf32>,
    %74 = vector.extract_strided_slice %58 {offsets = [1, 0], sizes = [1, 128], strides = [1, 1]} : vector<2x128xf32> to vector<1x128xf32>
    %cst_32 = arith.constant dense<0.000000e+00> : vector<1x128xf32>
    %75 = tpu.matmul %72, %53, %cst_32 {dimension_numbers = #tpu.dot_dimension_numbers<[1], [0], [0], [1], [0, 0, 1, 1], [], []>} : vector<1x32xf32>, vector<32x128xf32>, vector<1x128xf32> -> vector<1x128xf32>
    %76 = arith.addf %74, %75 : vector<1x128xf32>
    %77 = math.tanh %76 : vector<1x128xf32>
    %78 = arith.negf %76 : vector<1x128xf32>
    %79 = math.exp %78 : vector<1x128xf32>
    %cst_33 = arith.constant 1.000000e+00 : f32
    %80 = vector.broadcast %cst_33 : f32 to vector<1x128xf32>
    %81 = arith.addf %80, %79 : vector<1x128xf32>
    %82 = arith.divf %80, %81 : vector<1x128xf32>
    %83 = arith.select %2, %77, %82 : vector<1x128xi1>, vector<1x128xf32>
    %84 = vector.extract_strided_slice %83 {offsets = [0, 0], sizes = [1, 32], strides = [1, 1]} : vector<1x128xf32> to vector<1x32xf32>
    %85 = vector.extract_strided_slice %83 {offsets = [0, 32], sizes = [1, 32], strides = [1, 1]} : vector<1x128xf32> to vector<1x32xf32>
    %86 = vector.extract_strided_slice %83 {offsets = [0, 64], sizes = [1, 32], strides = [1, 1]} : vector<1x128xf32> to vector<1x32xf32>
    %87 = vector.extract_strided_slice %83 {offsets = [0, 96], sizes = [1, 32], strides = [1, 1]} : vector<1x128xf32> to vector<1x32xf32>
    %88 = arith.mulf %85, %70 : vector<1x32xf32>
    %89 = arith.mulf %84, %87 : vector<1x32xf32>
    %90 = arith.addf %88, %89 : vector<1x32xf32>
    %91 = math.tanh %90 : vector<1x32xf32>
    %92 = arith.mulf %86, %91 : vector<1x32xf32>
    %c1_34 = arith.constant 1 : index
    %c0_35 = arith.constant 0 : index
    %93 = vector.load %arg7[%c1_34, %c0_35] : memref<2x32xf32, #tpu.memory_space<vmem>>, vector<1x32xf32>
    tpu.vector_store %arg7[%c1_34, %c0_35], %92 {strides = array<i32>} : memref<2x32xf32, #tpu.memory_space<vmem>>, vector<1x32xf32>,
    %c0_36 = arith.constant 0 : index
    %c0_37 = arith.constant 0 : index
    %94 = vector.load %arg7[%c0_36, %c0_37] : memref<2x32xf32, #tpu.memory_space<vmem>>, vector<2x32xf32>
    %c2 = arith.constant 2 : index
    %c0_38 = arith.constant 0 : index
    %c0_39 = arith.constant 0 : index
    %95 = vector.load %arg1[%c2, %c0_38, %c0_39] : memref<3x32x128xf32, #tpu.memory_space<vmem>>, vector<1x32x128xf32>
    %96 = vector.shape_cast %95 : vector<1x32x128xf32> to vector<32x128xf32>
    %c2_40 = arith.constant 2 : index
    %c0_41 = arith.constant 0 : index
    %c0_42 = arith.constant 0 : index
    %97 = vector.load %arg2[%c2_40, %c0_41, %c0_42] : memref<3x32x128xf32, #tpu.memory_space<vmem>>, vector<1x32x128xf32>
    %98 = vector.shape_cast %97 : vector<1x32x128xf32> to vector<32x128xf32>
    %c2_43 = arith.constant 2 : index
    %c0_44 = arith.constant 0 : index
    %c0_45 = arith.constant 0 : index
    %99 = vector.load %arg3[%c2_43, %c0_44, %c0_45] : memref<3x1x128xf32, #tpu.memory_space<vmem>>, vector<1x1x128xf32>
    %100 = vector.shape_cast %99 : vector<1x1x128xf32> to vector<1x128xf32>
    %cst_46 = arith.constant dense<0.000000e+00> : vector<2x128xf32>
    %101 = tpu.matmul %94, %96, %cst_46 {dimension_numbers = #tpu.dot_dimension_numbers<[1], [0], [0], [1], [0, 0, 1, 1], [], []>} : vector<2x32xf32>, vector<32x128xf32>, vector<2x128xf32> -> vector<2x128xf32>
    %102 = vector.broadcast %100 : vector<1x128xf32> to vector<2x128xf32>
    %103 = arith.addf %101, %102 : vector<2x128xf32>
    %104 = vector.extract_strided_slice %103 {offsets = [0, 0], sizes = [1, 128], strides = [1, 1]} : vector<2x128xf32> to vector<1x128xf32>
    %105 = math.tanh %104 : vector<1x128xf32>
    %106 = arith.negf %104 : vector<1x128xf32>
    %107 = math.exp %106 : vector<1x128xf32>
    %cst_47 = arith.constant 1.000000e+00 : f32
    %108 = vector.broadcast %cst_47 : f32 to vector<1x128xf32>
    %109 = arith.addf %108, %107 : vector<1x128xf32>
    %110 = arith.divf %108, %109 : vector<1x128xf32>
    %111 = arith.select %2, %105, %110 : vector<1x128xi1>, vector<1x128xf32>
    %112 = vector.extract_strided_slice %111 {offsets = [0, 0], sizes = [1, 32], strides = [1, 1]} : vector<1x128xf32> to vector<1x32xf32>
    %113 = vector.extract_strided_slice %111 {offsets = [0, 64], sizes = [1, 32], strides = [1, 1]} : vector<1x128xf32> to vector<1x32xf32>
    %114 = vector.extract_strided_slice %111 {offsets = [0, 96], sizes = [1, 32], strides = [1, 1]} : vector<1x128xf32> to vector<1x32xf32>
    %115 = arith.mulf %112, %114 : vector<1x32xf32>
    %116 = math.tanh %115 : vector<1x32xf32>
    %117 = arith.mulf %113, %116 : vector<1x32xf32>
    %c0_48 = arith.constant 0 : index
    %c0_49 = arith.constant 0 : index
    %118 = vector.load %arg7[%c0_48, %c0_49] : memref<2x32xf32, #tpu.memory_space<vmem>>, vector<1x32xf32>
    tpu.vector_store %arg7[%c0_48, %c0_49], %117 {strides = array<i32>} : memref<2x32xf32, #tpu.memory_space<vmem>>, vector<1x32xf32>,
    %119 = vector.extract_strided_slice %103 {offsets = [1, 0], sizes = [1, 128], strides = [1, 1]} : vector<2x128xf32> to vector<1x128xf32>
    %cst_50 = arith.constant dense<0.000000e+00> : vector<1x128xf32>
    %120 = tpu.matmul %117, %98, %cst_50 {dimension_numbers = #tpu.dot_dimension_numbers<[1], [0], [0], [1], [0, 0, 1, 1], [], []>} : vector<1x32xf32>, vector<32x128xf32>, vector<1x128xf32> -> vector<1x128xf32>
    %121 = arith.addf %119, %120 : vector<1x128xf32>
    %122 = math.tanh %121 : vector<1x128xf32>
    %123 = arith.negf %121 : vector<1x128xf32>
    %124 = math.exp %123 : vector<1x128xf32>
    %cst_51 = arith.constant 1.000000e+00 : f32
    %125 = vector.broadcast %cst_51 : f32 to vector<1x128xf32>
    %126 = arith.addf %125, %124 : vector<1x128xf32>
    %127 = arith.divf %125, %126 : vector<1x128xf32>
    %128 = arith.select %2, %122, %127 : vector<1x128xi1>, vector<1x128xf32>
    %129 = vector.extract_strided_slice %128 {offsets = [0, 0], sizes = [1, 32], strides = [1, 1]} : vector<1x128xf32> to vector<1x32xf32>
    %130 = vector.extract_strided_slice %128 {offsets = [0, 32], sizes = [1, 32], strides = [1, 1]} : vector<1x128xf32> to vector<1x32xf32>
    %131 = vector.extract_strided_slice %128 {offsets = [0, 64], sizes = [1, 32], strides = [1, 1]} : vector<1x128xf32> to vector<1x32xf32>
    %132 = vector.extract_strided_slice %128 {offsets = [0, 96], sizes = [1, 32], strides = [1, 1]} : vector<1x128xf32> to vector<1x32xf32>
    %133 = arith.mulf %130, %115 : vector<1x32xf32>
    %134 = arith.mulf %129, %132 : vector<1x32xf32>
    %135 = arith.addf %133, %134 : vector<1x32xf32>
    %136 = math.tanh %135 : vector<1x32xf32>
    %137 = arith.mulf %131, %136 : vector<1x32xf32>
    %c1_52 = arith.constant 1 : index
    %c0_53 = arith.constant 0 : index
    %138 = vector.load %arg7[%c1_52, %c0_53] : memref<2x32xf32, #tpu.memory_space<vmem>>, vector<1x32xf32>
    tpu.vector_store %arg7[%c1_52, %c0_53], %137 {strides = array<i32>} : memref<2x32xf32, #tpu.memory_space<vmem>>, vector<1x32xf32>,
    %c0_54 = arith.constant 0 : index
    %c0_55 = arith.constant 0 : index
    %139 = vector.load %arg7[%c0_54, %c0_55] : memref<2x32xf32, #tpu.memory_space<vmem>>, vector<2x32xf32>
    %140 = vector.extract_strided_slice %139 {offsets = [0, 0], sizes = [1, 32], strides = [1, 1]} : vector<2x32xf32> to vector<1x32xf32>
    %c0_56 = arith.constant 0 : index
    %c0_57 = arith.constant 0 : index
    %141 = vector.load %arg8[%c0_56, %c0_57] : memref<16x32xf32, #tpu.memory_space<vmem>>, vector<1x32xf32>
    tpu.vector_store %arg8[%c0_56, %c0_57], %140 {strides = array<i32>} : memref<16x32xf32, #tpu.memory_space<vmem>>, vector<1x32xf32>,
    %142 = vector.extract_strided_slice %139 {offsets = [1, 0], sizes = [1, 32], strides = [1, 1]} : vector<2x32xf32> to vector<1x32xf32>
    %c8 = arith.constant 8 : index
    %c0_58 = arith.constant 0 : index
    %143 = vector.load %arg8[%c8, %c0_58] : memref<16x32xf32, #tpu.memory_space<vmem>>, vector<1x32xf32>
    tpu.vector_store %arg8[%c8, %c0_58], %142 {strides = array<i32>} : memref<16x32xf32, #tpu.memory_space<vmem>>, vector<1x32xf32>,
    %144 = arith.subf %4, %139 : vector<2x32xf32>
    %cst_59 = arith.constant 5.000000e-01 : f32
    %145 = vector.broadcast %cst_59 : f32 to vector<2x32xf32>
    %146 = arith.mulf %144, %145 : vector<2x32xf32>
    %147 = arith.addf %139, %146 : vector<2x32xf32>
    %c1_60 = arith.constant 1 : index
    %c0_61 = arith.constant 0 : index
    %c0_62 = arith.constant 0 : index
    %148 = vector.load %arg0[%c1_60, %c0_61, %c0_62] : memref<8x2x32xf32, #tpu.memory_space<vmem>>, vector<1x2x32xf32>
    %149 = vector.shape_cast %148 : vector<1x2x32xf32> to vector<2x32xf32>
    %c0_63 = arith.constant 0 : index
    %c0_64 = arith.constant 0 : index
    %c0_65 = arith.constant 0 : index
    %150 = vector.load %arg1[%c0_63, %c0_64, %c0_65] : memref<3x32x128xf32, #tpu.memory_space<vmem>>, vector<1x32x128xf32>
    %151 = vector.shape_cast %150 : vector<1x32x128xf32> to vector<32x128xf32>
    %c0_66 = arith.constant 0 : index
    %c0_67 = arith.constant 0 : index
    %c0_68 = arith.constant 0 : index
    %152 = vector.load %arg2[%c0_66, %c0_67, %c0_68] : memref<3x32x128xf32, #tpu.memory_space<vmem>>, vector<1x32x128xf32>
    %153 = vector.shape_cast %152 : vector<1x32x128xf32> to vector<32x128xf32>
    %c0_69 = arith.constant 0 : index
    %c0_70 = arith.constant 0 : index
    %c0_71 = arith.constant 0 : index
    %154 = vector.load %arg3[%c0_69, %c0_70, %c0_71] : memref<3x1x128xf32, #tpu.memory_space<vmem>>, vector<1x1x128xf32>
    %155 = vector.shape_cast %154 : vector<1x1x128xf32> to vector<1x128xf32>
    %cst_72 = arith.constant dense<0.000000e+00> : vector<2x128xf32>
    %156 = tpu.matmul %147, %151, %cst_72 {dimension_numbers = #tpu.dot_dimension_numbers<[1], [0], [0], [1], [0, 0, 1, 1], [], []>} : vector<2x32xf32>, vector<32x128xf32>, vector<2x128xf32> -> vector<2x128xf32>
    %157 = vector.broadcast %155 : vector<1x128xf32> to vector<2x128xf32>
    %158 = arith.addf %156, %157 : vector<2x128xf32>
    %159 = vector.extract_strided_slice %158 {offsets = [0, 0], sizes = [1, 128], strides = [1, 1]} : vector<2x128xf32> to vector<1x128xf32>
    %160 = math.tanh %159 : vector<1x128xf32>
    %161 = arith.negf %159 : vector<1x128xf32>
    %162 = math.exp %161 : vector<1x128xf32>
    %cst_73 = arith.constant 1.000000e+00 : f32
    %163 = vector.broadcast %cst_73 : f32 to vector<1x128xf32>
    %164 = arith.addf %163, %162 : vector<1x128xf32>
    %165 = arith.divf %163, %164 : vector<1x128xf32>
    %166 = arith.select %2, %160, %165 : vector<1x128xi1>, vector<1x128xf32>
    %167 = vector.extract_strided_slice %166 {offsets = [0, 0], sizes = [1, 32], strides = [1, 1]} : vector<1x128xf32> to vector<1x32xf32>
    %168 = vector.extract_strided_slice %166 {offsets = [0, 64], sizes = [1, 32], strides = [1, 1]} : vector<1x128xf32> to vector<1x32xf32>
    %169 = vector.extract_strided_slice %166 {offsets = [0, 96], sizes = [1, 32], strides = [1, 1]} : vector<1x128xf32> to vector<1x32xf32>
    %170 = arith.mulf %167, %169 : vector<1x32xf32>
    %171 = math.tanh %170 : vector<1x32xf32>
    %172 = arith.mulf %168, %171 : vector<1x32xf32>
    %c0_74 = arith.constant 0 : index
    %c0_75 = arith.constant 0 : index
    %173 = vector.load %arg7[%c0_74, %c0_75] : memref<2x32xf32, #tpu.memory_space<vmem>>, vector<1x32xf32>
    tpu.vector_store %arg7[%c0_74, %c0_75], %172 {strides = array<i32>} : memref<2x32xf32, #tpu.memory_space<vmem>>, vector<1x32xf32>,
    %174 = vector.extract_strided_slice %158 {offsets = [1, 0], sizes = [1, 128], strides = [1, 1]} : vector<2x128xf32> to vector<1x128xf32>
    %cst_76 = arith.constant dense<0.000000e+00> : vector<1x128xf32>
    %175 = tpu.matmul %172, %153, %cst_76 {dimension_numbers = #tpu.dot_dimension_numbers<[1], [0], [0], [1], [0, 0, 1, 1], [], []>} : vector<1x32xf32>, vector<32x128xf32>, vector<1x128xf32> -> vector<1x128xf32>
    %176 = arith.addf %174, %175 : vector<1x128xf32>
    %177 = math.tanh %176 : vector<1x128xf32>
    %178 = arith.negf %176 : vector<1x128xf32>
    %179 = math.exp %178 : vector<1x128xf32>
    %cst_77 = arith.constant 1.000000e+00 : f32
    %180 = vector.broadcast %cst_77 : f32 to vector<1x128xf32>
    %181 = arith.addf %180, %179 : vector<1x128xf32>
    %182 = arith.divf %180, %181 : vector<1x128xf32>
    %183 = arith.select %2, %177, %182 : vector<1x128xi1>, vector<1x128xf32>
    %184 = vector.extract_strided_slice %183 {offsets = [0, 0], sizes = [1, 32], strides = [1, 1]} : vector<1x128xf32> to vector<1x32xf32>
    %185 = vector.extract_strided_slice %183 {offsets = [0, 32], sizes = [1, 32], strides = [1, 1]} : vector<1x128xf32> to vector<1x32xf32>
    %186 = vector.extract_strided_slice %183 {offsets = [0, 64], sizes = [1, 32], strides = [1, 1]} : vector<1x128xf32> to vector<1x32xf32>
    %187 = vector.extract_strided_slice %183 {offsets = [0, 96], sizes = [1, 32], strides = [1, 1]} : vector<1x128xf32> to vector<1x32xf32>
    %188 = arith.mulf %185, %170 : vector<1x32xf32>
    %189 = arith.mulf %184, %187 : vector<1x32xf32>
    %190 = arith.addf %188, %189 : vector<1x32xf32>
    %191 = math.tanh %190 : vector<1x32xf32>
    %192 = arith.mulf %186, %191 : vector<1x32xf32>
    %c1_78 = arith.constant 1 : index
    %c0_79 = arith.constant 0 : index
    %193 = vector.load %arg7[%c1_78, %c0_79] : memref<2x32xf32, #tpu.memory_space<vmem>>, vector<1x32xf32>
    tpu.vector_store %arg7[%c1_78, %c0_79], %192 {strides = array<i32>} : memref<2x32xf32, #tpu.memory_space<vmem>>, vector<1x32xf32>,
    %c0_80 = arith.constant 0 : index
    %c0_81 = arith.constant 0 : index
    %194 = vector.load %arg7[%c0_80, %c0_81] : memref<2x32xf32, #tpu.memory_space<vmem>>, vector<2x32xf32>
    %c1_82 = arith.constant 1 : index
    %c0_83 = arith.constant 0 : index
    %c0_84 = arith.constant 0 : index
    %195 = vector.load %arg1[%c1_82, %c0_83, %c0_84] : memref<3x32x128xf32, #tpu.memory_space<vmem>>, vector<1x32x128xf32>
    %196 = vector.shape_cast %195 : vector<1x32x128xf32> to vector<32x128xf32>
    %c1_85 = arith.constant 1 : index
    %c0_86 = arith.constant 0 : index
    %c0_87 = arith.constant 0 : index
    %197 = vector.load %arg2[%c1_85, %c0_86, %c0_87] : memref<3x32x128xf32, #tpu.memory_space<vmem>>, vector<1x32x128xf32>
    %198 = vector.shape_cast %197 : vector<1x32x128xf32> to vector<32x128xf32>
    %c1_88 = arith.constant 1 : index
    %c0_89 = arith.constant 0 : index
    %c0_90 = arith.constant 0 : index
    %199 = vector.load %arg3[%c1_88, %c0_89, %c0_90] : memref<3x1x128xf32, #tpu.memory_space<vmem>>, vector<1x1x128xf32>
    %200 = vector.shape_cast %199 : vector<1x1x128xf32> to vector<1x128xf32>
    %cst_91 = arith.constant dense<0.000000e+00> : vector<2x128xf32>
    %201 = tpu.matmul %194, %196, %cst_91 {dimension_numbers = #tpu.dot_dimension_numbers<[1], [0], [0], [1], [0, 0, 1, 1], [], []>} : vector<2x32xf32>, vector<32x128xf32>, vector<2x128xf32> -> vector<2x128xf32>
    %202 = vector.broadcast %200 : vector<1x128xf32> to vector<2x128xf32>
    %203 = arith.addf %201, %202 : vector<2x128xf32>
    %204 = vector.extract_strided_slice %203 {offsets = [0, 0], sizes = [1, 128], strides = [1, 1]} : vector<2x128xf32> to vector<1x128xf32>
    %205 = math.tanh %204 : vector<1x128xf32>
    %206 = arith.negf %204 : vector<1x128xf32>
    %207 = math.exp %206 : vector<1x128xf32>
    %cst_92 = arith.constant 1.000000e+00 : f32
    %208 = vector.broadcast %cst_92 : f32 to vector<1x128xf32>
    %209 = arith.addf %208, %207 : vector<1x128xf32>
    %210 = arith.divf %208, %209 : vector<1x128xf32>
    %211 = arith.select %2, %205, %210 : vector<1x128xi1>, vector<1x128xf32>
    %212 = vector.extract_strided_slice %211 {offsets = [0, 0], sizes = [1, 32], strides = [1, 1]} : vector<1x128xf32> to vector<1x32xf32>
    %213 = vector.extract_strided_slice %211 {offsets = [0, 64], sizes = [1, 32], strides = [1, 1]} : vector<1x128xf32> to vector<1x32xf32>
    %214 = vector.extract_strided_slice %211 {offsets = [0, 96], sizes = [1, 32], strides = [1, 1]} : vector<1x128xf32> to vector<1x32xf32>
    %215 = arith.mulf %212, %214 : vector<1x32xf32>
    %216 = math.tanh %215 : vector<1x32xf32>
    %217 = arith.mulf %213, %216 : vector<1x32xf32>
    %c0_93 = arith.constant 0 : index
    %c0_94 = arith.constant 0 : index
    %218 = vector.load %arg7[%c0_93, %c0_94] : memref<2x32xf32, #tpu.memory_space<vmem>>, vector<1x32xf32>
    tpu.vector_store %arg7[%c0_93, %c0_94], %217 {strides = array<i32>} : memref<2x32xf32, #tpu.memory_space<vmem>>, vector<1x32xf32>,
    %219 = vector.extract_strided_slice %203 {offsets = [1, 0], sizes = [1, 128], strides = [1, 1]} : vector<2x128xf32> to vector<1x128xf32>
    %cst_95 = arith.constant dense<0.000000e+00> : vector<1x128xf32>
    %220 = tpu.matmul %217, %198, %cst_95 {dimension_numbers = #tpu.dot_dimension_numbers<[1], [0], [0], [1], [0, 0, 1, 1], [], []>} : vector<1x32xf32>, vector<32x128xf32>, vector<1x128xf32> -> vector<1x128xf32>
    %221 = arith.addf %219, %220 : vector<1x128xf32>
    %222 = math.tanh %221 : vector<1x128xf32>
    %223 = arith.negf %221 : vector<1x128xf32>
    %224 = math.exp %223 : vector<1x128xf32>
    %cst_96 = arith.constant 1.000000e+00 : f32
    %225 = vector.broadcast %cst_96 : f32 to vector<1x128xf32>
    %226 = arith.addf %225, %224 : vector<1x128xf32>
    %227 = arith.divf %225, %226 : vector<1x128xf32>
    %228 = arith.select %2, %222, %227 : vector<1x128xi1>, vector<1x128xf32>
    %229 = vector.extract_strided_slice %228 {offsets = [0, 0], sizes = [1, 32], strides = [1, 1]} : vector<1x128xf32> to vector<1x32xf32>
    %230 = vector.extract_strided_slice %228 {offsets = [0, 32], sizes = [1, 32], strides = [1, 1]} : vector<1x128xf32> to vector<1x32xf32>
    %231 = vector.extract_strided_slice %228 {offsets = [0, 64], sizes = [1, 32], strides = [1, 1]} : vector<1x128xf32> to vector<1x32xf32>
    %232 = vector.extract_strided_slice %228 {offsets = [0, 96], sizes = [1, 32], strides = [1, 1]} : vector<1x128xf32> to vector<1x32xf32>
    %233 = arith.mulf %230, %215 : vector<1x32xf32>
    %234 = arith.mulf %229, %232 : vector<1x32xf32>
    %235 = arith.addf %233, %234 : vector<1x32xf32>
    %236 = math.tanh %235 : vector<1x32xf32>
    %237 = arith.mulf %231, %236 : vector<1x32xf32>
    %c1_97 = arith.constant 1 : index
    %c0_98 = arith.constant 0 : index
    %238 = vector.load %arg7[%c1_97, %c0_98] : memref<2x32xf32, #tpu.memory_space<vmem>>, vector<1x32xf32>
    tpu.vector_store %arg7[%c1_97, %c0_98], %237 {strides = array<i32>} : memref<2x32xf32, #tpu.memory_space<vmem>>, vector<1x32xf32>,
    %c0_99 = arith.constant 0 : index
    %c0_100 = arith.constant 0 : index
    %239 = vector.load %arg7[%c0_99, %c0_100] : memref<2x32xf32, #tpu.memory_space<vmem>>, vector<2x32xf32>
    %c2_101 = arith.constant 2 : index
    %c0_102 = arith.constant 0 : index
    %c0_103 = arith.constant 0 : index
    %240 = vector.load %arg1[%c2_101, %c0_102, %c0_103] : memref<3x32x128xf32, #tpu.memory_space<vmem>>, vector<1x32x128xf32>
    %241 = vector.shape_cast %240 : vector<1x32x128xf32> to vector<32x128xf32>
    %c2_104 = arith.constant 2 : index
    %c0_105 = arith.constant 0 : index
    %c0_106 = arith.constant 0 : index
    %242 = vector.load %arg2[%c2_104, %c0_105, %c0_106] : memref<3x32x128xf32, #tpu.memory_space<vmem>>, vector<1x32x128xf32>
    %243 = vector.shape_cast %242 : vector<1x32x128xf32> to vector<32x128xf32>
    %c2_107 = arith.constant 2 : index
    %c0_108 = arith.constant 0 : index
    %c0_109 = arith.constant 0 : index
    %244 = vector.load %arg3[%c2_107, %c0_108, %c0_109] : memref<3x1x128xf32, #tpu.memory_space<vmem>>, vector<1x1x128xf32>
    %245 = vector.shape_cast %244 : vector<1x1x128xf32> to vector<1x128xf32>
    %cst_110 = arith.constant dense<0.000000e+00> : vector<2x128xf32>
    %246 = tpu.matmul %239, %241, %cst_110 {dimension_numbers = #tpu.dot_dimension_numbers<[1], [0], [0], [1], [0, 0, 1, 1], [], []>} : vector<2x32xf32>, vector<32x128xf32>, vector<2x128xf32> -> vector<2x128xf32>
    %247 = vector.broadcast %245 : vector<1x128xf32> to vector<2x128xf32>
    %248 = arith.addf %246, %247 : vector<2x128xf32>
    %249 = vector.extract_strided_slice %248 {offsets = [0, 0], sizes = [1, 128], strides = [1, 1]} : vector<2x128xf32> to vector<1x128xf32>
    %250 = math.tanh %249 : vector<1x128xf32>
    %251 = arith.negf %249 : vector<1x128xf32>
    %252 = math.exp %251 : vector<1x128xf32>
    %cst_111 = arith.constant 1.000000e+00 : f32
    %253 = vector.broadcast %cst_111 : f32 to vector<1x128xf32>
    %254 = arith.addf %253, %252 : vector<1x128xf32>
    %255 = arith.divf %253, %254 : vector<1x128xf32>
    %256 = arith.select %2, %250, %255 : vector<1x128xi1>, vector<1x128xf32>
    %257 = vector.extract_strided_slice %256 {offsets = [0, 0], sizes = [1, 32], strides = [1, 1]} : vector<1x128xf32> to vector<1x32xf32>
    %258 = vector.extract_strided_slice %256 {offsets = [0, 64], sizes = [1, 32], strides = [1, 1]} : vector<1x128xf32> to vector<1x32xf32>
    %259 = vector.extract_strided_slice %256 {offsets = [0, 96], sizes = [1, 32], strides = [1, 1]} : vector<1x128xf32> to vector<1x32xf32>
    %260 = arith.mulf %257, %259 : vector<1x32xf32>
    %261 = math.tanh %260 : vector<1x32xf32>
    %262 = arith.mulf %258, %261 : vector<1x32xf32>
    %c0_112 = arith.constant 0 : index
    %c0_113 = arith.constant 0 : index
    %263 = vector.load %arg7[%c0_112, %c0_113] : memref<2x32xf32, #tpu.memory_space<vmem>>, vector<1x32xf32>
    tpu.vector_store %arg7[%c0_112, %c0_113], %262 {strides = array<i32>} : memref<2x32xf32, #tpu.memory_space<vmem>>, vector<1x32xf32>,
    %264 = vector.extract_strided_slice %248 {offsets = [1, 0], sizes = [1, 128], strides = [1, 1]} : vector<2x128xf32> to vector<1x128xf32>
    %cst_114 = arith.constant dense<0.000000e+00> : vector<1x128xf32>
    %265 = tpu.matmul %262, %243, %cst_114 {dimension_numbers = #tpu.dot_dimension_numbers<[1], [0], [0], [1], [0, 0, 1, 1], [], []>} : vector<1x32xf32>, vector<32x128xf32>, vector<1x128xf32> -> vector<1x128xf32>
    %266 = arith.addf %264, %265 : vector<1x128xf32>
    %267 = math.tanh %266 : vector<1x128xf32>
    %268 = arith.negf %266 : vector<1x128xf32>
    %269 = math.exp %268 : vector<1x128xf32>
    %cst_115 = arith.constant 1.000000e+00 : f32
    %270 = vector.broadcast %cst_115 : f32 to vector<1x128xf32>
    %271 = arith.addf %270, %269 : vector<1x128xf32>
    %272 = arith.divf %270, %271 : vector<1x128xf32>
    %273 = arith.select %2, %267, %272 : vector<1x128xi1>, vector<1x128xf32>
    %274 = vector.extract_strided_slice %273 {offsets = [0, 0], sizes = [1, 32], strides = [1, 1]} : vector<1x128xf32> to vector<1x32xf32>
    %275 = vector.extract_strided_slice %273 {offsets = [0, 32], sizes = [1, 32], strides = [1, 1]} : vector<1x128xf32> to vector<1x32xf32>
    %276 = vector.extract_strided_slice %273 {offsets = [0, 64], sizes = [1, 32], strides = [1, 1]} : vector<1x128xf32> to vector<1x32xf32>
    %277 = vector.extract_strided_slice %273 {offsets = [0, 96], sizes = [1, 32], strides = [1, 1]} : vector<1x128xf32> to vector<1x32xf32>
    %278 = arith.mulf %275, %260 : vector<1x32xf32>
    %279 = arith.mulf %274, %277 : vector<1x32xf32>
    %280 = arith.addf %278, %279 : vector<1x32xf32>
    %281 = math.tanh %280 : vector<1x32xf32>
    %282 = arith.mulf %276, %281 : vector<1x32xf32>
    %c1_116 = arith.constant 1 : index
    %c0_117 = arith.constant 0 : index
    %283 = vector.load %arg7[%c1_116, %c0_117] : memref<2x32xf32, #tpu.memory_space<vmem>>, vector<1x32xf32>
    tpu.vector_store %arg7[%c1_116, %c0_117], %282 {strides = array<i32>} : memref<2x32xf32, #tpu.memory_space<vmem>>, vector<1x32xf32>,
    %c0_118 = arith.constant 0 : index
    %c0_119 = arith.constant 0 : index
    %284 = vector.load %arg7[%c0_118, %c0_119] : memref<2x32xf32, #tpu.memory_space<vmem>>, vector<2x32xf32>
    %285 = vector.extract_strided_slice %284 {offsets = [0, 0], sizes = [1, 32], strides = [1, 1]} : vector<2x32xf32> to vector<1x32xf32>
    %c1_120 = arith.constant 1 : index
    %c0_121 = arith.constant 0 : index
    %286 = vector.load %arg8[%c1_120, %c0_121] : memref<16x32xf32, #tpu.memory_space<vmem>>, vector<1x32xf32>
    tpu.vector_store %arg8[%c1_120, %c0_121], %285 {strides = array<i32>} : memref<16x32xf32, #tpu.memory_space<vmem>>, vector<1x32xf32>,
    %287 = vector.extract_strided_slice %284 {offsets = [1, 0], sizes = [1, 32], strides = [1, 1]} : vector<2x32xf32> to vector<1x32xf32>
    %c9 = arith.constant 9 : index
    %c0_122 = arith.constant 0 : index
    %288 = vector.load %arg8[%c9, %c0_122] : memref<16x32xf32, #tpu.memory_space<vmem>>, vector<1x32xf32>
    tpu.vector_store %arg8[%c9, %c0_122], %287 {strides = array<i32>} : memref<16x32xf32, #tpu.memory_space<vmem>>, vector<1x32xf32>,
    %289 = arith.subf %149, %284 : vector<2x32xf32>
    %cst_123 = arith.constant 5.000000e-01 : f32
    %290 = vector.broadcast %cst_123 : f32 to vector<2x32xf32>
    %291 = arith.mulf %289, %290 : vector<2x32xf32>
    %292 = arith.addf %284, %291 : vector<2x32xf32>
    %c2_124 = arith.constant 2 : index
    %c0_125 = arith.constant 0 : index
    %c0_126 = arith.constant 0 : index
    %293 = vector.load %arg0[%c2_124, %c0_125, %c0_126] : memref<8x2x32xf32, #tpu.memory_space<vmem>>, vector<1x2x32xf32>
    %294 = vector.shape_cast %293 : vector<1x2x32xf32> to vector<2x32xf32>
    %c0_127 = arith.constant 0 : index
    %c0_128 = arith.constant 0 : index
    %c0_129 = arith.constant 0 : index
    %295 = vector.load %arg1[%c0_127, %c0_128, %c0_129] : memref<3x32x128xf32, #tpu.memory_space<vmem>>, vector<1x32x128xf32>
    %296 = vector.shape_cast %295 : vector<1x32x128xf32> to vector<32x128xf32>
    %c0_130 = arith.constant 0 : index
    %c0_131 = arith.constant 0 : index
    %c0_132 = arith.constant 0 : index
    %297 = vector.load %arg2[%c0_130, %c0_131, %c0_132] : memref<3x32x128xf32, #tpu.memory_space<vmem>>, vector<1x32x128xf32>
    %298 = vector.shape_cast %297 : vector<1x32x128xf32> to vector<32x128xf32>
    %c0_133 = arith.constant 0 : index
    %c0_134 = arith.constant 0 : index
    %c0_135 = arith.constant 0 : index
    %299 = vector.load %arg3[%c0_133, %c0_134, %c0_135] : memref<3x1x128xf32, #tpu.memory_space<vmem>>, vector<1x1x128xf32>
    %300 = vector.shape_cast %299 : vector<1x1x128xf32> to vector<1x128xf32>
    %cst_136 = arith.constant dense<0.000000e+00> : vector<2x128xf32>
    %301 = tpu.matmul %292, %296, %cst_136 {dimension_numbers = #tpu.dot_dimension_numbers<[1], [0], [0], [1], [0, 0, 1, 1], [], []>} : vector<2x32xf32>, vector<32x128xf32>, vector<2x128xf32> -> vector<2x128xf32>
    %302 = vector.broadcast %300 : vector<1x128xf32> to vector<2x128xf32>
    %303 = arith.addf %301, %302 : vector<2x128xf32>
    %304 = vector.extract_strided_slice %303 {offsets = [0, 0], sizes = [1, 128], strides = [1, 1]} : vector<2x128xf32> to vector<1x128xf32>
    %305 = math.tanh %304 : vector<1x128xf32>
    %306 = arith.negf %304 : vector<1x128xf32>
    %307 = math.exp %306 : vector<1x128xf32>
    %cst_137 = arith.constant 1.000000e+00 : f32
    %308 = vector.broadcast %cst_137 : f32 to vector<1x128xf32>
    %309 = arith.addf %308, %307 : vector<1x128xf32>
    %310 = arith.divf %308, %309 : vector<1x128xf32>
    %311 = arith.select %2, %305, %310 : vector<1x128xi1>, vector<1x128xf32>
    %312 = vector.extract_strided_slice %311 {offsets = [0, 0], sizes = [1, 32], strides = [1, 1]} : vector<1x128xf32> to vector<1x32xf32>
    %313 = vector.extract_strided_slice %311 {offsets = [0, 64], sizes = [1, 32], strides = [1, 1]} : vector<1x128xf32> to vector<1x32xf32>
    %314 = vector.extract_strided_slice %311 {offsets = [0, 96], sizes = [1, 32], strides = [1, 1]} : vector<1x128xf32> to vector<1x32xf32>
    %315 = arith.mulf %312, %314 : vector<1x32xf32>
    %316 = math.tanh %315 : vector<1x32xf32>
    %317 = arith.mulf %313, %316 : vector<1x32xf32>
    %c0_138 = arith.constant 0 : index
    %c0_139 = arith.constant 0 : index
    %318 = vector.load %arg7[%c0_138, %c0_139] : memref<2x32xf32, #tpu.memory_space<vmem>>, vector<1x32xf32>
    tpu.vector_store %arg7[%c0_138, %c0_139], %317 {strides = array<i32>} : memref<2x32xf32, #tpu.memory_space<vmem>>, vector<1x32xf32>,
    %319 = vector.extract_strided_slice %303 {offsets = [1, 0], sizes = [1, 128], strides = [1, 1]} : vector<2x128xf32> to vector<1x128xf32>
    %cst_140 = arith.constant dense<0.000000e+00> : vector<1x128xf32>
    %320 = tpu.matmul %317, %298, %cst_140 {dimension_numbers = #tpu.dot_dimension_numbers<[1], [0], [0], [1], [0, 0, 1, 1], [], []>} : vector<1x32xf32>, vector<32x128xf32>, vector<1x128xf32> -> vector<1x128xf32>
    %321 = arith.addf %319, %320 : vector<1x128xf32>
    %322 = math.tanh %321 : vector<1x128xf32>
    %323 = arith.negf %321 : vector<1x128xf32>
    %324 = math.exp %323 : vector<1x128xf32>
    %cst_141 = arith.constant 1.000000e+00 : f32
    %325 = vector.broadcast %cst_141 : f32 to vector<1x128xf32>
    %326 = arith.addf %325, %324 : vector<1x128xf32>
    %327 = arith.divf %325, %326 : vector<1x128xf32>
    %328 = arith.select %2, %322, %327 : vector<1x128xi1>, vector<1x128xf32>
    %329 = vector.extract_strided_slice %328 {offsets = [0, 0], sizes = [1, 32], strides = [1, 1]} : vector<1x128xf32> to vector<1x32xf32>
    %330 = vector.extract_strided_slice %328 {offsets = [0, 32], sizes = [1, 32], strides = [1, 1]} : vector<1x128xf32> to vector<1x32xf32>
    %331 = vector.extract_strided_slice %328 {offsets = [0, 64], sizes = [1, 32], strides = [1, 1]} : vector<1x128xf32> to vector<1x32xf32>
    %332 = vector.extract_strided_slice %328 {offsets = [0, 96], sizes = [1, 32], strides = [1, 1]} : vector<1x128xf32> to vector<1x32xf32>
    %333 = arith.mulf %330, %315 : vector<1x32xf32>
    %334 = arith.mulf %329, %332 : vector<1x32xf32>
    %335 = arith.addf %333, %334 : vector<1x32xf32>
    %336 = math.tanh %335 : vector<1x32xf32>
    %337 = arith.mulf %331, %336 : vector<1x32xf32>
    %c1_142 = arith.constant 1 : index
    %c0_143 = arith.constant 0 : index
    %338 = vector.load %arg7[%c1_142, %c0_143] : memref<2x32xf32, #tpu.memory_space<vmem>>, vector<1x32xf32>
    tpu.vector_store %arg7[%c1_142, %c0_143], %337 {strides = array<i32>} : memref<2x32xf32, #tpu.memory_space<vmem>>, vector<1x32xf32>,
    %c0_144 = arith.constant 0 : index
    %c0_145 = arith.constant 0 : index
    %339 = vector.load %arg7[%c0_144, %c0_145] : memref<2x32xf32, #tpu.memory_space<vmem>>, vector<2x32xf32>
    %c1_146 = arith.constant 1 : index
    %c0_147 = arith.constant 0 : index
    %c0_148 = arith.constant 0 : index
    %340 = vector.load %arg1[%c1_146, %c0_147, %c0_148] : memref<3x32x128xf32, #tpu.memory_space<vmem>>, vector<1x32x128xf32>
    %341 = vector.shape_cast %340 : vector<1x32x128xf32> to vector<32x128xf32>
    %c1_149 = arith.constant 1 : index
    %c0_150 = arith.constant 0 : index
    %c0_151 = arith.constant 0 : index
    %342 = vector.load %arg2[%c1_149, %c0_150, %c0_151] : memref<3x32x128xf32, #tpu.memory_space<vmem>>, vector<1x32x128xf32>
    %343 = vector.shape_cast %342 : vector<1x32x128xf32> to vector<32x128xf32>
    %c1_152 = arith.constant 1 : index
    %c0_153 = arith.constant 0 : index
    %c0_154 = arith.constant 0 : index
    %344 = vector.load %arg3[%c1_152, %c0_153, %c0_154] : memref<3x1x128xf32, #tpu.memory_space<vmem>>, vector<1x1x128xf32>
    %345 = vector.shape_cast %344 : vector<1x1x128xf32> to vector<1x128xf32>
    %cst_155 = arith.constant dense<0.000000e+00> : vector<2x128xf32>
    %346 = tpu.matmul %339, %341, %cst_155 {dimension_numbers = #tpu.dot_dimension_numbers<[1], [0], [0], [1], [0, 0, 1, 1], [], []>} : vector<2x32xf32>, vector<32x128xf32>, vector<2x128xf32> -> vector<2x128xf32>
    %347 = vector.broadcast %345 : vector<1x128xf32> to vector<2x128xf32>
    %348 = arith.addf %346, %347 : vector<2x128xf32>
    %349 = vector.extract_strided_slice %348 {offsets = [0, 0], sizes = [1, 128], strides = [1, 1]} : vector<2x128xf32> to vector<1x128xf32>
    %350 = math.tanh %349 : vector<1x128xf32>
    %351 = arith.negf %349 : vector<1x128xf32>
    %352 = math.exp %351 : vector<1x128xf32>
    %cst_156 = arith.constant 1.000000e+00 : f32
    %353 = vector.broadcast %cst_156 : f32 to vector<1x128xf32>
    %354 = arith.addf %353, %352 : vector<1x128xf32>
    %355 = arith.divf %353, %354 : vector<1x128xf32>
    %356 = arith.select %2, %350, %355 : vector<1x128xi1>, vector<1x128xf32>
    %357 = vector.extract_strided_slice %356 {offsets = [0, 0], sizes = [1, 32], strides = [1, 1]} : vector<1x128xf32> to vector<1x32xf32>
    %358 = vector.extract_strided_slice %356 {offsets = [0, 64], sizes = [1, 32], strides = [1, 1]} : vector<1x128xf32> to vector<1x32xf32>
    %359 = vector.extract_strided_slice %356 {offsets = [0, 96], sizes = [1, 32], strides = [1, 1]} : vector<1x128xf32> to vector<1x32xf32>
    %360 = arith.mulf %357, %359 : vector<1x32xf32>
    %361 = math.tanh %360 : vector<1x32xf32>
    %362 = arith.mulf %358, %361 : vector<1x32xf32>
    %c0_157 = arith.constant 0 : index
    %c0_158 = arith.constant 0 : index
    %363 = vector.load %arg7[%c0_157, %c0_158] : memref<2x32xf32, #tpu.memory_space<vmem>>, vector<1x32xf32>
    tpu.vector_store %arg7[%c0_157, %c0_158], %362 {strides = array<i32>} : memref<2x32xf32, #tpu.memory_space<vmem>>, vector<1x32xf32>,
    %364 = vector.extract_strided_slice %348 {offsets = [1, 0], sizes = [1, 128], strides = [1, 1]} : vector<2x128xf32> to vector<1x128xf32>
    %cst_159 = arith.constant dense<0.000000e+00> : vector<1x128xf32>
    %365 = tpu.matmul %362, %343, %cst_159 {dimension_numbers = #tpu.dot_dimension_numbers<[1], [0], [0], [1], [0, 0, 1, 1], [], []>} : vector<1x32xf32>, vector<32x128xf32>, vector<1x128xf32> -> vector<1x128xf32>
    %366 = arith.addf %364, %365 : vector<1x128xf32>
    %367 = math.tanh %366 : vector<1x128xf32>
    %368 = arith.negf %366 : vector<1x128xf32>
    %369 = math.exp %368 : vector<1x128xf32>
    %cst_160 = arith.constant 1.000000e+00 : f32
    %370 = vector.broadcast %cst_160 : f32 to vector<1x128xf32>
    %371 = arith.addf %370, %369 : vector<1x128xf32>
    %372 = arith.divf %370, %371 : vector<1x128xf32>
    %373 = arith.select %2, %367, %372 : vector<1x128xi1>, vector<1x128xf32>
    %374 = vector.extract_strided_slice %373 {offsets = [0, 0], sizes = [1, 32], strides = [1, 1]} : vector<1x128xf32> to vector<1x32xf32>
    %375 = vector.extract_strided_slice %373 {offsets = [0, 32], sizes = [1, 32], strides = [1, 1]} : vector<1x128xf32> to vector<1x32xf32>
    %376 = vector.extract_strided_slice %373 {offsets = [0, 64], sizes = [1, 32], strides = [1, 1]} : vector<1x128xf32> to vector<1x32xf32>
    %377 = vector.extract_strided_slice %373 {offsets = [0, 96], sizes = [1, 32], strides = [1, 1]} : vector<1x128xf32> to vector<1x32xf32>
    %378 = arith.mulf %375, %360 : vector<1x32xf32>
    %379 = arith.mulf %374, %377 : vector<1x32xf32>
    %380 = arith.addf %378, %379 : vector<1x32xf32>
    %381 = math.tanh %380 : vector<1x32xf32>
    %382 = arith.mulf %376, %381 : vector<1x32xf32>
    %c1_161 = arith.constant 1 : index
    %c0_162 = arith.constant 0 : index
    %383 = vector.load %arg7[%c1_161, %c0_162] : memref<2x32xf32, #tpu.memory_space<vmem>>, vector<1x32xf32>
    tpu.vector_store %arg7[%c1_161, %c0_162], %382 {strides = array<i32>} : memref<2x32xf32, #tpu.memory_space<vmem>>, vector<1x32xf32>,
    %c0_163 = arith.constant 0 : index
    %c0_164 = arith.constant 0 : index
    %384 = vector.load %arg7[%c0_163, %c0_164] : memref<2x32xf32, #tpu.memory_space<vmem>>, vector<2x32xf32>
    %c2_165 = arith.constant 2 : index
    %c0_166 = arith.constant 0 : index
    %c0_167 = arith.constant 0 : index
    %385 = vector.load %arg1[%c2_165, %c0_166, %c0_167] : memref<3x32x128xf32, #tpu.memory_space<vmem>>, vector<1x32x128xf32>
    %386 = vector.shape_cast %385 : vector<1x32x128xf32> to vector<32x128xf32>
    %c2_168 = arith.constant 2 : index
    %c0_169 = arith.constant 0 : index
    %c0_170 = arith.constant 0 : index
    %387 = vector.load %arg2[%c2_168, %c0_169, %c0_170] : memref<3x32x128xf32, #tpu.memory_space<vmem>>, vector<1x32x128xf32>
    %388 = vector.shape_cast %387 : vector<1x32x128xf32> to vector<32x128xf32>
    %c2_171 = arith.constant 2 : index
    %c0_172 = arith.constant 0 : index
    %c0_173 = arith.constant 0 : index
    %389 = vector.load %arg3[%c2_171, %c0_172, %c0_173] : memref<3x1x128xf32, #tpu.memory_space<vmem>>, vector<1x1x128xf32>
    %390 = vector.shape_cast %389 : vector<1x1x128xf32> to vector<1x128xf32>
    %cst_174 = arith.constant dense<0.000000e+00> : vector<2x128xf32>
    %391 = tpu.matmul %384, %386, %cst_174 {dimension_numbers = #tpu.dot_dimension_numbers<[1], [0], [0], [1], [0, 0, 1, 1], [], []>} : vector<2x32xf32>, vector<32x128xf32>, vector<2x128xf32> -> vector<2x128xf32>
    %392 = vector.broadcast %390 : vector<1x128xf32> to vector<2x128xf32>
    %393 = arith.addf %391, %392 : vector<2x128xf32>
    %394 = vector.extract_strided_slice %393 {offsets = [0, 0], sizes = [1, 128], strides = [1, 1]} : vector<2x128xf32> to vector<1x128xf32>
    %395 = math.tanh %394 : vector<1x128xf32>
    %396 = arith.negf %394 : vector<1x128xf32>
    %397 = math.exp %396 : vector<1x128xf32>
    %cst_175 = arith.constant 1.000000e+00 : f32
    %398 = vector.broadcast %cst_175 : f32 to vector<1x128xf32>
    %399 = arith.addf %398, %397 : vector<1x128xf32>
    %400 = arith.divf %398, %399 : vector<1x128xf32>
    %401 = arith.select %2, %395, %400 : vector<1x128xi1>, vector<1x128xf32>
    %402 = vector.extract_strided_slice %401 {offsets = [0, 0], sizes = [1, 32], strides = [1, 1]} : vector<1x128xf32> to vector<1x32xf32>
    %403 = vector.extract_strided_slice %401 {offsets = [0, 64], sizes = [1, 32], strides = [1, 1]} : vector<1x128xf32> to vector<1x32xf32>
    %404 = vector.extract_strided_slice %401 {offsets = [0, 96], sizes = [1, 32], strides = [1, 1]} : vector<1x128xf32> to vector<1x32xf32>
    %405 = arith.mulf %402, %404 : vector<1x32xf32>
    %406 = math.tanh %405 : vector<1x32xf32>
    %407 = arith.mulf %403, %406 : vector<1x32xf32>
    %c0_176 = arith.constant 0 : index
    %c0_177 = arith.constant 0 : index
    %408 = vector.load %arg7[%c0_176, %c0_177] : memref<2x32xf32, #tpu.memory_space<vmem>>, vector<1x32xf32>
    tpu.vector_store %arg7[%c0_176, %c0_177], %407 {strides = array<i32>} : memref<2x32xf32, #tpu.memory_space<vmem>>, vector<1x32xf32>,
    %409 = vector.extract_strided_slice %393 {offsets = [1, 0], sizes = [1, 128], strides = [1, 1]} : vector<2x128xf32> to vector<1x128xf32>
    %cst_178 = arith.constant dense<0.000000e+00> : vector<1x128xf32>
    %410 = tpu.matmul %407, %388, %cst_178 {dimension_numbers = #tpu.dot_dimension_numbers<[1], [0], [0], [1], [0, 0, 1, 1], [], []>} : vector<1x32xf32>, vector<32x128xf32>, vector<1x128xf32> -> vector<1x128xf32>
    %411 = arith.addf %409, %410 : vector<1x128xf32>
    %412 = math.tanh %411 : vector<1x128xf32>
    %413 = arith.negf %411 : vector<1x128xf32>
    %414 = math.exp %413 : vector<1x128xf32>
    %cst_179 = arith.constant 1.000000e+00 : f32
    %415 = vector.broadcast %cst_179 : f32 to vector<1x128xf32>
    %416 = arith.addf %415, %414 : vector<1x128xf32>
    %417 = arith.divf %415, %416 : vector<1x128xf32>
    %418 = arith.select %2, %412, %417 : vector<1x128xi1>, vector<1x128xf32>
    %419 = vector.extract_strided_slice %418 {offsets = [0, 0], sizes = [1, 32], strides = [1, 1]} : vector<1x128xf32> to vector<1x32xf32>
    %420 = vector.extract_strided_slice %418 {offsets = [0, 32], sizes = [1, 32], strides = [1, 1]} : vector<1x128xf32> to vector<1x32xf32>
    %421 = vector.extract_strided_slice %418 {offsets = [0, 64], sizes = [1, 32], strides = [1, 1]} : vector<1x128xf32> to vector<1x32xf32>
    %422 = vector.extract_strided_slice %418 {offsets = [0, 96], sizes = [1, 32], strides = [1, 1]} : vector<1x128xf32> to vector<1x32xf32>
    %423 = arith.mulf %420, %405 : vector<1x32xf32>
    %424 = arith.mulf %419, %422 : vector<1x32xf32>
    %425 = arith.addf %423, %424 : vector<1x32xf32>
    %426 = math.tanh %425 : vector<1x32xf32>
    %427 = arith.mulf %421, %426 : vector<1x32xf32>
    %c1_180 = arith.constant 1 : index
    %c0_181 = arith.constant 0 : index
    %428 = vector.load %arg7[%c1_180, %c0_181] : memref<2x32xf32, #tpu.memory_space<vmem>>, vector<1x32xf32>
    tpu.vector_store %arg7[%c1_180, %c0_181], %427 {strides = array<i32>} : memref<2x32xf32, #tpu.memory_space<vmem>>, vector<1x32xf32>,
    %c0_182 = arith.constant 0 : index
    %c0_183 = arith.constant 0 : index
    %429 = vector.load %arg7[%c0_182, %c0_183] : memref<2x32xf32, #tpu.memory_space<vmem>>, vector<2x32xf32>
    %430 = vector.extract_strided_slice %429 {offsets = [0, 0], sizes = [1, 32], strides = [1, 1]} : vector<2x32xf32> to vector<1x32xf32>
    %c2_184 = arith.constant 2 : index
    %c0_185 = arith.constant 0 : index
    %431 = vector.load %arg8[%c2_184, %c0_185] : memref<16x32xf32, #tpu.memory_space<vmem>>, vector<1x32xf32>
    tpu.vector_store %arg8[%c2_184, %c0_185], %430 {strides = array<i32>} : memref<16x32xf32, #tpu.memory_space<vmem>>, vector<1x32xf32>,
    %432 = vector.extract_strided_slice %429 {offsets = [1, 0], sizes = [1, 32], strides = [1, 1]} : vector<2x32xf32> to vector<1x32xf32>
    %c10 = arith.constant 10 : index
    %c0_186 = arith.constant 0 : index
    %433 = vector.load %arg8[%c10, %c0_186] : memref<16x32xf32, #tpu.memory_space<vmem>>, vector<1x32xf32>
    tpu.vector_store %arg8[%c10, %c0_186], %432 {strides = array<i32>} : memref<16x32xf32, #tpu.memory_space<vmem>>, vector<1x32xf32>,
    %434 = arith.subf %294, %429 : vector<2x32xf32>
    %cst_187 = arith.constant 5.000000e-01 : f32
    %435 = vector.broadcast %cst_187 : f32 to vector<2x32xf32>
    %436 = arith.mulf %434, %435 : vector<2x32xf32>
    %437 = arith.addf %429, %436 : vector<2x32xf32>
    %c3 = arith.constant 3 : index
    %c0_188 = arith.constant 0 : index
    %c0_189 = arith.constant 0 : index
    %438 = vector.load %arg0[%c3, %c0_188, %c0_189] : memref<8x2x32xf32, #tpu.memory_space<vmem>>, vector<1x2x32xf32>
    %439 = vector.shape_cast %438 : vector<1x2x32xf32> to vector<2x32xf32>
    %c0_190 = arith.constant 0 : index
    %c0_191 = arith.constant 0 : index
    %c0_192 = arith.constant 0 : index
    %440 = vector.load %arg1[%c0_190, %c0_191, %c0_192] : memref<3x32x128xf32, #tpu.memory_space<vmem>>, vector<1x32x128xf32>
    %441 = vector.shape_cast %440 : vector<1x32x128xf32> to vector<32x128xf32>
    %c0_193 = arith.constant 0 : index
    %c0_194 = arith.constant 0 : index
    %c0_195 = arith.constant 0 : index
    %442 = vector.load %arg2[%c0_193, %c0_194, %c0_195] : memref<3x32x128xf32, #tpu.memory_space<vmem>>, vector<1x32x128xf32>
    %443 = vector.shape_cast %442 : vector<1x32x128xf32> to vector<32x128xf32>
    %c0_196 = arith.constant 0 : index
    %c0_197 = arith.constant 0 : index
    %c0_198 = arith.constant 0 : index
    %444 = vector.load %arg3[%c0_196, %c0_197, %c0_198] : memref<3x1x128xf32, #tpu.memory_space<vmem>>, vector<1x1x128xf32>
    %445 = vector.shape_cast %444 : vector<1x1x128xf32> to vector<1x128xf32>
    %cst_199 = arith.constant dense<0.000000e+00> : vector<2x128xf32>
    %446 = tpu.matmul %437, %441, %cst_199 {dimension_numbers = #tpu.dot_dimension_numbers<[1], [0], [0], [1], [0, 0, 1, 1], [], []>} : vector<2x32xf32>, vector<32x128xf32>, vector<2x128xf32> -> vector<2x128xf32>
    %447 = vector.broadcast %445 : vector<1x128xf32> to vector<2x128xf32>
    %448 = arith.addf %446, %447 : vector<2x128xf32>
    %449 = vector.extract_strided_slice %448 {offsets = [0, 0], sizes = [1, 128], strides = [1, 1]} : vector<2x128xf32> to vector<1x128xf32>
    %450 = math.tanh %449 : vector<1x128xf32>
    %451 = arith.negf %449 : vector<1x128xf32>
    %452 = math.exp %451 : vector<1x128xf32>
    %cst_200 = arith.constant 1.000000e+00 : f32
    %453 = vector.broadcast %cst_200 : f32 to vector<1x128xf32>
    %454 = arith.addf %453, %452 : vector<1x128xf32>
    %455 = arith.divf %453, %454 : vector<1x128xf32>
    %456 = arith.select %2, %450, %455 : vector<1x128xi1>, vector<1x128xf32>
    %457 = vector.extract_strided_slice %456 {offsets = [0, 0], sizes = [1, 32], strides = [1, 1]} : vector<1x128xf32> to vector<1x32xf32>
    %458 = vector.extract_strided_slice %456 {offsets = [0, 64], sizes = [1, 32], strides = [1, 1]} : vector<1x128xf32> to vector<1x32xf32>
    %459 = vector.extract_strided_slice %456 {offsets = [0, 96], sizes = [1, 32], strides = [1, 1]} : vector<1x128xf32> to vector<1x32xf32>
    %460 = arith.mulf %457, %459 : vector<1x32xf32>
    %461 = math.tanh %460 : vector<1x32xf32>
    %462 = arith.mulf %458, %461 : vector<1x32xf32>
    %c0_201 = arith.constant 0 : index
    %c0_202 = arith.constant 0 : index
    %463 = vector.load %arg7[%c0_201, %c0_202] : memref<2x32xf32, #tpu.memory_space<vmem>>, vector<1x32xf32>
    tpu.vector_store %arg7[%c0_201, %c0_202], %462 {strides = array<i32>} : memref<2x32xf32, #tpu.memory_space<vmem>>, vector<1x32xf32>,
    %464 = vector.extract_strided_slice %448 {offsets = [1, 0], sizes = [1, 128], strides = [1, 1]} : vector<2x128xf32> to vector<1x128xf32>
    %cst_203 = arith.constant dense<0.000000e+00> : vector<1x128xf32>
    %465 = tpu.matmul %462, %443, %cst_203 {dimension_numbers = #tpu.dot_dimension_numbers<[1], [0], [0], [1], [0, 0, 1, 1], [], []>} : vector<1x32xf32>, vector<32x128xf32>, vector<1x128xf32> -> vector<1x128xf32>
    %466 = arith.addf %464, %465 : vector<1x128xf32>
    %467 = math.tanh %466 : vector<1x128xf32>
    %468 = arith.negf %466 : vector<1x128xf32>
    %469 = math.exp %468 : vector<1x128xf32>
    %cst_204 = arith.constant 1.000000e+00 : f32
    %470 = vector.broadcast %cst_204 : f32 to vector<1x128xf32>
    %471 = arith.addf %470, %469 : vector<1x128xf32>
    %472 = arith.divf %470, %471 : vector<1x128xf32>
    %473 = arith.select %2, %467, %472 : vector<1x128xi1>, vector<1x128xf32>
    %474 = vector.extract_strided_slice %473 {offsets = [0, 0], sizes = [1, 32], strides = [1, 1]} : vector<1x128xf32> to vector<1x32xf32>
    %475 = vector.extract_strided_slice %473 {offsets = [0, 32], sizes = [1, 32], strides = [1, 1]} : vector<1x128xf32> to vector<1x32xf32>
    %476 = vector.extract_strided_slice %473 {offsets = [0, 64], sizes = [1, 32], strides = [1, 1]} : vector<1x128xf32> to vector<1x32xf32>
    %477 = vector.extract_strided_slice %473 {offsets = [0, 96], sizes = [1, 32], strides = [1, 1]} : vector<1x128xf32> to vector<1x32xf32>
    %478 = arith.mulf %475, %460 : vector<1x32xf32>
    %479 = arith.mulf %474, %477 : vector<1x32xf32>
    %480 = arith.addf %478, %479 : vector<1x32xf32>
    %481 = math.tanh %480 : vector<1x32xf32>
    %482 = arith.mulf %476, %481 : vector<1x32xf32>
    %c1_205 = arith.constant 1 : index
    %c0_206 = arith.constant 0 : index
    %483 = vector.load %arg7[%c1_205, %c0_206] : memref<2x32xf32, #tpu.memory_space<vmem>>, vector<1x32xf32>
    tpu.vector_store %arg7[%c1_205, %c0_206], %482 {strides = array<i32>} : memref<2x32xf32, #tpu.memory_space<vmem>>, vector<1x32xf32>,
    %c0_207 = arith.constant 0 : index
    %c0_208 = arith.constant 0 : index
    %484 = vector.load %arg7[%c0_207, %c0_208] : memref<2x32xf32, #tpu.memory_space<vmem>>, vector<2x32xf32>
    %c1_209 = arith.constant 1 : index
    %c0_210 = arith.constant 0 : index
    %c0_211 = arith.constant 0 : index
    %485 = vector.load %arg1[%c1_209, %c0_210, %c0_211] : memref<3x32x128xf32, #tpu.memory_space<vmem>>, vector<1x32x128xf32>
    %486 = vector.shape_cast %485 : vector<1x32x128xf32> to vector<32x128xf32>
    %c1_212 = arith.constant 1 : index
    %c0_213 = arith.constant 0 : index
    %c0_214 = arith.constant 0 : index
    %487 = vector.load %arg2[%c1_212, %c0_213, %c0_214] : memref<3x32x128xf32, #tpu.memory_space<vmem>>, vector<1x32x128xf32>
    %488 = vector.shape_cast %487 : vector<1x32x128xf32> to vector<32x128xf32>
    %c1_215 = arith.constant 1 : index
    %c0_216 = arith.constant 0 : index
    %c0_217 = arith.constant 0 : index
    %489 = vector.load %arg3[%c1_215, %c0_216, %c0_217] : memref<3x1x128xf32, #tpu.memory_space<vmem>>, vector<1x1x128xf32>
    %490 = vector.shape_cast %489 : vector<1x1x128xf32> to vector<1x128xf32>
    %cst_218 = arith.constant dense<0.000000e+00> : vector<2x128xf32>
    %491 = tpu.matmul %484, %486, %cst_218 {dimension_numbers = #tpu.dot_dimension_numbers<[1], [0], [0], [1], [0, 0, 1, 1], [], []>} : vector<2x32xf32>, vector<32x128xf32>, vector<2x128xf32> -> vector<2x128xf32>
    %492 = vector.broadcast %490 : vector<1x128xf32> to vector<2x128xf32>
    %493 = arith.addf %491, %492 : vector<2x128xf32>
    %494 = vector.extract_strided_slice %493 {offsets = [0, 0], sizes = [1, 128], strides = [1, 1]} : vector<2x128xf32> to vector<1x128xf32>
    %495 = math.tanh %494 : vector<1x128xf32>
    %496 = arith.negf %494 : vector<1x128xf32>
    %497 = math.exp %496 : vector<1x128xf32>
    %cst_219 = arith.constant 1.000000e+00 : f32
    %498 = vector.broadcast %cst_219 : f32 to vector<1x128xf32>
    %499 = arith.addf %498, %497 : vector<1x128xf32>
    %500 = arith.divf %498, %499 : vector<1x128xf32>
    %501 = arith.select %2, %495, %500 : vector<1x128xi1>, vector<1x128xf32>
    %502 = vector.extract_strided_slice %501 {offsets = [0, 0], sizes = [1, 32], strides = [1, 1]} : vector<1x128xf32> to vector<1x32xf32>
    %503 = vector.extract_strided_slice %501 {offsets = [0, 64], sizes = [1, 32], strides = [1, 1]} : vector<1x128xf32> to vector<1x32xf32>
    %504 = vector.extract_strided_slice %501 {offsets = [0, 96], sizes = [1, 32], strides = [1, 1]} : vector<1x128xf32> to vector<1x32xf32>
    %505 = arith.mulf %502, %504 : vector<1x32xf32>
    %506 = math.tanh %505 : vector<1x32xf32>
    %507 = arith.mulf %503, %506 : vector<1x32xf32>
    %c0_220 = arith.constant 0 : index
    %c0_221 = arith.constant 0 : index
    %508 = vector.load %arg7[%c0_220, %c0_221] : memref<2x32xf32, #tpu.memory_space<vmem>>, vector<1x32xf32>
    tpu.vector_store %arg7[%c0_220, %c0_221], %507 {strides = array<i32>} : memref<2x32xf32, #tpu.memory_space<vmem>>, vector<1x32xf32>,
    %509 = vector.extract_strided_slice %493 {offsets = [1, 0], sizes = [1, 128], strides = [1, 1]} : vector<2x128xf32> to vector<1x128xf32>
    %cst_222 = arith.constant dense<0.000000e+00> : vector<1x128xf32>
    %510 = tpu.matmul %507, %488, %cst_222 {dimension_numbers = #tpu.dot_dimension_numbers<[1], [0], [0], [1], [0, 0, 1, 1], [], []>} : vector<1x32xf32>, vector<32x128xf32>, vector<1x128xf32> -> vector<1x128xf32>
    %511 = arith.addf %509, %510 : vector<1x128xf32>
    %512 = math.tanh %511 : vector<1x128xf32>
    %513 = arith.negf %511 : vector<1x128xf32>
    %514 = math.exp %513 : vector<1x128xf32>
    %cst_223 = arith.constant 1.000000e+00 : f32
    %515 = vector.broadcast %cst_223 : f32 to vector<1x128xf32>
    %516 = arith.addf %515, %514 : vector<1x128xf32>
    %517 = arith.divf %515, %516 : vector<1x128xf32>
    %518 = arith.select %2, %512, %517 : vector<1x128xi1>, vector<1x128xf32>
    %519 = vector.extract_strided_slice %518 {offsets = [0, 0], sizes = [1, 32], strides = [1, 1]} : vector<1x128xf32> to vector<1x32xf32>
    %520 = vector.extract_strided_slice %518 {offsets = [0, 32], sizes = [1, 32], strides = [1, 1]} : vector<1x128xf32> to vector<1x32xf32>
    %521 = vector.extract_strided_slice %518 {offsets = [0, 64], sizes = [1, 32], strides = [1, 1]} : vector<1x128xf32> to vector<1x32xf32>
    %522 = vector.extract_strided_slice %518 {offsets = [0, 96], sizes = [1, 32], strides = [1, 1]} : vector<1x128xf32> to vector<1x32xf32>
    %523 = arith.mulf %520, %505 : vector<1x32xf32>
    %524 = arith.mulf %519, %522 : vector<1x32xf32>
    %525 = arith.addf %523, %524 : vector<1x32xf32>
    %526 = math.tanh %525 : vector<1x32xf32>
    %527 = arith.mulf %521, %526 : vector<1x32xf32>
    %c1_224 = arith.constant 1 : index
    %c0_225 = arith.constant 0 : index
    %528 = vector.load %arg7[%c1_224, %c0_225] : memref<2x32xf32, #tpu.memory_space<vmem>>, vector<1x32xf32>
    tpu.vector_store %arg7[%c1_224, %c0_225], %527 {strides = array<i32>} : memref<2x32xf32, #tpu.memory_space<vmem>>, vector<1x32xf32>,
    %c0_226 = arith.constant 0 : index
    %c0_227 = arith.constant 0 : index
    %529 = vector.load %arg7[%c0_226, %c0_227] : memref<2x32xf32, #tpu.memory_space<vmem>>, vector<2x32xf32>
    %c2_228 = arith.constant 2 : index
    %c0_229 = arith.constant 0 : index
    %c0_230 = arith.constant 0 : index
    %530 = vector.load %arg1[%c2_228, %c0_229, %c0_230] : memref<3x32x128xf32, #tpu.memory_space<vmem>>, vector<1x32x128xf32>
    %531 = vector.shape_cast %530 : vector<1x32x128xf32> to vector<32x128xf32>
    %c2_231 = arith.constant 2 : index
    %c0_232 = arith.constant 0 : index
    %c0_233 = arith.constant 0 : index
    %532 = vector.load %arg2[%c2_231, %c0_232, %c0_233] : memref<3x32x128xf32, #tpu.memory_space<vmem>>, vector<1x32x128xf32>
    %533 = vector.shape_cast %532 : vector<1x32x128xf32> to vector<32x128xf32>
    %c2_234 = arith.constant 2 : index
    %c0_235 = arith.constant 0 : index
    %c0_236 = arith.constant 0 : index
    %534 = vector.load %arg3[%c2_234, %c0_235, %c0_236] : memref<3x1x128xf32, #tpu.memory_space<vmem>>, vector<1x1x128xf32>
    %535 = vector.shape_cast %534 : vector<1x1x128xf32> to vector<1x128xf32>
    %cst_237 = arith.constant dense<0.000000e+00> : vector<2x128xf32>
    %536 = tpu.matmul %529, %531, %cst_237 {dimension_numbers = #tpu.dot_dimension_numbers<[1], [0], [0], [1], [0, 0, 1, 1], [], []>} : vector<2x32xf32>, vector<32x128xf32>, vector<2x128xf32> -> vector<2x128xf32>
    %537 = vector.broadcast %535 : vector<1x128xf32> to vector<2x128xf32>
    %538 = arith.addf %536, %537 : vector<2x128xf32>
    %539 = vector.extract_strided_slice %538 {offsets = [0, 0], sizes = [1, 128], strides = [1, 1]} : vector<2x128xf32> to vector<1x128xf32>
    %540 = math.tanh %539 : vector<1x128xf32>
    %541 = arith.negf %539 : vector<1x128xf32>
    %542 = math.exp %541 : vector<1x128xf32>
    %cst_238 = arith.constant 1.000000e+00 : f32
    %543 = vector.broadcast %cst_238 : f32 to vector<1x128xf32>
    %544 = arith.addf %543, %542 : vector<1x128xf32>
    %545 = arith.divf %543, %544 : vector<1x128xf32>
    %546 = arith.select %2, %540, %545 : vector<1x128xi1>, vector<1x128xf32>
    %547 = vector.extract_strided_slice %546 {offsets = [0, 0], sizes = [1, 32], strides = [1, 1]} : vector<1x128xf32> to vector<1x32xf32>
    %548 = vector.extract_strided_slice %546 {offsets = [0, 64], sizes = [1, 32], strides = [1, 1]} : vector<1x128xf32> to vector<1x32xf32>
    %549 = vector.extract_strided_slice %546 {offsets = [0, 96], sizes = [1, 32], strides = [1, 1]} : vector<1x128xf32> to vector<1x32xf32>
    %550 = arith.mulf %547, %549 : vector<1x32xf32>
    %551 = math.tanh %550 : vector<1x32xf32>
    %552 = arith.mulf %548, %551 : vector<1x32xf32>
    %c0_239 = arith.constant 0 : index
    %c0_240 = arith.constant 0 : index
    %553 = vector.load %arg7[%c0_239, %c0_240] : memref<2x32xf32, #tpu.memory_space<vmem>>, vector<1x32xf32>
    tpu.vector_store %arg7[%c0_239, %c0_240], %552 {strides = array<i32>} : memref<2x32xf32, #tpu.memory_space<vmem>>, vector<1x32xf32>,
    %554 = vector.extract_strided_slice %538 {offsets = [1, 0], sizes = [1, 128], strides = [1, 1]} : vector<2x128xf32> to vector<1x128xf32>
    %cst_241 = arith.constant dense<0.000000e+00> : vector<1x128xf32>
    %555 = tpu.matmul %552, %533, %cst_241 {dimension_numbers = #tpu.dot_dimension_numbers<[1], [0], [0], [1], [0, 0, 1, 1], [], []>} : vector<1x32xf32>, vector<32x128xf32>, vector<1x128xf32> -> vector<1x128xf32>
    %556 = arith.addf %554, %555 : vector<1x128xf32>
    %557 = math.tanh %556 : vector<1x128xf32>
    %558 = arith.negf %556 : vector<1x128xf32>
    %559 = math.exp %558 : vector<1x128xf32>
    %cst_242 = arith.constant 1.000000e+00 : f32
    %560 = vector.broadcast %cst_242 : f32 to vector<1x128xf32>
    %561 = arith.addf %560, %559 : vector<1x128xf32>
    %562 = arith.divf %560, %561 : vector<1x128xf32>
    %563 = arith.select %2, %557, %562 : vector<1x128xi1>, vector<1x128xf32>
    %564 = vector.extract_strided_slice %563 {offsets = [0, 0], sizes = [1, 32], strides = [1, 1]} : vector<1x128xf32> to vector<1x32xf32>
    %565 = vector.extract_strided_slice %563 {offsets = [0, 32], sizes = [1, 32], strides = [1, 1]} : vector<1x128xf32> to vector<1x32xf32>
    %566 = vector.extract_strided_slice %563 {offsets = [0, 64], sizes = [1, 32], strides = [1, 1]} : vector<1x128xf32> to vector<1x32xf32>
    %567 = vector.extract_strided_slice %563 {offsets = [0, 96], sizes = [1, 32], strides = [1, 1]} : vector<1x128xf32> to vector<1x32xf32>
    %568 = arith.mulf %565, %550 : vector<1x32xf32>
    %569 = arith.mulf %564, %567 : vector<1x32xf32>
    %570 = arith.addf %568, %569 : vector<1x32xf32>
    %571 = math.tanh %570 : vector<1x32xf32>
    %572 = arith.mulf %566, %571 : vector<1x32xf32>
    %c1_243 = arith.constant 1 : index
    %c0_244 = arith.constant 0 : index
    %573 = vector.load %arg7[%c1_243, %c0_244] : memref<2x32xf32, #tpu.memory_space<vmem>>, vector<1x32xf32>
    tpu.vector_store %arg7[%c1_243, %c0_244], %572 {strides = array<i32>} : memref<2x32xf32, #tpu.memory_space<vmem>>, vector<1x32xf32>,
    %c0_245 = arith.constant 0 : index
    %c0_246 = arith.constant 0 : index
    %574 = vector.load %arg7[%c0_245, %c0_246] : memref<2x32xf32, #tpu.memory_space<vmem>>, vector<2x32xf32>
    %575 = vector.extract_strided_slice %574 {offsets = [0, 0], sizes = [1, 32], strides = [1, 1]} : vector<2x32xf32> to vector<1x32xf32>
    %c3_247 = arith.constant 3 : index
    %c0_248 = arith.constant 0 : index
    %576 = vector.load %arg8[%c3_247, %c0_248] : memref<16x32xf32, #tpu.memory_space<vmem>>, vector<1x32xf32>
    tpu.vector_store %arg8[%c3_247, %c0_248], %575 {strides = array<i32>} : memref<16x32xf32, #tpu.memory_space<vmem>>, vector<1x32xf32>,
    %577 = vector.extract_strided_slice %574 {offsets = [1, 0], sizes = [1, 32], strides = [1, 1]} : vector<2x32xf32> to vector<1x32xf32>
    %c11 = arith.constant 11 : index
    %c0_249 = arith.constant 0 : index
    %578 = vector.load %arg8[%c11, %c0_249] : memref<16x32xf32, #tpu.memory_space<vmem>>, vector<1x32xf32>
    tpu.vector_store %arg8[%c11, %c0_249], %577 {strides = array<i32>} : memref<16x32xf32, #tpu.memory_space<vmem>>, vector<1x32xf32>,
    %579 = arith.subf %439, %574 : vector<2x32xf32>
    %cst_250 = arith.constant 5.000000e-01 : f32
    %580 = vector.broadcast %cst_250 : f32 to vector<2x32xf32>
    %581 = arith.mulf %579, %580 : vector<2x32xf32>
    %582 = arith.addf %574, %581 : vector<2x32xf32>
    %c4 = arith.constant 4 : index
    %c0_251 = arith.constant 0 : index
    %c0_252 = arith.constant 0 : index
    %583 = vector.load %arg0[%c4, %c0_251, %c0_252] : memref<8x2x32xf32, #tpu.memory_space<vmem>>, vector<1x2x32xf32>
    %584 = vector.shape_cast %583 : vector<1x2x32xf32> to vector<2x32xf32>
    %c0_253 = arith.constant 0 : index
    %c0_254 = arith.constant 0 : index
    %c0_255 = arith.constant 0 : index
    %585 = vector.load %arg1[%c0_253, %c0_254, %c0_255] : memref<3x32x128xf32, #tpu.memory_space<vmem>>, vector<1x32x128xf32>
    %586 = vector.shape_cast %585 : vector<1x32x128xf32> to vector<32x128xf32>
    %c0_256 = arith.constant 0 : index
    %c0_257 = arith.constant 0 : index
    %c0_258 = arith.constant 0 : index
    %587 = vector.load %arg2[%c0_256, %c0_257, %c0_258] : memref<3x32x128xf32, #tpu.memory_space<vmem>>, vector<1x32x128xf32>
    %588 = vector.shape_cast %587 : vector<1x32x128xf32> to vector<32x128xf32>
    %c0_259 = arith.constant 0 : index
    %c0_260 = arith.constant 0 : index
    %c0_261 = arith.constant 0 : index
    %589 = vector.load %arg3[%c0_259, %c0_260, %c0_261] : memref<3x1x128xf32, #tpu.memory_space<vmem>>, vector<1x1x128xf32>
    %590 = vector.shape_cast %589 : vector<1x1x128xf32> to vector<1x128xf32>
    %cst_262 = arith.constant dense<0.000000e+00> : vector<2x128xf32>
    %591 = tpu.matmul %582, %586, %cst_262 {dimension_numbers = #tpu.dot_dimension_numbers<[1], [0], [0], [1], [0, 0, 1, 1], [], []>} : vector<2x32xf32>, vector<32x128xf32>, vector<2x128xf32> -> vector<2x128xf32>
    %592 = vector.broadcast %590 : vector<1x128xf32> to vector<2x128xf32>
    %593 = arith.addf %591, %592 : vector<2x128xf32>
    %594 = vector.extract_strided_slice %593 {offsets = [0, 0], sizes = [1, 128], strides = [1, 1]} : vector<2x128xf32> to vector<1x128xf32>
    %595 = math.tanh %594 : vector<1x128xf32>
    %596 = arith.negf %594 : vector<1x128xf32>
    %597 = math.exp %596 : vector<1x128xf32>
    %cst_263 = arith.constant 1.000000e+00 : f32
    %598 = vector.broadcast %cst_263 : f32 to vector<1x128xf32>
    %599 = arith.addf %598, %597 : vector<1x128xf32>
    %600 = arith.divf %598, %599 : vector<1x128xf32>
    %601 = arith.select %2, %595, %600 : vector<1x128xi1>, vector<1x128xf32>
    %602 = vector.extract_strided_slice %601 {offsets = [0, 0], sizes = [1, 32], strides = [1, 1]} : vector<1x128xf32> to vector<1x32xf32>
    %603 = vector.extract_strided_slice %601 {offsets = [0, 64], sizes = [1, 32], strides = [1, 1]} : vector<1x128xf32> to vector<1x32xf32>
    %604 = vector.extract_strided_slice %601 {offsets = [0, 96], sizes = [1, 32], strides = [1, 1]} : vector<1x128xf32> to vector<1x32xf32>
    %605 = arith.mulf %602, %604 : vector<1x32xf32>
    %606 = math.tanh %605 : vector<1x32xf32>
    %607 = arith.mulf %603, %606 : vector<1x32xf32>
    %c0_264 = arith.constant 0 : index
    %c0_265 = arith.constant 0 : index
    %608 = vector.load %arg7[%c0_264, %c0_265] : memref<2x32xf32, #tpu.memory_space<vmem>>, vector<1x32xf32>
    tpu.vector_store %arg7[%c0_264, %c0_265], %607 {strides = array<i32>} : memref<2x32xf32, #tpu.memory_space<vmem>>, vector<1x32xf32>,
    %609 = vector.extract_strided_slice %593 {offsets = [1, 0], sizes = [1, 128], strides = [1, 1]} : vector<2x128xf32> to vector<1x128xf32>
    %cst_266 = arith.constant dense<0.000000e+00> : vector<1x128xf32>
    %610 = tpu.matmul %607, %588, %cst_266 {dimension_numbers = #tpu.dot_dimension_numbers<[1], [0], [0], [1], [0, 0, 1, 1], [], []>} : vector<1x32xf32>, vector<32x128xf32>, vector<1x128xf32> -> vector<1x128xf32>
    %611 = arith.addf %609, %610 : vector<1x128xf32>
    %612 = math.tanh %611 : vector<1x128xf32>
    %613 = arith.negf %611 : vector<1x128xf32>
    %614 = math.exp %613 : vector<1x128xf32>
    %cst_267 = arith.constant 1.000000e+00 : f32
    %615 = vector.broadcast %cst_267 : f32 to vector<1x128xf32>
    %616 = arith.addf %615, %614 : vector<1x128xf32>
    %617 = arith.divf %615, %616 : vector<1x128xf32>
    %618 = arith.select %2, %612, %617 : vector<1x128xi1>, vector<1x128xf32>
    %619 = vector.extract_strided_slice %618 {offsets = [0, 0], sizes = [1, 32], strides = [1, 1]} : vector<1x128xf32> to vector<1x32xf32>
    %620 = vector.extract_strided_slice %618 {offsets = [0, 32], sizes = [1, 32], strides = [1, 1]} : vector<1x128xf32> to vector<1x32xf32>
    %621 = vector.extract_strided_slice %618 {offsets = [0, 64], sizes = [1, 32], strides = [1, 1]} : vector<1x128xf32> to vector<1x32xf32>
    %622 = vector.extract_strided_slice %618 {offsets = [0, 96], sizes = [1, 32], strides = [1, 1]} : vector<1x128xf32> to vector<1x32xf32>
    %623 = arith.mulf %620, %605 : vector<1x32xf32>
    %624 = arith.mulf %619, %622 : vector<1x32xf32>
    %625 = arith.addf %623, %624 : vector<1x32xf32>
    %626 = math.tanh %625 : vector<1x32xf32>
    %627 = arith.mulf %621, %626 : vector<1x32xf32>
    %c1_268 = arith.constant 1 : index
    %c0_269 = arith.constant 0 : index
    %628 = vector.load %arg7[%c1_268, %c0_269] : memref<2x32xf32, #tpu.memory_space<vmem>>, vector<1x32xf32>
    tpu.vector_store %arg7[%c1_268, %c0_269], %627 {strides = array<i32>} : memref<2x32xf32, #tpu.memory_space<vmem>>, vector<1x32xf32>,
    %c0_270 = arith.constant 0 : index
    %c0_271 = arith.constant 0 : index
    %629 = vector.load %arg7[%c0_270, %c0_271] : memref<2x32xf32, #tpu.memory_space<vmem>>, vector<2x32xf32>
    %c1_272 = arith.constant 1 : index
    %c0_273 = arith.constant 0 : index
    %c0_274 = arith.constant 0 : index
    %630 = vector.load %arg1[%c1_272, %c0_273, %c0_274] : memref<3x32x128xf32, #tpu.memory_space<vmem>>, vector<1x32x128xf32>
    %631 = vector.shape_cast %630 : vector<1x32x128xf32> to vector<32x128xf32>
    %c1_275 = arith.constant 1 : index
    %c0_276 = arith.constant 0 : index
    %c0_277 = arith.constant 0 : index
    %632 = vector.load %arg2[%c1_275, %c0_276, %c0_277] : memref<3x32x128xf32, #tpu.memory_space<vmem>>, vector<1x32x128xf32>
    %633 = vector.shape_cast %632 : vector<1x32x128xf32> to vector<32x128xf32>
    %c1_278 = arith.constant 1 : index
    %c0_279 = arith.constant 0 : index
    %c0_280 = arith.constant 0 : index
    %634 = vector.load %arg3[%c1_278, %c0_279, %c0_280] : memref<3x1x128xf32, #tpu.memory_space<vmem>>, vector<1x1x128xf32>
    %635 = vector.shape_cast %634 : vector<1x1x128xf32> to vector<1x128xf32>
    %cst_281 = arith.constant dense<0.000000e+00> : vector<2x128xf32>
    %636 = tpu.matmul %629, %631, %cst_281 {dimension_numbers = #tpu.dot_dimension_numbers<[1], [0], [0], [1], [0, 0, 1, 1], [], []>} : vector<2x32xf32>, vector<32x128xf32>, vector<2x128xf32> -> vector<2x128xf32>
    %637 = vector.broadcast %635 : vector<1x128xf32> to vector<2x128xf32>
    %638 = arith.addf %636, %637 : vector<2x128xf32>
    %639 = vector.extract_strided_slice %638 {offsets = [0, 0], sizes = [1, 128], strides = [1, 1]} : vector<2x128xf32> to vector<1x128xf32>
    %640 = math.tanh %639 : vector<1x128xf32>
    %641 = arith.negf %639 : vector<1x128xf32>
    %642 = math.exp %641 : vector<1x128xf32>
    %cst_282 = arith.constant 1.000000e+00 : f32
    %643 = vector.broadcast %cst_282 : f32 to vector<1x128xf32>
    %644 = arith.addf %643, %642 : vector<1x128xf32>
    %645 = arith.divf %643, %644 : vector<1x128xf32>
    %646 = arith.select %2, %640, %645 : vector<1x128xi1>, vector<1x128xf32>
    %647 = vector.extract_strided_slice %646 {offsets = [0, 0], sizes = [1, 32], strides = [1, 1]} : vector<1x128xf32> to vector<1x32xf32>
    %648 = vector.extract_strided_slice %646 {offsets = [0, 64], sizes = [1, 32], strides = [1, 1]} : vector<1x128xf32> to vector<1x32xf32>
    %649 = vector.extract_strided_slice %646 {offsets = [0, 96], sizes = [1, 32], strides = [1, 1]} : vector<1x128xf32> to vector<1x32xf32>
    %650 = arith.mulf %647, %649 : vector<1x32xf32>
    %651 = math.tanh %650 : vector<1x32xf32>
    %652 = arith.mulf %648, %651 : vector<1x32xf32>
    %c0_283 = arith.constant 0 : index
    %c0_284 = arith.constant 0 : index
    %653 = vector.load %arg7[%c0_283, %c0_284] : memref<2x32xf32, #tpu.memory_space<vmem>>, vector<1x32xf32>
    tpu.vector_store %arg7[%c0_283, %c0_284], %652 {strides = array<i32>} : memref<2x32xf32, #tpu.memory_space<vmem>>, vector<1x32xf32>,
    %654 = vector.extract_strided_slice %638 {offsets = [1, 0], sizes = [1, 128], strides = [1, 1]} : vector<2x128xf32> to vector<1x128xf32>
    %cst_285 = arith.constant dense<0.000000e+00> : vector<1x128xf32>
    %655 = tpu.matmul %652, %633, %cst_285 {dimension_numbers = #tpu.dot_dimension_numbers<[1], [0], [0], [1], [0, 0, 1, 1], [], []>} : vector<1x32xf32>, vector<32x128xf32>, vector<1x128xf32> -> vector<1x128xf32>
    %656 = arith.addf %654, %655 : vector<1x128xf32>
    %657 = math.tanh %656 : vector<1x128xf32>
    %658 = arith.negf %656 : vector<1x128xf32>
    %659 = math.exp %658 : vector<1x128xf32>
    %cst_286 = arith.constant 1.000000e+00 : f32
    %660 = vector.broadcast %cst_286 : f32 to vector<1x128xf32>
    %661 = arith.addf %660, %659 : vector<1x128xf32>
    %662 = arith.divf %660, %661 : vector<1x128xf32>
    %663 = arith.select %2, %657, %662 : vector<1x128xi1>, vector<1x128xf32>
    %664 = vector.extract_strided_slice %663 {offsets = [0, 0], sizes = [1, 32], strides = [1, 1]} : vector<1x128xf32> to vector<1x32xf32>
    %665 = vector.extract_strided_slice %663 {offsets = [0, 32], sizes = [1, 32], strides = [1, 1]} : vector<1x128xf32> to vector<1x32xf32>
    %666 = vector.extract_strided_slice %663 {offsets = [0, 64], sizes = [1, 32], strides = [1, 1]} : vector<1x128xf32> to vector<1x32xf32>
    %667 = vector.extract_strided_slice %663 {offsets = [0, 96], sizes = [1, 32], strides = [1, 1]} : vector<1x128xf32> to vector<1x32xf32>
    %668 = arith.mulf %665, %650 : vector<1x32xf32>
    %669 = arith.mulf %664, %667 : vector<1x32xf32>
    %670 = arith.addf %668, %669 : vector<1x32xf32>
    %671 = math.tanh %670 : vector<1x32xf32>
    %672 = arith.mulf %666, %671 : vector<1x32xf32>
    %c1_287 = arith.constant 1 : index
    %c0_288 = arith.constant 0 : index
    %673 = vector.load %arg7[%c1_287, %c0_288] : memref<2x32xf32, #tpu.memory_space<vmem>>, vector<1x32xf32>
    tpu.vector_store %arg7[%c1_287, %c0_288], %672 {strides = array<i32>} : memref<2x32xf32, #tpu.memory_space<vmem>>, vector<1x32xf32>,
    %c0_289 = arith.constant 0 : index
    %c0_290 = arith.constant 0 : index
    %674 = vector.load %arg7[%c0_289, %c0_290] : memref<2x32xf32, #tpu.memory_space<vmem>>, vector<2x32xf32>
    %c2_291 = arith.constant 2 : index
    %c0_292 = arith.constant 0 : index
    %c0_293 = arith.constant 0 : index
    %675 = vector.load %arg1[%c2_291, %c0_292, %c0_293] : memref<3x32x128xf32, #tpu.memory_space<vmem>>, vector<1x32x128xf32>
    %676 = vector.shape_cast %675 : vector<1x32x128xf32> to vector<32x128xf32>
    %c2_294 = arith.constant 2 : index
    %c0_295 = arith.constant 0 : index
    %c0_296 = arith.constant 0 : index
    %677 = vector.load %arg2[%c2_294, %c0_295, %c0_296] : memref<3x32x128xf32, #tpu.memory_space<vmem>>, vector<1x32x128xf32>
    %678 = vector.shape_cast %677 : vector<1x32x128xf32> to vector<32x128xf32>
    %c2_297 = arith.constant 2 : index
    %c0_298 = arith.constant 0 : index
    %c0_299 = arith.constant 0 : index
    %679 = vector.load %arg3[%c2_297, %c0_298, %c0_299] : memref<3x1x128xf32, #tpu.memory_space<vmem>>, vector<1x1x128xf32>
    %680 = vector.shape_cast %679 : vector<1x1x128xf32> to vector<1x128xf32>
    %cst_300 = arith.constant dense<0.000000e+00> : vector<2x128xf32>
    %681 = tpu.matmul %674, %676, %cst_300 {dimension_numbers = #tpu.dot_dimension_numbers<[1], [0], [0], [1], [0, 0, 1, 1], [], []>} : vector<2x32xf32>, vector<32x128xf32>, vector<2x128xf32> -> vector<2x128xf32>
    %682 = vector.broadcast %680 : vector<1x128xf32> to vector<2x128xf32>
    %683 = arith.addf %681, %682 : vector<2x128xf32>
    %684 = vector.extract_strided_slice %683 {offsets = [0, 0], sizes = [1, 128], strides = [1, 1]} : vector<2x128xf32> to vector<1x128xf32>
    %685 = math.tanh %684 : vector<1x128xf32>
    %686 = arith.negf %684 : vector<1x128xf32>
    %687 = math.exp %686 : vector<1x128xf32>
    %cst_301 = arith.constant 1.000000e+00 : f32
    %688 = vector.broadcast %cst_301 : f32 to vector<1x128xf32>
    %689 = arith.addf %688, %687 : vector<1x128xf32>
    %690 = arith.divf %688, %689 : vector<1x128xf32>
    %691 = arith.select %2, %685, %690 : vector<1x128xi1>, vector<1x128xf32>
    %692 = vector.extract_strided_slice %691 {offsets = [0, 0], sizes = [1, 32], strides = [1, 1]} : vector<1x128xf32> to vector<1x32xf32>
    %693 = vector.extract_strided_slice %691 {offsets = [0, 64], sizes = [1, 32], strides = [1, 1]} : vector<1x128xf32> to vector<1x32xf32>
    %694 = vector.extract_strided_slice %691 {offsets = [0, 96], sizes = [1, 32], strides = [1, 1]} : vector<1x128xf32> to vector<1x32xf32>
    %695 = arith.mulf %692, %694 : vector<1x32xf32>
    %696 = math.tanh %695 : vector<1x32xf32>
    %697 = arith.mulf %693, %696 : vector<1x32xf32>
    %c0_302 = arith.constant 0 : index
    %c0_303 = arith.constant 0 : index
    %698 = vector.load %arg7[%c0_302, %c0_303] : memref<2x32xf32, #tpu.memory_space<vmem>>, vector<1x32xf32>
    tpu.vector_store %arg7[%c0_302, %c0_303], %697 {strides = array<i32>} : memref<2x32xf32, #tpu.memory_space<vmem>>, vector<1x32xf32>,
    %699 = vector.extract_strided_slice %683 {offsets = [1, 0], sizes = [1, 128], strides = [1, 1]} : vector<2x128xf32> to vector<1x128xf32>
    %cst_304 = arith.constant dense<0.000000e+00> : vector<1x128xf32>
    %700 = tpu.matmul %697, %678, %cst_304 {dimension_numbers = #tpu.dot_dimension_numbers<[1], [0], [0], [1], [0, 0, 1, 1], [], []>} : vector<1x32xf32>, vector<32x128xf32>, vector<1x128xf32> -> vector<1x128xf32>
    %701 = arith.addf %699, %700 : vector<1x128xf32>
    %702 = math.tanh %701 : vector<1x128xf32>
    %703 = arith.negf %701 : vector<1x128xf32>
    %704 = math.exp %703 : vector<1x128xf32>
    %cst_305 = arith.constant 1.000000e+00 : f32
    %705 = vector.broadcast %cst_305 : f32 to vector<1x128xf32>
    %706 = arith.addf %705, %704 : vector<1x128xf32>
    %707 = arith.divf %705, %706 : vector<1x128xf32>
    %708 = arith.select %2, %702, %707 : vector<1x128xi1>, vector<1x128xf32>
    %709 = vector.extract_strided_slice %708 {offsets = [0, 0], sizes = [1, 32], strides = [1, 1]} : vector<1x128xf32> to vector<1x32xf32>
    %710 = vector.extract_strided_slice %708 {offsets = [0, 32], sizes = [1, 32], strides = [1, 1]} : vector<1x128xf32> to vector<1x32xf32>
    %711 = vector.extract_strided_slice %708 {offsets = [0, 64], sizes = [1, 32], strides = [1, 1]} : vector<1x128xf32> to vector<1x32xf32>
    %712 = vector.extract_strided_slice %708 {offsets = [0, 96], sizes = [1, 32], strides = [1, 1]} : vector<1x128xf32> to vector<1x32xf32>
    %713 = arith.mulf %710, %695 : vector<1x32xf32>
    %714 = arith.mulf %709, %712 : vector<1x32xf32>
    %715 = arith.addf %713, %714 : vector<1x32xf32>
    %716 = math.tanh %715 : vector<1x32xf32>
    %717 = arith.mulf %711, %716 : vector<1x32xf32>
    %c1_306 = arith.constant 1 : index
    %c0_307 = arith.constant 0 : index
    %718 = vector.load %arg7[%c1_306, %c0_307] : memref<2x32xf32, #tpu.memory_space<vmem>>, vector<1x32xf32>
    tpu.vector_store %arg7[%c1_306, %c0_307], %717 {strides = array<i32>} : memref<2x32xf32, #tpu.memory_space<vmem>>, vector<1x32xf32>,
    %c0_308 = arith.constant 0 : index
    %c0_309 = arith.constant 0 : index
    %719 = vector.load %arg7[%c0_308, %c0_309] : memref<2x32xf32, #tpu.memory_space<vmem>>, vector<2x32xf32>
    %720 = vector.extract_strided_slice %719 {offsets = [0, 0], sizes = [1, 32], strides = [1, 1]} : vector<2x32xf32> to vector<1x32xf32>
    %c4_310 = arith.constant 4 : index
    %c0_311 = arith.constant 0 : index
    %721 = vector.load %arg8[%c4_310, %c0_311] : memref<16x32xf32, #tpu.memory_space<vmem>>, vector<1x32xf32>
    tpu.vector_store %arg8[%c4_310, %c0_311], %720 {strides = array<i32>} : memref<16x32xf32, #tpu.memory_space<vmem>>, vector<1x32xf32>,
    %722 = vector.extract_strided_slice %719 {offsets = [1, 0], sizes = [1, 32], strides = [1, 1]} : vector<2x32xf32> to vector<1x32xf32>
    %c12 = arith.constant 12 : index
    %c0_312 = arith.constant 0 : index
    %723 = vector.load %arg8[%c12, %c0_312] : memref<16x32xf32, #tpu.memory_space<vmem>>, vector<1x32xf32>
    tpu.vector_store %arg8[%c12, %c0_312], %722 {strides = array<i32>} : memref<16x32xf32, #tpu.memory_space<vmem>>, vector<1x32xf32>,
    %724 = arith.subf %584, %719 : vector<2x32xf32>
    %cst_313 = arith.constant 5.000000e-01 : f32
    %725 = vector.broadcast %cst_313 : f32 to vector<2x32xf32>
    %726 = arith.mulf %724, %725 : vector<2x32xf32>
    %727 = arith.addf %719, %726 : vector<2x32xf32>
    %c5 = arith.constant 5 : index
    %c0_314 = arith.constant 0 : index
    %c0_315 = arith.constant 0 : index
    %728 = vector.load %arg0[%c5, %c0_314, %c0_315] : memref<8x2x32xf32, #tpu.memory_space<vmem>>, vector<1x2x32xf32>
    %729 = vector.shape_cast %728 : vector<1x2x32xf32> to vector<2x32xf32>
    %c0_316 = arith.constant 0 : index
    %c0_317 = arith.constant 0 : index
    %c0_318 = arith.constant 0 : index
    %730 = vector.load %arg1[%c0_316, %c0_317, %c0_318] : memref<3x32x128xf32, #tpu.memory_space<vmem>>, vector<1x32x128xf32>
    %731 = vector.shape_cast %730 : vector<1x32x128xf32> to vector<32x128xf32>
    %c0_319 = arith.constant 0 : index
    %c0_320 = arith.constant 0 : index
    %c0_321 = arith.constant 0 : index
    %732 = vector.load %arg2[%c0_319, %c0_320, %c0_321] : memref<3x32x128xf32, #tpu.memory_space<vmem>>, vector<1x32x128xf32>
    %733 = vector.shape_cast %732 : vector<1x32x128xf32> to vector<32x128xf32>
    %c0_322 = arith.constant 0 : index
    %c0_323 = arith.constant 0 : index
    %c0_324 = arith.constant 0 : index
    %734 = vector.load %arg3[%c0_322, %c0_323, %c0_324] : memref<3x1x128xf32, #tpu.memory_space<vmem>>, vector<1x1x128xf32>
    %735 = vector.shape_cast %734 : vector<1x1x128xf32> to vector<1x128xf32>
    %cst_325 = arith.constant dense<0.000000e+00> : vector<2x128xf32>
    %736 = tpu.matmul %727, %731, %cst_325 {dimension_numbers = #tpu.dot_dimension_numbers<[1], [0], [0], [1], [0, 0, 1, 1], [], []>} : vector<2x32xf32>, vector<32x128xf32>, vector<2x128xf32> -> vector<2x128xf32>
    %737 = vector.broadcast %735 : vector<1x128xf32> to vector<2x128xf32>
    %738 = arith.addf %736, %737 : vector<2x128xf32>
    %739 = vector.extract_strided_slice %738 {offsets = [0, 0], sizes = [1, 128], strides = [1, 1]} : vector<2x128xf32> to vector<1x128xf32>
    %740 = math.tanh %739 : vector<1x128xf32>
    %741 = arith.negf %739 : vector<1x128xf32>
    %742 = math.exp %741 : vector<1x128xf32>
    %cst_326 = arith.constant 1.000000e+00 : f32
    %743 = vector.broadcast %cst_326 : f32 to vector<1x128xf32>
    %744 = arith.addf %743, %742 : vector<1x128xf32>
    %745 = arith.divf %743, %744 : vector<1x128xf32>
    %746 = arith.select %2, %740, %745 : vector<1x128xi1>, vector<1x128xf32>
    %747 = vector.extract_strided_slice %746 {offsets = [0, 0], sizes = [1, 32], strides = [1, 1]} : vector<1x128xf32> to vector<1x32xf32>
    %748 = vector.extract_strided_slice %746 {offsets = [0, 64], sizes = [1, 32], strides = [1, 1]} : vector<1x128xf32> to vector<1x32xf32>
    %749 = vector.extract_strided_slice %746 {offsets = [0, 96], sizes = [1, 32], strides = [1, 1]} : vector<1x128xf32> to vector<1x32xf32>
    %750 = arith.mulf %747, %749 : vector<1x32xf32>
    %751 = math.tanh %750 : vector<1x32xf32>
    %752 = arith.mulf %748, %751 : vector<1x32xf32>
    %c0_327 = arith.constant 0 : index
    %c0_328 = arith.constant 0 : index
    %753 = vector.load %arg7[%c0_327, %c0_328] : memref<2x32xf32, #tpu.memory_space<vmem>>, vector<1x32xf32>
    tpu.vector_store %arg7[%c0_327, %c0_328], %752 {strides = array<i32>} : memref<2x32xf32, #tpu.memory_space<vmem>>, vector<1x32xf32>,
    %754 = vector.extract_strided_slice %738 {offsets = [1, 0], sizes = [1, 128], strides = [1, 1]} : vector<2x128xf32> to vector<1x128xf32>
    %cst_329 = arith.constant dense<0.000000e+00> : vector<1x128xf32>
    %755 = tpu.matmul %752, %733, %cst_329 {dimension_numbers = #tpu.dot_dimension_numbers<[1], [0], [0], [1], [0, 0, 1, 1], [], []>} : vector<1x32xf32>, vector<32x128xf32>, vector<1x128xf32> -> vector<1x128xf32>
    %756 = arith.addf %754, %755 : vector<1x128xf32>
    %757 = math.tanh %756 : vector<1x128xf32>
    %758 = arith.negf %756 : vector<1x128xf32>
    %759 = math.exp %758 : vector<1x128xf32>
    %cst_330 = arith.constant 1.000000e+00 : f32
    %760 = vector.broadcast %cst_330 : f32 to vector<1x128xf32>
    %761 = arith.addf %760, %759 : vector<1x128xf32>
    %762 = arith.divf %760, %761 : vector<1x128xf32>
    %763 = arith.select %2, %757, %762 : vector<1x128xi1>, vector<1x128xf32>
    %764 = vector.extract_strided_slice %763 {offsets = [0, 0], sizes = [1, 32], strides = [1, 1]} : vector<1x128xf32> to vector<1x32xf32>
    %765 = vector.extract_strided_slice %763 {offsets = [0, 32], sizes = [1, 32], strides = [1, 1]} : vector<1x128xf32> to vector<1x32xf32>
    %766 = vector.extract_strided_slice %763 {offsets = [0, 64], sizes = [1, 32], strides = [1, 1]} : vector<1x128xf32> to vector<1x32xf32>
    %767 = vector.extract_strided_slice %763 {offsets = [0, 96], sizes = [1, 32], strides = [1, 1]} : vector<1x128xf32> to vector<1x32xf32>
    %768 = arith.mulf %765, %750 : vector<1x32xf32>
    %769 = arith.mulf %764, %767 : vector<1x32xf32>
    %770 = arith.addf %768, %769 : vector<1x32xf32>
    %771 = math.tanh %770 : vector<1x32xf32>
    %772 = arith.mulf %766, %771 : vector<1x32xf32>
    %c1_331 = arith.constant 1 : index
    %c0_332 = arith.constant 0 : index
    %773 = vector.load %arg7[%c1_331, %c0_332] : memref<2x32xf32, #tpu.memory_space<vmem>>, vector<1x32xf32>
    tpu.vector_store %arg7[%c1_331, %c0_332], %772 {strides = array<i32>} : memref<2x32xf32, #tpu.memory_space<vmem>>, vector<1x32xf32>,
    %c0_333 = arith.constant 0 : index
    %c0_334 = arith.constant 0 : index
    %774 = vector.load %arg7[%c0_333, %c0_334] : memref<2x32xf32, #tpu.memory_space<vmem>>, vector<2x32xf32>
    %c1_335 = arith.constant 1 : index
    %c0_336 = arith.constant 0 : index
    %c0_337 = arith.constant 0 : index
    %775 = vector.load %arg1[%c1_335, %c0_336, %c0_337] : memref<3x32x128xf32, #tpu.memory_space<vmem>>, vector<1x32x128xf32>
    %776 = vector.shape_cast %775 : vector<1x32x128xf32> to vector<32x128xf32>
    %c1_338 = arith.constant 1 : index
    %c0_339 = arith.constant 0 : index
    %c0_340 = arith.constant 0 : index
    %777 = vector.load %arg2[%c1_338, %c0_339, %c0_340] : memref<3x32x128xf32, #tpu.memory_space<vmem>>, vector<1x32x128xf32>
    %778 = vector.shape_cast %777 : vector<1x32x128xf32> to vector<32x128xf32>
    %c1_341 = arith.constant 1 : index
    %c0_342 = arith.constant 0 : index
    %c0_343 = arith.constant 0 : index
    %779 = vector.load %arg3[%c1_341, %c0_342, %c0_343] : memref<3x1x128xf32, #tpu.memory_space<vmem>>, vector<1x1x128xf32>
    %780 = vector.shape_cast %779 : vector<1x1x128xf32> to vector<1x128xf32>
    %cst_344 = arith.constant dense<0.000000e+00> : vector<2x128xf32>
    %781 = tpu.matmul %774, %776, %cst_344 {dimension_numbers = #tpu.dot_dimension_numbers<[1], [0], [0], [1], [0, 0, 1, 1], [], []>} : vector<2x32xf32>, vector<32x128xf32>, vector<2x128xf32> -> vector<2x128xf32>
    %782 = vector.broadcast %780 : vector<1x128xf32> to vector<2x128xf32>
    %783 = arith.addf %781, %782 : vector<2x128xf32>
    %784 = vector.extract_strided_slice %783 {offsets = [0, 0], sizes = [1, 128], strides = [1, 1]} : vector<2x128xf32> to vector<1x128xf32>
    %785 = math.tanh %784 : vector<1x128xf32>
    %786 = arith.negf %784 : vector<1x128xf32>
    %787 = math.exp %786 : vector<1x128xf32>
    %cst_345 = arith.constant 1.000000e+00 : f32
    %788 = vector.broadcast %cst_345 : f32 to vector<1x128xf32>
    %789 = arith.addf %788, %787 : vector<1x128xf32>
    %790 = arith.divf %788, %789 : vector<1x128xf32>
    %791 = arith.select %2, %785, %790 : vector<1x128xi1>, vector<1x128xf32>
    %792 = vector.extract_strided_slice %791 {offsets = [0, 0], sizes = [1, 32], strides = [1, 1]} : vector<1x128xf32> to vector<1x32xf32>
    %793 = vector.extract_strided_slice %791 {offsets = [0, 64], sizes = [1, 32], strides = [1, 1]} : vector<1x128xf32> to vector<1x32xf32>
    %794 = vector.extract_strided_slice %791 {offsets = [0, 96], sizes = [1, 32], strides = [1, 1]} : vector<1x128xf32> to vector<1x32xf32>
    %795 = arith.mulf %792, %794 : vector<1x32xf32>
    %796 = math.tanh %795 : vector<1x32xf32>
    %797 = arith.mulf %793, %796 : vector<1x32xf32>
    %c0_346 = arith.constant 0 : index
    %c0_347 = arith.constant 0 : index
    %798 = vector.load %arg7[%c0_346, %c0_347] : memref<2x32xf32, #tpu.memory_space<vmem>>, vector<1x32xf32>
    tpu.vector_store %arg7[%c0_346, %c0_347], %797 {strides = array<i32>} : memref<2x32xf32, #tpu.memory_space<vmem>>, vector<1x32xf32>,
    %799 = vector.extract_strided_slice %783 {offsets = [1, 0], sizes = [1, 128], strides = [1, 1]} : vector<2x128xf32> to vector<1x128xf32>
    %cst_348 = arith.constant dense<0.000000e+00> : vector<1x128xf32>
    %800 = tpu.matmul %797, %778, %cst_348 {dimension_numbers = #tpu.dot_dimension_numbers<[1], [0], [0], [1], [0, 0, 1, 1], [], []>} : vector<1x32xf32>, vector<32x128xf32>, vector<1x128xf32> -> vector<1x128xf32>
    %801 = arith.addf %799, %800 : vector<1x128xf32>
    %802 = math.tanh %801 : vector<1x128xf32>
    %803 = arith.negf %801 : vector<1x128xf32>
    %804 = math.exp %803 : vector<1x128xf32>
    %cst_349 = arith.constant 1.000000e+00 : f32
    %805 = vector.broadcast %cst_349 : f32 to vector<1x128xf32>
    %806 = arith.addf %805, %804 : vector<1x128xf32>
    %807 = arith.divf %805, %806 : vector<1x128xf32>
    %808 = arith.select %2, %802, %807 : vector<1x128xi1>, vector<1x128xf32>
    %809 = vector.extract_strided_slice %808 {offsets = [0, 0], sizes = [1, 32], strides = [1, 1]} : vector<1x128xf32> to vector<1x32xf32>
    %810 = vector.extract_strided_slice %808 {offsets = [0, 32], sizes = [1, 32], strides = [1, 1]} : vector<1x128xf32> to vector<1x32xf32>
    %811 = vector.extract_strided_slice %808 {offsets = [0, 64], sizes = [1, 32], strides = [1, 1]} : vector<1x128xf32> to vector<1x32xf32>
    %812 = vector.extract_strided_slice %808 {offsets = [0, 96], sizes = [1, 32], strides = [1, 1]} : vector<1x128xf32> to vector<1x32xf32>
    %813 = arith.mulf %810, %795 : vector<1x32xf32>
    %814 = arith.mulf %809, %812 : vector<1x32xf32>
    %815 = arith.addf %813, %814 : vector<1x32xf32>
    %816 = math.tanh %815 : vector<1x32xf32>
    %817 = arith.mulf %811, %816 : vector<1x32xf32>
    %c1_350 = arith.constant 1 : index
    %c0_351 = arith.constant 0 : index
    %818 = vector.load %arg7[%c1_350, %c0_351] : memref<2x32xf32, #tpu.memory_space<vmem>>, vector<1x32xf32>
    tpu.vector_store %arg7[%c1_350, %c0_351], %817 {strides = array<i32>} : memref<2x32xf32, #tpu.memory_space<vmem>>, vector<1x32xf32>,
    %c0_352 = arith.constant 0 : index
    %c0_353 = arith.constant 0 : index
    %819 = vector.load %arg7[%c0_352, %c0_353] : memref<2x32xf32, #tpu.memory_space<vmem>>, vector<2x32xf32>
    %c2_354 = arith.constant 2 : index
    %c0_355 = arith.constant 0 : index
    %c0_356 = arith.constant 0 : index
    %820 = vector.load %arg1[%c2_354, %c0_355, %c0_356] : memref<3x32x128xf32, #tpu.memory_space<vmem>>, vector<1x32x128xf32>
    %821 = vector.shape_cast %820 : vector<1x32x128xf32> to vector<32x128xf32>
    %c2_357 = arith.constant 2 : index
    %c0_358 = arith.constant 0 : index
    %c0_359 = arith.constant 0 : index
    %822 = vector.load %arg2[%c2_357, %c0_358, %c0_359] : memref<3x32x128xf32, #tpu.memory_space<vmem>>, vector<1x32x128xf32>
    %823 = vector.shape_cast %822 : vector<1x32x128xf32> to vector<32x128xf32>
    %c2_360 = arith.constant 2 : index
    %c0_361 = arith.constant 0 : index
    %c0_362 = arith.constant 0 : index
    %824 = vector.load %arg3[%c2_360, %c0_361, %c0_362] : memref<3x1x128xf32, #tpu.memory_space<vmem>>, vector<1x1x128xf32>
    %825 = vector.shape_cast %824 : vector<1x1x128xf32> to vector<1x128xf32>
    %cst_363 = arith.constant dense<0.000000e+00> : vector<2x128xf32>
    %826 = tpu.matmul %819, %821, %cst_363 {dimension_numbers = #tpu.dot_dimension_numbers<[1], [0], [0], [1], [0, 0, 1, 1], [], []>} : vector<2x32xf32>, vector<32x128xf32>, vector<2x128xf32> -> vector<2x128xf32>
    %827 = vector.broadcast %825 : vector<1x128xf32> to vector<2x128xf32>
    %828 = arith.addf %826, %827 : vector<2x128xf32>
    %829 = vector.extract_strided_slice %828 {offsets = [0, 0], sizes = [1, 128], strides = [1, 1]} : vector<2x128xf32> to vector<1x128xf32>
    %830 = math.tanh %829 : vector<1x128xf32>
    %831 = arith.negf %829 : vector<1x128xf32>
    %832 = math.exp %831 : vector<1x128xf32>
    %cst_364 = arith.constant 1.000000e+00 : f32
    %833 = vector.broadcast %cst_364 : f32 to vector<1x128xf32>
    %834 = arith.addf %833, %832 : vector<1x128xf32>
    %835 = arith.divf %833, %834 : vector<1x128xf32>
    %836 = arith.select %2, %830, %835 : vector<1x128xi1>, vector<1x128xf32>
    %837 = vector.extract_strided_slice %836 {offsets = [0, 0], sizes = [1, 32], strides = [1, 1]} : vector<1x128xf32> to vector<1x32xf32>
    %838 = vector.extract_strided_slice %836 {offsets = [0, 64], sizes = [1, 32], strides = [1, 1]} : vector<1x128xf32> to vector<1x32xf32>
    %839 = vector.extract_strided_slice %836 {offsets = [0, 96], sizes = [1, 32], strides = [1, 1]} : vector<1x128xf32> to vector<1x32xf32>
    %840 = arith.mulf %837, %839 : vector<1x32xf32>
    %841 = math.tanh %840 : vector<1x32xf32>
    %842 = arith.mulf %838, %841 : vector<1x32xf32>
    %c0_365 = arith.constant 0 : index
    %c0_366 = arith.constant 0 : index
    %843 = vector.load %arg7[%c0_365, %c0_366] : memref<2x32xf32, #tpu.memory_space<vmem>>, vector<1x32xf32>
    tpu.vector_store %arg7[%c0_365, %c0_366], %842 {strides = array<i32>} : memref<2x32xf32, #tpu.memory_space<vmem>>, vector<1x32xf32>,
    %844 = vector.extract_strided_slice %828 {offsets = [1, 0], sizes = [1, 128], strides = [1, 1]} : vector<2x128xf32> to vector<1x128xf32>
    %cst_367 = arith.constant dense<0.000000e+00> : vector<1x128xf32>
    %845 = tpu.matmul %842, %823, %cst_367 {dimension_numbers = #tpu.dot_dimension_numbers<[1], [0], [0], [1], [0, 0, 1, 1], [], []>} : vector<1x32xf32>, vector<32x128xf32>, vector<1x128xf32> -> vector<1x128xf32>
    %846 = arith.addf %844, %845 : vector<1x128xf32>
    %847 = math.tanh %846 : vector<1x128xf32>
    %848 = arith.negf %846 : vector<1x128xf32>
    %849 = math.exp %848 : vector<1x128xf32>
    %cst_368 = arith.constant 1.000000e+00 : f32
    %850 = vector.broadcast %cst_368 : f32 to vector<1x128xf32>
    %851 = arith.addf %850, %849 : vector<1x128xf32>
    %852 = arith.divf %850, %851 : vector<1x128xf32>
    %853 = arith.select %2, %847, %852 : vector<1x128xi1>, vector<1x128xf32>
    %854 = vector.extract_strided_slice %853 {offsets = [0, 0], sizes = [1, 32], strides = [1, 1]} : vector<1x128xf32> to vector<1x32xf32>
    %855 = vector.extract_strided_slice %853 {offsets = [0, 32], sizes = [1, 32], strides = [1, 1]} : vector<1x128xf32> to vector<1x32xf32>
    %856 = vector.extract_strided_slice %853 {offsets = [0, 64], sizes = [1, 32], strides = [1, 1]} : vector<1x128xf32> to vector<1x32xf32>
    %857 = vector.extract_strided_slice %853 {offsets = [0, 96], sizes = [1, 32], strides = [1, 1]} : vector<1x128xf32> to vector<1x32xf32>
    %858 = arith.mulf %855, %840 : vector<1x32xf32>
    %859 = arith.mulf %854, %857 : vector<1x32xf32>
    %860 = arith.addf %858, %859 : vector<1x32xf32>
    %861 = math.tanh %860 : vector<1x32xf32>
    %862 = arith.mulf %856, %861 : vector<1x32xf32>
    %c1_369 = arith.constant 1 : index
    %c0_370 = arith.constant 0 : index
    %863 = vector.load %arg7[%c1_369, %c0_370] : memref<2x32xf32, #tpu.memory_space<vmem>>, vector<1x32xf32>
    tpu.vector_store %arg7[%c1_369, %c0_370], %862 {strides = array<i32>} : memref<2x32xf32, #tpu.memory_space<vmem>>, vector<1x32xf32>,
    %c0_371 = arith.constant 0 : index
    %c0_372 = arith.constant 0 : index
    %864 = vector.load %arg7[%c0_371, %c0_372] : memref<2x32xf32, #tpu.memory_space<vmem>>, vector<2x32xf32>
    %865 = vector.extract_strided_slice %864 {offsets = [0, 0], sizes = [1, 32], strides = [1, 1]} : vector<2x32xf32> to vector<1x32xf32>
    %c5_373 = arith.constant 5 : index
    %c0_374 = arith.constant 0 : index
    %866 = vector.load %arg8[%c5_373, %c0_374] : memref<16x32xf32, #tpu.memory_space<vmem>>, vector<1x32xf32>
    tpu.vector_store %arg8[%c5_373, %c0_374], %865 {strides = array<i32>} : memref<16x32xf32, #tpu.memory_space<vmem>>, vector<1x32xf32>,
    %867 = vector.extract_strided_slice %864 {offsets = [1, 0], sizes = [1, 32], strides = [1, 1]} : vector<2x32xf32> to vector<1x32xf32>
    %c13 = arith.constant 13 : index
    %c0_375 = arith.constant 0 : index
    %868 = vector.load %arg8[%c13, %c0_375] : memref<16x32xf32, #tpu.memory_space<vmem>>, vector<1x32xf32>
    tpu.vector_store %arg8[%c13, %c0_375], %867 {strides = array<i32>} : memref<16x32xf32, #tpu.memory_space<vmem>>, vector<1x32xf32>,
    %869 = arith.subf %729, %864 : vector<2x32xf32>
    %cst_376 = arith.constant 5.000000e-01 : f32
    %870 = vector.broadcast %cst_376 : f32 to vector<2x32xf32>
    %871 = arith.mulf %869, %870 : vector<2x32xf32>
    %872 = arith.addf %864, %871 : vector<2x32xf32>
    %c6 = arith.constant 6 : index
    %c0_377 = arith.constant 0 : index
    %c0_378 = arith.constant 0 : index
    %873 = vector.load %arg0[%c6, %c0_377, %c0_378] : memref<8x2x32xf32, #tpu.memory_space<vmem>>, vector<1x2x32xf32>
    %874 = vector.shape_cast %873 : vector<1x2x32xf32> to vector<2x32xf32>
    %c0_379 = arith.constant 0 : index
    %c0_380 = arith.constant 0 : index
    %c0_381 = arith.constant 0 : index
    %875 = vector.load %arg1[%c0_379, %c0_380, %c0_381] : memref<3x32x128xf32, #tpu.memory_space<vmem>>, vector<1x32x128xf32>
    %876 = vector.shape_cast %875 : vector<1x32x128xf32> to vector<32x128xf32>
    %c0_382 = arith.constant 0 : index
    %c0_383 = arith.constant 0 : index
    %c0_384 = arith.constant 0 : index
    %877 = vector.load %arg2[%c0_382, %c0_383, %c0_384] : memref<3x32x128xf32, #tpu.memory_space<vmem>>, vector<1x32x128xf32>
    %878 = vector.shape_cast %877 : vector<1x32x128xf32> to vector<32x128xf32>
    %c0_385 = arith.constant 0 : index
    %c0_386 = arith.constant 0 : index
    %c0_387 = arith.constant 0 : index
    %879 = vector.load %arg3[%c0_385, %c0_386, %c0_387] : memref<3x1x128xf32, #tpu.memory_space<vmem>>, vector<1x1x128xf32>
    %880 = vector.shape_cast %879 : vector<1x1x128xf32> to vector<1x128xf32>
    %cst_388 = arith.constant dense<0.000000e+00> : vector<2x128xf32>
    %881 = tpu.matmul %872, %876, %cst_388 {dimension_numbers = #tpu.dot_dimension_numbers<[1], [0], [0], [1], [0, 0, 1, 1], [], []>} : vector<2x32xf32>, vector<32x128xf32>, vector<2x128xf32> -> vector<2x128xf32>
    %882 = vector.broadcast %880 : vector<1x128xf32> to vector<2x128xf32>
    %883 = arith.addf %881, %882 : vector<2x128xf32>
    %884 = vector.extract_strided_slice %883 {offsets = [0, 0], sizes = [1, 128], strides = [1, 1]} : vector<2x128xf32> to vector<1x128xf32>
    %885 = math.tanh %884 : vector<1x128xf32>
    %886 = arith.negf %884 : vector<1x128xf32>
    %887 = math.exp %886 : vector<1x128xf32>
    %cst_389 = arith.constant 1.000000e+00 : f32
    %888 = vector.broadcast %cst_389 : f32 to vector<1x128xf32>
    %889 = arith.addf %888, %887 : vector<1x128xf32>
    %890 = arith.divf %888, %889 : vector<1x128xf32>
    %891 = arith.select %2, %885, %890 : vector<1x128xi1>, vector<1x128xf32>
    %892 = vector.extract_strided_slice %891 {offsets = [0, 0], sizes = [1, 32], strides = [1, 1]} : vector<1x128xf32> to vector<1x32xf32>
    %893 = vector.extract_strided_slice %891 {offsets = [0, 64], sizes = [1, 32], strides = [1, 1]} : vector<1x128xf32> to vector<1x32xf32>
    %894 = vector.extract_strided_slice %891 {offsets = [0, 96], sizes = [1, 32], strides = [1, 1]} : vector<1x128xf32> to vector<1x32xf32>
    %895 = arith.mulf %892, %894 : vector<1x32xf32>
    %896 = math.tanh %895 : vector<1x32xf32>
    %897 = arith.mulf %893, %896 : vector<1x32xf32>
    %c0_390 = arith.constant 0 : index
    %c0_391 = arith.constant 0 : index
    %898 = vector.load %arg7[%c0_390, %c0_391] : memref<2x32xf32, #tpu.memory_space<vmem>>, vector<1x32xf32>
    tpu.vector_store %arg7[%c0_390, %c0_391], %897 {strides = array<i32>} : memref<2x32xf32, #tpu.memory_space<vmem>>, vector<1x32xf32>,
    %899 = vector.extract_strided_slice %883 {offsets = [1, 0], sizes = [1, 128], strides = [1, 1]} : vector<2x128xf32> to vector<1x128xf32>
    %cst_392 = arith.constant dense<0.000000e+00> : vector<1x128xf32>
    %900 = tpu.matmul %897, %878, %cst_392 {dimension_numbers = #tpu.dot_dimension_numbers<[1], [0], [0], [1], [0, 0, 1, 1], [], []>} : vector<1x32xf32>, vector<32x128xf32>, vector<1x128xf32> -> vector<1x128xf32>
    %901 = arith.addf %899, %900 : vector<1x128xf32>
    %902 = math.tanh %901 : vector<1x128xf32>
    %903 = arith.negf %901 : vector<1x128xf32>
    %904 = math.exp %903 : vector<1x128xf32>
    %cst_393 = arith.constant 1.000000e+00 : f32
    %905 = vector.broadcast %cst_393 : f32 to vector<1x128xf32>
    %906 = arith.addf %905, %904 : vector<1x128xf32>
    %907 = arith.divf %905, %906 : vector<1x128xf32>
    %908 = arith.select %2, %902, %907 : vector<1x128xi1>, vector<1x128xf32>
    %909 = vector.extract_strided_slice %908 {offsets = [0, 0], sizes = [1, 32], strides = [1, 1]} : vector<1x128xf32> to vector<1x32xf32>
    %910 = vector.extract_strided_slice %908 {offsets = [0, 32], sizes = [1, 32], strides = [1, 1]} : vector<1x128xf32> to vector<1x32xf32>
    %911 = vector.extract_strided_slice %908 {offsets = [0, 64], sizes = [1, 32], strides = [1, 1]} : vector<1x128xf32> to vector<1x32xf32>
    %912 = vector.extract_strided_slice %908 {offsets = [0, 96], sizes = [1, 32], strides = [1, 1]} : vector<1x128xf32> to vector<1x32xf32>
    %913 = arith.mulf %910, %895 : vector<1x32xf32>
    %914 = arith.mulf %909, %912 : vector<1x32xf32>
    %915 = arith.addf %913, %914 : vector<1x32xf32>
    %916 = math.tanh %915 : vector<1x32xf32>
    %917 = arith.mulf %911, %916 : vector<1x32xf32>
    %c1_394 = arith.constant 1 : index
    %c0_395 = arith.constant 0 : index
    %918 = vector.load %arg7[%c1_394, %c0_395] : memref<2x32xf32, #tpu.memory_space<vmem>>, vector<1x32xf32>
    tpu.vector_store %arg7[%c1_394, %c0_395], %917 {strides = array<i32>} : memref<2x32xf32, #tpu.memory_space<vmem>>, vector<1x32xf32>,
    %c0_396 = arith.constant 0 : index
    %c0_397 = arith.constant 0 : index
    %919 = vector.load %arg7[%c0_396, %c0_397] : memref<2x32xf32, #tpu.memory_space<vmem>>, vector<2x32xf32>
    %c1_398 = arith.constant 1 : index
    %c0_399 = arith.constant 0 : index
    %c0_400 = arith.constant 0 : index
    %920 = vector.load %arg1[%c1_398, %c0_399, %c0_400] : memref<3x32x128xf32, #tpu.memory_space<vmem>>, vector<1x32x128xf32>
    %921 = vector.shape_cast %920 : vector<1x32x128xf32> to vector<32x128xf32>
    %c1_401 = arith.constant 1 : index
    %c0_402 = arith.constant 0 : index
    %c0_403 = arith.constant 0 : index
    %922 = vector.load %arg2[%c1_401, %c0_402, %c0_403] : memref<3x32x128xf32, #tpu.memory_space<vmem>>, vector<1x32x128xf32>
    %923 = vector.shape_cast %922 : vector<1x32x128xf32> to vector<32x128xf32>
    %c1_404 = arith.constant 1 : index
    %c0_405 = arith.constant 0 : index
    %c0_406 = arith.constant 0 : index
    %924 = vector.load %arg3[%c1_404, %c0_405, %c0_406] : memref<3x1x128xf32, #tpu.memory_space<vmem>>, vector<1x1x128xf32>
    %925 = vector.shape_cast %924 : vector<1x1x128xf32> to vector<1x128xf32>
    %cst_407 = arith.constant dense<0.000000e+00> : vector<2x128xf32>
    %926 = tpu.matmul %919, %921, %cst_407 {dimension_numbers = #tpu.dot_dimension_numbers<[1], [0], [0], [1], [0, 0, 1, 1], [], []>} : vector<2x32xf32>, vector<32x128xf32>, vector<2x128xf32> -> vector<2x128xf32>
    %927 = vector.broadcast %925 : vector<1x128xf32> to vector<2x128xf32>
    %928 = arith.addf %926, %927 : vector<2x128xf32>
    %929 = vector.extract_strided_slice %928 {offsets = [0, 0], sizes = [1, 128], strides = [1, 1]} : vector<2x128xf32> to vector<1x128xf32>
    %930 = math.tanh %929 : vector<1x128xf32>
    %931 = arith.negf %929 : vector<1x128xf32>
    %932 = math.exp %931 : vector<1x128xf32>
    %cst_408 = arith.constant 1.000000e+00 : f32
    %933 = vector.broadcast %cst_408 : f32 to vector<1x128xf32>
    %934 = arith.addf %933, %932 : vector<1x128xf32>
    %935 = arith.divf %933, %934 : vector<1x128xf32>
    %936 = arith.select %2, %930, %935 : vector<1x128xi1>, vector<1x128xf32>
    %937 = vector.extract_strided_slice %936 {offsets = [0, 0], sizes = [1, 32], strides = [1, 1]} : vector<1x128xf32> to vector<1x32xf32>
    %938 = vector.extract_strided_slice %936 {offsets = [0, 64], sizes = [1, 32], strides = [1, 1]} : vector<1x128xf32> to vector<1x32xf32>
    %939 = vector.extract_strided_slice %936 {offsets = [0, 96], sizes = [1, 32], strides = [1, 1]} : vector<1x128xf32> to vector<1x32xf32>
    %940 = arith.mulf %937, %939 : vector<1x32xf32>
    %941 = math.tanh %940 : vector<1x32xf32>
    %942 = arith.mulf %938, %941 : vector<1x32xf32>
    %c0_409 = arith.constant 0 : index
    %c0_410 = arith.constant 0 : index
    %943 = vector.load %arg7[%c0_409, %c0_410] : memref<2x32xf32, #tpu.memory_space<vmem>>, vector<1x32xf32>
    tpu.vector_store %arg7[%c0_409, %c0_410], %942 {strides = array<i32>} : memref<2x32xf32, #tpu.memory_space<vmem>>, vector<1x32xf32>,
    %944 = vector.extract_strided_slice %928 {offsets = [1, 0], sizes = [1, 128], strides = [1, 1]} : vector<2x128xf32> to vector<1x128xf32>
    %cst_411 = arith.constant dense<0.000000e+00> : vector<1x128xf32>
    %945 = tpu.matmul %942, %923, %cst_411 {dimension_numbers = #tpu.dot_dimension_numbers<[1], [0], [0], [1], [0, 0, 1, 1], [], []>} : vector<1x32xf32>, vector<32x128xf32>, vector<1x128xf32> -> vector<1x128xf32>
    %946 = arith.addf %944, %945 : vector<1x128xf32>
    %947 = math.tanh %946 : vector<1x128xf32>
    %948 = arith.negf %946 : vector<1x128xf32>
    %949 = math.exp %948 : vector<1x128xf32>
    %cst_412 = arith.constant 1.000000e+00 : f32
    %950 = vector.broadcast %cst_412 : f32 to vector<1x128xf32>
    %951 = arith.addf %950, %949 : vector<1x128xf32>
    %952 = arith.divf %950, %951 : vector<1x128xf32>
    %953 = arith.select %2, %947, %952 : vector<1x128xi1>, vector<1x128xf32>
    %954 = vector.extract_strided_slice %953 {offsets = [0, 0], sizes = [1, 32], strides = [1, 1]} : vector<1x128xf32> to vector<1x32xf32>
    %955 = vector.extract_strided_slice %953 {offsets = [0, 32], sizes = [1, 32], strides = [1, 1]} : vector<1x128xf32> to vector<1x32xf32>
    %956 = vector.extract_strided_slice %953 {offsets = [0, 64], sizes = [1, 32], strides = [1, 1]} : vector<1x128xf32> to vector<1x32xf32>
    %957 = vector.extract_strided_slice %953 {offsets = [0, 96], sizes = [1, 32], strides = [1, 1]} : vector<1x128xf32> to vector<1x32xf32>
    %958 = arith.mulf %955, %940 : vector<1x32xf32>
    %959 = arith.mulf %954, %957 : vector<1x32xf32>
    %960 = arith.addf %958, %959 : vector<1x32xf32>
    %961 = math.tanh %960 : vector<1x32xf32>
    %962 = arith.mulf %956, %961 : vector<1x32xf32>
    %c1_413 = arith.constant 1 : index
    %c0_414 = arith.constant 0 : index
    %963 = vector.load %arg7[%c1_413, %c0_414] : memref<2x32xf32, #tpu.memory_space<vmem>>, vector<1x32xf32>
    tpu.vector_store %arg7[%c1_413, %c0_414], %962 {strides = array<i32>} : memref<2x32xf32, #tpu.memory_space<vmem>>, vector<1x32xf32>,
    %c0_415 = arith.constant 0 : index
    %c0_416 = arith.constant 0 : index
    %964 = vector.load %arg7[%c0_415, %c0_416] : memref<2x32xf32, #tpu.memory_space<vmem>>, vector<2x32xf32>
    %c2_417 = arith.constant 2 : index
    %c0_418 = arith.constant 0 : index
    %c0_419 = arith.constant 0 : index
    %965 = vector.load %arg1[%c2_417, %c0_418, %c0_419] : memref<3x32x128xf32, #tpu.memory_space<vmem>>, vector<1x32x128xf32>
    %966 = vector.shape_cast %965 : vector<1x32x128xf32> to vector<32x128xf32>
    %c2_420 = arith.constant 2 : index
    %c0_421 = arith.constant 0 : index
    %c0_422 = arith.constant 0 : index
    %967 = vector.load %arg2[%c2_420, %c0_421, %c0_422] : memref<3x32x128xf32, #tpu.memory_space<vmem>>, vector<1x32x128xf32>
    %968 = vector.shape_cast %967 : vector<1x32x128xf32> to vector<32x128xf32>
    %c2_423 = arith.constant 2 : index
    %c0_424 = arith.constant 0 : index
    %c0_425 = arith.constant 0 : index
    %969 = vector.load %arg3[%c2_423, %c0_424, %c0_425] : memref<3x1x128xf32, #tpu.memory_space<vmem>>, vector<1x1x128xf32>
    %970 = vector.shape_cast %969 : vector<1x1x128xf32> to vector<1x128xf32>
    %cst_426 = arith.constant dense<0.000000e+00> : vector<2x128xf32>
    %971 = tpu.matmul %964, %966, %cst_426 {dimension_numbers = #tpu.dot_dimension_numbers<[1], [0], [0], [1], [0, 0, 1, 1], [], []>} : vector<2x32xf32>, vector<32x128xf32>, vector<2x128xf32> -> vector<2x128xf32>
    %972 = vector.broadcast %970 : vector<1x128xf32> to vector<2x128xf32>
    %973 = arith.addf %971, %972 : vector<2x128xf32>
    %974 = vector.extract_strided_slice %973 {offsets = [0, 0], sizes = [1, 128], strides = [1, 1]} : vector<2x128xf32> to vector<1x128xf32>
    %975 = math.tanh %974 : vector<1x128xf32>
    %976 = arith.negf %974 : vector<1x128xf32>
    %977 = math.exp %976 : vector<1x128xf32>
    %cst_427 = arith.constant 1.000000e+00 : f32
    %978 = vector.broadcast %cst_427 : f32 to vector<1x128xf32>
    %979 = arith.addf %978, %977 : vector<1x128xf32>
    %980 = arith.divf %978, %979 : vector<1x128xf32>
    %981 = arith.select %2, %975, %980 : vector<1x128xi1>, vector<1x128xf32>
    %982 = vector.extract_strided_slice %981 {offsets = [0, 0], sizes = [1, 32], strides = [1, 1]} : vector<1x128xf32> to vector<1x32xf32>
    %983 = vector.extract_strided_slice %981 {offsets = [0, 64], sizes = [1, 32], strides = [1, 1]} : vector<1x128xf32> to vector<1x32xf32>
    %984 = vector.extract_strided_slice %981 {offsets = [0, 96], sizes = [1, 32], strides = [1, 1]} : vector<1x128xf32> to vector<1x32xf32>
    %985 = arith.mulf %982, %984 : vector<1x32xf32>
    %986 = math.tanh %985 : vector<1x32xf32>
    %987 = arith.mulf %983, %986 : vector<1x32xf32>
    %c0_428 = arith.constant 0 : index
    %c0_429 = arith.constant 0 : index
    %988 = vector.load %arg7[%c0_428, %c0_429] : memref<2x32xf32, #tpu.memory_space<vmem>>, vector<1x32xf32>
    tpu.vector_store %arg7[%c0_428, %c0_429], %987 {strides = array<i32>} : memref<2x32xf32, #tpu.memory_space<vmem>>, vector<1x32xf32>,
    %989 = vector.extract_strided_slice %973 {offsets = [1, 0], sizes = [1, 128], strides = [1, 1]} : vector<2x128xf32> to vector<1x128xf32>
    %cst_430 = arith.constant dense<0.000000e+00> : vector<1x128xf32>
    %990 = tpu.matmul %987, %968, %cst_430 {dimension_numbers = #tpu.dot_dimension_numbers<[1], [0], [0], [1], [0, 0, 1, 1], [], []>} : vector<1x32xf32>, vector<32x128xf32>, vector<1x128xf32> -> vector<1x128xf32>
    %991 = arith.addf %989, %990 : vector<1x128xf32>
    %992 = math.tanh %991 : vector<1x128xf32>
    %993 = arith.negf %991 : vector<1x128xf32>
    %994 = math.exp %993 : vector<1x128xf32>
    %cst_431 = arith.constant 1.000000e+00 : f32
    %995 = vector.broadcast %cst_431 : f32 to vector<1x128xf32>
    %996 = arith.addf %995, %994 : vector<1x128xf32>
    %997 = arith.divf %995, %996 : vector<1x128xf32>
    %998 = arith.select %2, %992, %997 : vector<1x128xi1>, vector<1x128xf32>
    %999 = vector.extract_strided_slice %998 {offsets = [0, 0], sizes = [1, 32], strides = [1, 1]} : vector<1x128xf32> to vector<1x32xf32>
    %1000 = vector.extract_strided_slice %998 {offsets = [0, 32], sizes = [1, 32], strides = [1, 1]} : vector<1x128xf32> to vector<1x32xf32>
    %1001 = vector.extract_strided_slice %998 {offsets = [0, 64], sizes = [1, 32], strides = [1, 1]} : vector<1x128xf32> to vector<1x32xf32>
    %1002 = vector.extract_strided_slice %998 {offsets = [0, 96], sizes = [1, 32], strides = [1, 1]} : vector<1x128xf32> to vector<1x32xf32>
    %1003 = arith.mulf %1000, %985 : vector<1x32xf32>
    %1004 = arith.mulf %999, %1002 : vector<1x32xf32>
    %1005 = arith.addf %1003, %1004 : vector<1x32xf32>
    %1006 = math.tanh %1005 : vector<1x32xf32>
    %1007 = arith.mulf %1001, %1006 : vector<1x32xf32>
    %c1_432 = arith.constant 1 : index
    %c0_433 = arith.constant 0 : index
    %1008 = vector.load %arg7[%c1_432, %c0_433] : memref<2x32xf32, #tpu.memory_space<vmem>>, vector<1x32xf32>
    tpu.vector_store %arg7[%c1_432, %c0_433], %1007 {strides = array<i32>} : memref<2x32xf32, #tpu.memory_space<vmem>>, vector<1x32xf32>,
    %c0_434 = arith.constant 0 : index
    %c0_435 = arith.constant 0 : index
    %1009 = vector.load %arg7[%c0_434, %c0_435] : memref<2x32xf32, #tpu.memory_space<vmem>>, vector<2x32xf32>
    %1010 = vector.extract_strided_slice %1009 {offsets = [0, 0], sizes = [1, 32], strides = [1, 1]} : vector<2x32xf32> to vector<1x32xf32>
    %c6_436 = arith.constant 6 : index
    %c0_437 = arith.constant 0 : index
    %1011 = vector.load %arg8[%c6_436, %c0_437] : memref<16x32xf32, #tpu.memory_space<vmem>>, vector<1x32xf32>
    tpu.vector_store %arg8[%c6_436, %c0_437], %1010 {strides = array<i32>} : memref<16x32xf32, #tpu.memory_space<vmem>>, vector<1x32xf32>,
    %1012 = vector.extract_strided_slice %1009 {offsets = [1, 0], sizes = [1, 32], strides = [1, 1]} : vector<2x32xf32> to vector<1x32xf32>
    %c14 = arith.constant 14 : index
    %c0_438 = arith.constant 0 : index
    %1013 = vector.load %arg8[%c14, %c0_438] : memref<16x32xf32, #tpu.memory_space<vmem>>, vector<1x32xf32>
    tpu.vector_store %arg8[%c14, %c0_438], %1012 {strides = array<i32>} : memref<16x32xf32, #tpu.memory_space<vmem>>, vector<1x32xf32>,
    %1014 = arith.subf %874, %1009 : vector<2x32xf32>
    %cst_439 = arith.constant 5.000000e-01 : f32
    %1015 = vector.broadcast %cst_439 : f32 to vector<2x32xf32>
    %1016 = arith.mulf %1014, %1015 : vector<2x32xf32>
    %1017 = arith.addf %1009, %1016 : vector<2x32xf32>
    %c0_440 = arith.constant 0 : index
    %c0_441 = arith.constant 0 : index
    %c0_442 = arith.constant 0 : index
    %1018 = vector.load %arg1[%c0_440, %c0_441, %c0_442] : memref<3x32x128xf32, #tpu.memory_space<vmem>>, vector<1x32x128xf32>
    %1019 = vector.shape_cast %1018 : vector<1x32x128xf32> to vector<32x128xf32>
    %c0_443 = arith.constant 0 : index
    %c0_444 = arith.constant 0 : index
    %c0_445 = arith.constant 0 : index
    %1020 = vector.load %arg2[%c0_443, %c0_444, %c0_445] : memref<3x32x128xf32, #tpu.memory_space<vmem>>, vector<1x32x128xf32>
    %1021 = vector.shape_cast %1020 : vector<1x32x128xf32> to vector<32x128xf32>
    %c0_446 = arith.constant 0 : index
    %c0_447 = arith.constant 0 : index
    %c0_448 = arith.constant 0 : index
    %1022 = vector.load %arg3[%c0_446, %c0_447, %c0_448] : memref<3x1x128xf32, #tpu.memory_space<vmem>>, vector<1x1x128xf32>
    %1023 = vector.shape_cast %1022 : vector<1x1x128xf32> to vector<1x128xf32>
    %cst_449 = arith.constant dense<0.000000e+00> : vector<2x128xf32>
    %1024 = tpu.matmul %1017, %1019, %cst_449 {dimension_numbers = #tpu.dot_dimension_numbers<[1], [0], [0], [1], [0, 0, 1, 1], [], []>} : vector<2x32xf32>, vector<32x128xf32>, vector<2x128xf32> -> vector<2x128xf32>
    %1025 = vector.broadcast %1023 : vector<1x128xf32> to vector<2x128xf32>
    %1026 = arith.addf %1024, %1025 : vector<2x128xf32>
    %1027 = vector.extract_strided_slice %1026 {offsets = [0, 0], sizes = [1, 128], strides = [1, 1]} : vector<2x128xf32> to vector<1x128xf32>
    %1028 = math.tanh %1027 : vector<1x128xf32>
    %1029 = arith.negf %1027 : vector<1x128xf32>
    %1030 = math.exp %1029 : vector<1x128xf32>
    %cst_450 = arith.constant 1.000000e+00 : f32
    %1031 = vector.broadcast %cst_450 : f32 to vector<1x128xf32>
    %1032 = arith.addf %1031, %1030 : vector<1x128xf32>
    %1033 = arith.divf %1031, %1032 : vector<1x128xf32>
    %1034 = arith.select %2, %1028, %1033 : vector<1x128xi1>, vector<1x128xf32>
    %1035 = vector.extract_strided_slice %1034 {offsets = [0, 0], sizes = [1, 32], strides = [1, 1]} : vector<1x128xf32> to vector<1x32xf32>
    %1036 = vector.extract_strided_slice %1034 {offsets = [0, 64], sizes = [1, 32], strides = [1, 1]} : vector<1x128xf32> to vector<1x32xf32>
    %1037 = vector.extract_strided_slice %1034 {offsets = [0, 96], sizes = [1, 32], strides = [1, 1]} : vector<1x128xf32> to vector<1x32xf32>
    %1038 = arith.mulf %1035, %1037 : vector<1x32xf32>
    %1039 = math.tanh %1038 : vector<1x32xf32>
    %1040 = arith.mulf %1036, %1039 : vector<1x32xf32>
    %c0_451 = arith.constant 0 : index
    %c0_452 = arith.constant 0 : index
    %1041 = vector.load %arg7[%c0_451, %c0_452] : memref<2x32xf32, #tpu.memory_space<vmem>>, vector<1x32xf32>
    tpu.vector_store %arg7[%c0_451, %c0_452], %1040 {strides = array<i32>} : memref<2x32xf32, #tpu.memory_space<vmem>>, vector<1x32xf32>,
    %1042 = vector.extract_strided_slice %1026 {offsets = [1, 0], sizes = [1, 128], strides = [1, 1]} : vector<2x128xf32> to vector<1x128xf32>
    %cst_453 = arith.constant dense<0.000000e+00> : vector<1x128xf32>
    %1043 = tpu.matmul %1040, %1021, %cst_453 {dimension_numbers = #tpu.dot_dimension_numbers<[1], [0], [0], [1], [0, 0, 1, 1], [], []>} : vector<1x32xf32>, vector<32x128xf32>, vector<1x128xf32> -> vector<1x128xf32>
    %1044 = arith.addf %1042, %1043 : vector<1x128xf32>
    %1045 = math.tanh %1044 : vector<1x128xf32>
    %1046 = arith.negf %1044 : vector<1x128xf32>
    %1047 = math.exp %1046 : vector<1x128xf32>
    %cst_454 = arith.constant 1.000000e+00 : f32
    %1048 = vector.broadcast %cst_454 : f32 to vector<1x128xf32>
    %1049 = arith.addf %1048, %1047 : vector<1x128xf32>
    %1050 = arith.divf %1048, %1049 : vector<1x128xf32>
    %1051 = arith.select %2, %1045, %1050 : vector<1x128xi1>, vector<1x128xf32>
    %1052 = vector.extract_strided_slice %1051 {offsets = [0, 0], sizes = [1, 32], strides = [1, 1]} : vector<1x128xf32> to vector<1x32xf32>
    %1053 = vector.extract_strided_slice %1051 {offsets = [0, 32], sizes = [1, 32], strides = [1, 1]} : vector<1x128xf32> to vector<1x32xf32>
    %1054 = vector.extract_strided_slice %1051 {offsets = [0, 64], sizes = [1, 32], strides = [1, 1]} : vector<1x128xf32> to vector<1x32xf32>
    %1055 = vector.extract_strided_slice %1051 {offsets = [0, 96], sizes = [1, 32], strides = [1, 1]} : vector<1x128xf32> to vector<1x32xf32>
    %1056 = arith.mulf %1053, %1038 : vector<1x32xf32>
    %1057 = arith.mulf %1052, %1055 : vector<1x32xf32>
    %1058 = arith.addf %1056, %1057 : vector<1x32xf32>
    %1059 = math.tanh %1058 : vector<1x32xf32>
    %1060 = arith.mulf %1054, %1059 : vector<1x32xf32>
    %c1_455 = arith.constant 1 : index
    %c0_456 = arith.constant 0 : index
    %1061 = vector.load %arg7[%c1_455, %c0_456] : memref<2x32xf32, #tpu.memory_space<vmem>>, vector<1x32xf32>
    tpu.vector_store %arg7[%c1_455, %c0_456], %1060 {strides = array<i32>} : memref<2x32xf32, #tpu.memory_space<vmem>>, vector<1x32xf32>,
    %c0_457 = arith.constant 0 : index
    %c0_458 = arith.constant 0 : index
    %1062 = vector.load %arg7[%c0_457, %c0_458] : memref<2x32xf32, #tpu.memory_space<vmem>>, vector<2x32xf32>
    %c1_459 = arith.constant 1 : index
    %c0_460 = arith.constant 0 : index
    %c0_461 = arith.constant 0 : index
    %1063 = vector.load %arg1[%c1_459, %c0_460, %c0_461] : memref<3x32x128xf32, #tpu.memory_space<vmem>>, vector<1x32x128xf32>
    %1064 = vector.shape_cast %1063 : vector<1x32x128xf32> to vector<32x128xf32>
    %c1_462 = arith.constant 1 : index
    %c0_463 = arith.constant 0 : index
    %c0_464 = arith.constant 0 : index
    %1065 = vector.load %arg2[%c1_462, %c0_463, %c0_464] : memref<3x32x128xf32, #tpu.memory_space<vmem>>, vector<1x32x128xf32>
    %1066 = vector.shape_cast %1065 : vector<1x32x128xf32> to vector<32x128xf32>
    %c1_465 = arith.constant 1 : index
    %c0_466 = arith.constant 0 : index
    %c0_467 = arith.constant 0 : index
    %1067 = vector.load %arg3[%c1_465, %c0_466, %c0_467] : memref<3x1x128xf32, #tpu.memory_space<vmem>>, vector<1x1x128xf32>
    %1068 = vector.shape_cast %1067 : vector<1x1x128xf32> to vector<1x128xf32>
    %cst_468 = arith.constant dense<0.000000e+00> : vector<2x128xf32>
    %1069 = tpu.matmul %1062, %1064, %cst_468 {dimension_numbers = #tpu.dot_dimension_numbers<[1], [0], [0], [1], [0, 0, 1, 1], [], []>} : vector<2x32xf32>, vector<32x128xf32>, vector<2x128xf32> -> vector<2x128xf32>
    %1070 = vector.broadcast %1068 : vector<1x128xf32> to vector<2x128xf32>
    %1071 = arith.addf %1069, %1070 : vector<2x128xf32>
    %1072 = vector.extract_strided_slice %1071 {offsets = [0, 0], sizes = [1, 128], strides = [1, 1]} : vector<2x128xf32> to vector<1x128xf32>
    %1073 = math.tanh %1072 : vector<1x128xf32>
    %1074 = arith.negf %1072 : vector<1x128xf32>
    %1075 = math.exp %1074 : vector<1x128xf32>
    %cst_469 = arith.constant 1.000000e+00 : f32
    %1076 = vector.broadcast %cst_469 : f32 to vector<1x128xf32>
    %1077 = arith.addf %1076, %1075 : vector<1x128xf32>
    %1078 = arith.divf %1076, %1077 : vector<1x128xf32>
    %1079 = arith.select %2, %1073, %1078 : vector<1x128xi1>, vector<1x128xf32>
    %1080 = vector.extract_strided_slice %1079 {offsets = [0, 0], sizes = [1, 32], strides = [1, 1]} : vector<1x128xf32> to vector<1x32xf32>
    %1081 = vector.extract_strided_slice %1079 {offsets = [0, 64], sizes = [1, 32], strides = [1, 1]} : vector<1x128xf32> to vector<1x32xf32>
    %1082 = vector.extract_strided_slice %1079 {offsets = [0, 96], sizes = [1, 32], strides = [1, 1]} : vector<1x128xf32> to vector<1x32xf32>
    %1083 = arith.mulf %1080, %1082 : vector<1x32xf32>
    %1084 = math.tanh %1083 : vector<1x32xf32>
    %1085 = arith.mulf %1081, %1084 : vector<1x32xf32>
    %c0_470 = arith.constant 0 : index
    %c0_471 = arith.constant 0 : index
    %1086 = vector.load %arg7[%c0_470, %c0_471] : memref<2x32xf32, #tpu.memory_space<vmem>>, vector<1x32xf32>
    tpu.vector_store %arg7[%c0_470, %c0_471], %1085 {strides = array<i32>} : memref<2x32xf32, #tpu.memory_space<vmem>>, vector<1x32xf32>,
    %1087 = vector.extract_strided_slice %1071 {offsets = [1, 0], sizes = [1, 128], strides = [1, 1]} : vector<2x128xf32> to vector<1x128xf32>
    %cst_472 = arith.constant dense<0.000000e+00> : vector<1x128xf32>
    %1088 = tpu.matmul %1085, %1066, %cst_472 {dimension_numbers = #tpu.dot_dimension_numbers<[1], [0], [0], [1], [0, 0, 1, 1], [], []>} : vector<1x32xf32>, vector<32x128xf32>, vector<1x128xf32> -> vector<1x128xf32>
    %1089 = arith.addf %1087, %1088 : vector<1x128xf32>
    %1090 = math.tanh %1089 : vector<1x128xf32>
    %1091 = arith.negf %1089 : vector<1x128xf32>
    %1092 = math.exp %1091 : vector<1x128xf32>
    %cst_473 = arith.constant 1.000000e+00 : f32
    %1093 = vector.broadcast %cst_473 : f32 to vector<1x128xf32>
    %1094 = arith.addf %1093, %1092 : vector<1x128xf32>
    %1095 = arith.divf %1093, %1094 : vector<1x128xf32>
    %1096 = arith.select %2, %1090, %1095 : vector<1x128xi1>, vector<1x128xf32>
    %1097 = vector.extract_strided_slice %1096 {offsets = [0, 0], sizes = [1, 32], strides = [1, 1]} : vector<1x128xf32> to vector<1x32xf32>
    %1098 = vector.extract_strided_slice %1096 {offsets = [0, 32], sizes = [1, 32], strides = [1, 1]} : vector<1x128xf32> to vector<1x32xf32>
    %1099 = vector.extract_strided_slice %1096 {offsets = [0, 64], sizes = [1, 32], strides = [1, 1]} : vector<1x128xf32> to vector<1x32xf32>
    %1100 = vector.extract_strided_slice %1096 {offsets = [0, 96], sizes = [1, 32], strides = [1, 1]} : vector<1x128xf32> to vector<1x32xf32>
    %1101 = arith.mulf %1098, %1083 : vector<1x32xf32>
    %1102 = arith.mulf %1097, %1100 : vector<1x32xf32>
    %1103 = arith.addf %1101, %1102 : vector<1x32xf32>
    %1104 = math.tanh %1103 : vector<1x32xf32>
    %1105 = arith.mulf %1099, %1104 : vector<1x32xf32>
    %c1_474 = arith.constant 1 : index
    %c0_475 = arith.constant 0 : index
    %1106 = vector.load %arg7[%c1_474, %c0_475] : memref<2x32xf32, #tpu.memory_space<vmem>>, vector<1x32xf32>
    tpu.vector_store %arg7[%c1_474, %c0_475], %1105 {strides = array<i32>} : memref<2x32xf32, #tpu.memory_space<vmem>>, vector<1x32xf32>,
    %c0_476 = arith.constant 0 : index
    %c0_477 = arith.constant 0 : index
    %1107 = vector.load %arg7[%c0_476, %c0_477] : memref<2x32xf32, #tpu.memory_space<vmem>>, vector<2x32xf32>
    %c2_478 = arith.constant 2 : index
    %c0_479 = arith.constant 0 : index
    %c0_480 = arith.constant 0 : index
    %1108 = vector.load %arg1[%c2_478, %c0_479, %c0_480] : memref<3x32x128xf32, #tpu.memory_space<vmem>>, vector<1x32x128xf32>
    %1109 = vector.shape_cast %1108 : vector<1x32x128xf32> to vector<32x128xf32>
    %c2_481 = arith.constant 2 : index
    %c0_482 = arith.constant 0 : index
    %c0_483 = arith.constant 0 : index
    %1110 = vector.load %arg2[%c2_481, %c0_482, %c0_483] : memref<3x32x128xf32, #tpu.memory_space<vmem>>, vector<1x32x128xf32>
    %1111 = vector.shape_cast %1110 : vector<1x32x128xf32> to vector<32x128xf32>
    %c2_484 = arith.constant 2 : index
    %c0_485 = arith.constant 0 : index
    %c0_486 = arith.constant 0 : index
    %1112 = vector.load %arg3[%c2_484, %c0_485, %c0_486] : memref<3x1x128xf32, #tpu.memory_space<vmem>>, vector<1x1x128xf32>
    %1113 = vector.shape_cast %1112 : vector<1x1x128xf32> to vector<1x128xf32>
    %cst_487 = arith.constant dense<0.000000e+00> : vector<2x128xf32>
    %1114 = tpu.matmul %1107, %1109, %cst_487 {dimension_numbers = #tpu.dot_dimension_numbers<[1], [0], [0], [1], [0, 0, 1, 1], [], []>} : vector<2x32xf32>, vector<32x128xf32>, vector<2x128xf32> -> vector<2x128xf32>
    %1115 = vector.broadcast %1113 : vector<1x128xf32> to vector<2x128xf32>
    %1116 = arith.addf %1114, %1115 : vector<2x128xf32>
    %1117 = vector.extract_strided_slice %1116 {offsets = [0, 0], sizes = [1, 128], strides = [1, 1]} : vector<2x128xf32> to vector<1x128xf32>
    %1118 = math.tanh %1117 : vector<1x128xf32>
    %1119 = arith.negf %1117 : vector<1x128xf32>
    %1120 = math.exp %1119 : vector<1x128xf32>
    %cst_488 = arith.constant 1.000000e+00 : f32
    %1121 = vector.broadcast %cst_488 : f32 to vector<1x128xf32>
    %1122 = arith.addf %1121, %1120 : vector<1x128xf32>
    %1123 = arith.divf %1121, %1122 : vector<1x128xf32>
    %1124 = arith.select %2, %1118, %1123 : vector<1x128xi1>, vector<1x128xf32>
    %1125 = vector.extract_strided_slice %1124 {offsets = [0, 0], sizes = [1, 32], strides = [1, 1]} : vector<1x128xf32> to vector<1x32xf32>
    %1126 = vector.extract_strided_slice %1124 {offsets = [0, 64], sizes = [1, 32], strides = [1, 1]} : vector<1x128xf32> to vector<1x32xf32>
    %1127 = vector.extract_strided_slice %1124 {offsets = [0, 96], sizes = [1, 32], strides = [1, 1]} : vector<1x128xf32> to vector<1x32xf32>
    %1128 = arith.mulf %1125, %1127 : vector<1x32xf32>
    %1129 = math.tanh %1128 : vector<1x32xf32>
    %1130 = arith.mulf %1126, %1129 : vector<1x32xf32>
    %c0_489 = arith.constant 0 : index
    %c0_490 = arith.constant 0 : index
    %1131 = vector.load %arg7[%c0_489, %c0_490] : memref<2x32xf32, #tpu.memory_space<vmem>>, vector<1x32xf32>
    tpu.vector_store %arg7[%c0_489, %c0_490], %1130 {strides = array<i32>} : memref<2x32xf32, #tpu.memory_space<vmem>>, vector<1x32xf32>,
    %1132 = vector.extract_strided_slice %1116 {offsets = [1, 0], sizes = [1, 128], strides = [1, 1]} : vector<2x128xf32> to vector<1x128xf32>
    %cst_491 = arith.constant dense<0.000000e+00> : vector<1x128xf32>
    %1133 = tpu.matmul %1130, %1111, %cst_491 {dimension_numbers = #tpu.dot_dimension_numbers<[1], [0], [0], [1], [0, 0, 1, 1], [], []>} : vector<1x32xf32>, vector<32x128xf32>, vector<1x128xf32> -> vector<1x128xf32>
    %1134 = arith.addf %1132, %1133 : vector<1x128xf32>
    %1135 = math.tanh %1134 : vector<1x128xf32>
    %1136 = arith.negf %1134 : vector<1x128xf32>
    %1137 = math.exp %1136 : vector<1x128xf32>
    %cst_492 = arith.constant 1.000000e+00 : f32
    %1138 = vector.broadcast %cst_492 : f32 to vector<1x128xf32>
    %1139 = arith.addf %1138, %1137 : vector<1x128xf32>
    %1140 = arith.divf %1138, %1139 : vector<1x128xf32>
    %1141 = arith.select %2, %1135, %1140 : vector<1x128xi1>, vector<1x128xf32>
    %1142 = vector.extract_strided_slice %1141 {offsets = [0, 0], sizes = [1, 32], strides = [1, 1]} : vector<1x128xf32> to vector<1x32xf32>
    %1143 = vector.extract_strided_slice %1141 {offsets = [0, 32], sizes = [1, 32], strides = [1, 1]} : vector<1x128xf32> to vector<1x32xf32>
    %1144 = vector.extract_strided_slice %1141 {offsets = [0, 64], sizes = [1, 32], strides = [1, 1]} : vector<1x128xf32> to vector<1x32xf32>
    %1145 = vector.extract_strided_slice %1141 {offsets = [0, 96], sizes = [1, 32], strides = [1, 1]} : vector<1x128xf32> to vector<1x32xf32>
    %1146 = arith.mulf %1143, %1128 : vector<1x32xf32>
    %1147 = arith.mulf %1142, %1145 : vector<1x32xf32>
    %1148 = arith.addf %1146, %1147 : vector<1x32xf32>
    %1149 = math.tanh %1148 : vector<1x32xf32>
    %1150 = arith.mulf %1144, %1149 : vector<1x32xf32>
    %c1_493 = arith.constant 1 : index
    %c0_494 = arith.constant 0 : index
    %1151 = vector.load %arg7[%c1_493, %c0_494] : memref<2x32xf32, #tpu.memory_space<vmem>>, vector<1x32xf32>
    tpu.vector_store %arg7[%c1_493, %c0_494], %1150 {strides = array<i32>} : memref<2x32xf32, #tpu.memory_space<vmem>>, vector<1x32xf32>,
    %c0_495 = arith.constant 0 : index
    %c0_496 = arith.constant 0 : index
    %1152 = vector.load %arg7[%c0_495, %c0_496] : memref<2x32xf32, #tpu.memory_space<vmem>>, vector<2x32xf32>
    %1153 = vector.extract_strided_slice %1152 {offsets = [0, 0], sizes = [1, 32], strides = [1, 1]} : vector<2x32xf32> to vector<1x32xf32>
    %c7 = arith.constant 7 : index
    %c0_497 = arith.constant 0 : index
    %1154 = vector.load %arg8[%c7, %c0_497] : memref<16x32xf32, #tpu.memory_space<vmem>>, vector<1x32xf32>
    tpu.vector_store %arg8[%c7, %c0_497], %1153 {strides = array<i32>} : memref<16x32xf32, #tpu.memory_space<vmem>>, vector<1x32xf32>,
    %1155 = vector.extract_strided_slice %1152 {offsets = [1, 0], sizes = [1, 32], strides = [1, 1]} : vector<2x32xf32> to vector<1x32xf32>
    %c15 = arith.constant 15 : index
    %c0_498 = arith.constant 0 : index
    %1156 = vector.load %arg8[%c15, %c0_498] : memref<16x32xf32, #tpu.memory_space<vmem>>, vector<1x32xf32>
    tpu.vector_store %arg8[%c15, %c0_498], %1155 {strides = array<i32>} : memref<16x32xf32, #tpu.memory_space<vmem>>, vector<1x32xf32>,
    %c0_499 = arith.constant 0 : index
    %c0_500 = arith.constant 0 : index
    %1157 = vector.load %arg8[%c0_499, %c0_500] : memref<16x32xf32, #tpu.memory_space<vmem>>, vector<16x32xf32>
    %c0_501 = arith.constant 0 : index
    %c0_502 = arith.constant 0 : index
    %1158 = vector.load %arg4[%c0_501, %c0_502] : memref<32x1xf32, #tpu.memory_space<vmem>>, vector<32x1xf32>
    %cst_503 = arith.constant dense<0.000000e+00> : vector<16x1xf32>
    %1159 = tpu.matmul %1157, %1158, %cst_503 {dimension_numbers = #tpu.dot_dimension_numbers<[1], [0], [0], [1], [0, 0, 1, 1], [], []>} : vector<16x32xf32>, vector<32x1xf32>, vector<16x1xf32> -> vector<16x1xf32>
    %c0_504 = arith.constant 0 : index
    %c0_505 = arith.constant 0 : index
    %1160 = vector.load %arg5[%c0_504, %c0_505] : memref<1x1xf32, #tpu.memory_space<vmem>>, vector<1x1xf32>
    %1161 = vector.broadcast %1160 : vector<1x1xf32> to vector<16x1xf32>
    %1162 = arith.addf %1159, %1161 : vector<16x1xf32>
    %c0_506 = arith.constant 0 : index
    %c0_507 = arith.constant 0 : index
    %1163 = vector.load %arg6[%c0_506, %c0_507] : memref<16x1xf32, #tpu.memory_space<vmem>>, vector<16x1xf32>
    tpu.vector_store %arg6[%c0_506, %c0_507], %1162 {strides = array<i32>} : memref<16x1xf32, #tpu.memory_space<vmem>>, vector<16x1xf32>,
    return
  }
}

</mosaic_0001>

<bundles_post_ra>
// kernel: lstm_forward.1
= control target key start
LH: loop header
LB: loop body
LE: loop exit
PB: predicated region body
PF: predicated region fallthrough
CT: control target
= control target key end

     0   :  { %vm41_vm0 = vcmask 261120   ;;  %v25_v12 = vlaneseq  ;;  %s4320_s9 = smov 32   ;;  %s4321_s10 = smov 64   ;;  %vm101_vm6 = vcmask 253952   ;;  %vm176_vm11 = vcmask 254977   ;;  %s5424_s1 = inlined_call_operand.vmem [shape: f32[3,32,128], index: 1, kind: input, shape index: {}]   ;;  %s5425_s0 = inlined_call_operand.vmem [shape: f32[8,2,32], index: 0, kind: input, shape index: {}]   ;;  %s5426_s3 = inlined_call_operand.vmem [shape: f32[3,1,128], index: 3, kind: input, shape index: {}]   ;;  %s5427_s2 = inlined_call_operand.vmem [shape: f32[3,32,128], index: 2, kind: input, shape index: {}]   ;;  %s5428_s4 = inlined_call_operand.vmem [shape: f32[32,1], index: 4, kind: input, shape index: {}]   ;;  %s5429_s5 = inlined_call_operand.<no memory space> [shape: f32[1,1], index: 5, kind: input, shape index: {}]   ;;  %s5430_s6 = inlined_call_operand.vmem [shape: f32[16,1], index: 6, kind: output, shape index: {}]  }
   0x1   :  { %v4360_v0 = vld [vmem:[%s5424_s1 + $0x18] sm:$0xff]  ;;  %v4365_v1 = vld [vmem:[%s5424_s1 + $0x10] sm:$0xff]  ;;  %v4371_v2 = vld [vmem:[%s5424_s1 + $0x8] sm:$0xff] }
   0x2   :  { %57 = vmatpush.msra.mxu1 %v4360_v0  ;;  %v4376_v3 = vld [vmem:[%s5424_s1] sm:$0xff]  ;;  %v4391_v15 = vand.u32 127, %v25_v12  ;;  %v4402_v29 = vld [vmem:[%s5427_s2 + $0x18] sm:$0xff]  ;;  %v4407_v30 = vld [vmem:[%s5427_s2 + $0x10] sm:$0xff] }
   0x3   :  { %v4382_v4 = vld [vmem:[%s5425_s0] sm:$0x3]  ;;  %v4413_v31 = vld [vmem:[%s5427_s2 + $0x8] sm:$0xff]  ;;  %v4435_v63 = vld [vmem:[%s5424_s1 + $0x38] sm:$0xff] }
   0x4   :  { %58 = vmatpush.msra.mxu1 %v4365_v1  ;;  %v3911_v5 = vld [vmem:[%s5426_s3] ss:$0 sm:$0xff]  ;;  %vm27_vm3 = vcmp.ge.s32.totalorder %v4391_v15, 96  ;;  %209 = vmatpush.msra.mxu2 %v4435_v63  ;;  %v3620_v15 = vld [vmem:[%s5428_s4 + $0x18] sm:$0xff] }
   0x5   :  { %v4419_v32 = vld [vmem:[%s5427_s2] sm:$0xff] }
   0x6   :  { %59 = vmatpush.msra.mxu1 %v4371_v2 }
   0x8   :  { %60 = vmatpush.msra.mxu1 %v4376_v3 }
   0x9   :  { %3661 = vmatmul.msk.f32.vlgmr.msra.gmra.mxu1 %vm41_vm0, %v4382_v4 }
   0xa   :  { %117 = vmatpush.msrb.mxu1 %v4402_v29 }
   0xc   :  { %118 = vmatpush.msrb.mxu1 %v4407_v30 }
   0xe   :  { %119 = vmatpush.msrb.mxu1 %v4413_v31 }
  0x10   :  { %120 = vmatpush.msrb.mxu1 %v4419_v32 }
  0x86   :  { %v62_v6 = vpop.f32.mrf.mxu1 }
  0x87   :  { %v63_v7 = vadd.f32 %v3911_v5, %v62_v6  ;;  %v4441_v5 = vld [vmem:[%s5424_s1 + $0x30] sm:$0xff]  ;;  %v4447_v6 = vld [vmem:[%s5424_s1 + $0x28] sm:$0xff] }
  0x88   :  { %210 = vmatpush.msra.mxu2 %v4441_v5 }
  0x89   :  { %v3662_v8 = vmul.f32 -1.442695, %v63_v7 }
  0x8a   :  { %211 = vmatpush.msra.mxu2 %v4447_v6 }
  0x8b   :  { %3936 = vpow2.f32 %v3662_v8 }
  0x91   :  { %v3937_v9 = vpop.eup %3936 }
  0x92   :  { %v69_v10 = vadd.f32 1.0, %v3937_v9 }
  0x94   :  { %3938 = vrcp.f32 %v69_v10  ;;  %v81_v16 = vand.u32 2147483648, %v69_v10  ;;  %v79_v18 = vand.u32 2147483647, %v69_v10  ;;  %vm75_vm2 = vweird.f32 %v69_v10 }
  0x95   :  { %3940 = vtanh.f32 %v63_v7 }
  0x96   :  { %v82_v20 = vor.u32 1.1754944e-38, %v81_v16  ;;  %vm80_vm5 = vcmp.eq.f32.partialorder %v79_v18, 8.507059e+37 }
  0x9a   :  { %v3939_v11 = vpop.eup %3938 }
  0x9b   :  { %v71_v13 = vmul.f32 %v3939_v11, %v69_v10  ;;  %vm76_vm1 = vweird.f32 %v3939_v11  ;;  %v3941_v22 = vpop.eup %3940  ;;  %v3912_v10 = vld [vmem:[%s5426_s3 + $0x1] ss:$0 sm:$0xff] }
  0x9c   :  { %vm77_vm4 = vmor %vm75_vm2, %vm76_vm1 }
  0x9d   :  { %v72_v14 = vsub.f32 1.0, %v71_v13 }
  0x9f   :  { %v73_v17 = vmul.f32 %v3939_v11, %v72_v14 }
  0xa1   :  { %v74_v19 = vadd.f32 %v3939_v11, %v73_v17 }
  0xa3   :  { %v78_v21 = vsel %vm77_vm4, %v3939_v11, %v74_v19 }
  0xa4   :  { %v83_v23 = vsel %vm80_vm5, %v82_v20, %v78_v21 }
  0xa5   :  { %v85_v24 = vsel %vm27_vm3, %v3941_v22, %v83_v23 }
  0xa6   :  { %87 = vrot.lane.b32.xlu0 %v85_v24, %s4320_s9 }
 0x118   :  { %v88_v25 = vpop.permute.xlu0 %87 }
 0x119   :  { %v90_v26 = vmul.f32 %v88_v25, %v85_v24 }
 0x11b   :  { %3942 = vtanh.f32 %v90_v26  ;;  %v151_v27 = vrot.slane %v90_v26, 7 }
 0x11d   :  { %152 = vrot.lane.b32.xlu2 %v151_v27, %s4320_s9 }
 0x121   :  { %v3943_v28 = vpop.eup %3942 }
 0x122   :  { %93 = vrot.lane.b32.xlu0 %v3943_v28, %s4321_s10 }
 0x177   :  { %v153_v56 = vpop.permute.xlu2 %152 }
 0x194   :  { %v94_v33 = vpop.permute.xlu0 %93 }
 0x195   :  { %v96_v34 = vmul.f32 %v94_v33, %v85_v24  ;;  %v4473_v33 = vld [vmem:[%s5427_s2 + $0x38] sm:$0xff] }
 0x196   :  { %268 = vmatpush.msra.mxu3 %v4473_v33 }
 0x197   :  { %98 = vrot.lane.b32.xlu1 %v96_v34, %s4321_s10  ;;  %v4478_v34 = vld [vmem:[%s5427_s2 + $0x30] sm:$0xff] }
 0x198   :  { %269 = vmatpush.msra.mxu3 %v4478_v34 }
 0x209   :  { %v99_v35 = vpop.permute.xlu1 %98 }
 0x20a   :  { %102 = vst.msk [vmem:[#allocation2] sm:$0x1] %vm101_vm6, %v99_v35  ;;  %3663 = vmatmul.msk.f32.vlgmr.msrb.gmra.mxu1 %vm41_vm0, %v99_v35  ;;  %v4484_v35 = vld [vmem:[%s5427_s2 + $0x28] sm:$0xff] }
 0x20b   :  { %270 = vmatpush.msra.mxu3 %v4484_v35 }
 0x287   :  { %v122_v36 = vpop.f32.mrf.mxu1 }
 0x288   :  { %v126_v37 = vrot.slane %v122_v36, 7  ;;  %v4490_v36 = vld [vmem:[%s5427_s2 + $0x20] sm:$0xff] }
 0x289   :  { %271 = vmatpush.msra.mxu3 %v4490_v36 }
 0x28a   :  { %v128_v38 = vadd.f32 %v126_v37, %v63_v7  ;;  %v4453_v7 = vld [vmem:[%s5424_s1 + $0x20] sm:$0xff] }
 0x28b   :  { %212 = vmatpush.msra.mxu2 %v4453_v7  ;;  %572 = vmatpush.msrb.mxu3 %v4402_v29 }
 0x28c   :  { %v3664_v39 = vmul.f32 -1.442695, %v128_v38 }
 0x28d   :  { %513 = vmatpush.msrb.mxu2 %v4360_v0  ;;  %573 = vmatpush.msrb.mxu3 %v4407_v30 }
 0x28e   :  { %3944 = vpow2.f32 %v3664_v39 }
 0x28f   :  { %514 = vmatpush.msrb.mxu2 %v4365_v1  ;;  %574 = vmatpush.msrb.mxu3 %v4413_v31 }
 0x291   :  { %515 = vmatpush.msrb.mxu2 %v4371_v2  ;;  %575 = vmatpush.msrb.mxu3 %v4419_v32 }
 0x293   :  { %516 = vmatpush.msrb.mxu2 %v4376_v3 }
 0x294   :  { %v3945_v40 = vpop.eup %3944 }
 0x295   :  { %v133_v41 = vadd.f32 1.0, %v3945_v40 }
 0x297   :  { %3946 = vrcp.f32 %v133_v41  ;;  %v145_v45 = vand.u32 2147483648, %v133_v41  ;;  %v143_v47 = vand.u32 2147483647, %v133_v41  ;;  %vm139_vm8 = vweird.f32 %v133_v41 }
 0x298   :  { %3948 = vtanh.f32 %v128_v38 }
 0x299   :  { %v146_v49 = vor.u32 1.1754944e-38, %v145_v45  ;;  %vm144_vm10 = vcmp.eq.f32.partialorder %v143_v47, 8.507059e+37 }
 0x29d   :  { %v3947_v42 = vpop.eup %3946 }
 0x29e   :  { %v135_v43 = vmul.f32 %v3947_v42, %v133_v41  ;;  %vm140_vm7 = vweird.f32 %v3947_v42  ;;  %v3949_v51 = vpop.eup %3948 }
 0x29f   :  { %vm141_vm9 = vmor %vm139_vm8, %vm140_vm7 }
 0x2a0   :  { %v136_v44 = vsub.f32 1.0, %v135_v43 }
 0x2a2   :  { %v137_v46 = vmul.f32 %v3947_v42, %v136_v44 }
 0x2a4   :  { %v138_v48 = vadd.f32 %v3947_v42, %v137_v46 }
 0x2a6   :  { %v142_v50 = vsel %vm141_vm9, %v3947_v42, %v138_v48 }
 0x2a7   :  { %v147_v52 = vsel %vm144_vm10, %v146_v49, %v142_v50 }
 0x2a8   :  { %v149_v53 = vsel %vm27_vm3, %v3949_v51, %v147_v52 }
 0x2a9   :  { %157 = vrot.lane.b32.xlu1 %v149_v53, %s4320_s9  ;;  %v155_v57 = vmul.f32 %v153_v56, %v149_v53 }
 0x31b   :  { %v158_v54 = vpop.permute.xlu1 %157 }
 0x31c   :  { %v160_v55 = vmul.f32 %v158_v54, %v149_v53 }
 0x31e   :  { %162 = vrot.lane.b32.xlu2 %v160_v55, %s4320_s9 }
 0x378   :  { %v163_v58 = vpop.permute.xlu2 %162 }
 0x379   :  { %v165_v59 = vadd.f32 %v163_v58, %v155_v57 }
 0x37b   :  { %3950 = vtanh.f32 %v165_v59 }
 0x381   :  { %v3951_v60 = vpop.eup %3950 }
 0x382   :  { %168 = vrot.lane.b32.xlu0 %v3951_v60, %s4320_s9 }
 0x3f4   :  { %v169_v61 = vpop.permute.xlu0 %168 }
 0x3f5   :  { %v171_v62 = vmul.f32 %v169_v61, %v149_v53 }
 0x3f7   :  { %173 = vrot.lane.b32.xlu1 %v171_v62, %s4321_s10 }
 0x469   :  { %v174_v8 = vpop.permute.xlu1 %173 }
 0x46a   :  { %177 = vst.msk [vmem:[#allocation2] sm:$0x2] %vm176_vm11, %v174_v8  ;;  %v3681_v8 = vld [vmem:[%s5424_s1 + $0x58] sm:$0xff] }
 0x46b   :  { %359 = vmatpush.msra.mxu0 %v3681_v8 }
 0x471   :  { %v178_v9 = vld [vmem:[#allocation2] sm:$0x3] }
 0x472   :  { %3674 = vmatmul.msk.f32.vlgmr.msra.gmra.mxu2 %vm41_vm0, %v178_v9  ;;  %v3680_v9 = vld [vmem:[%s5424_s1 + $0x50] sm:$0xff] }
 0x473   :  { %807 = vmatpush.msra.mxu2 %v3681_v8  ;;  %360 = vmatpush.msra.mxu0 %v3680_v9 }
 0x475   :  { %808 = vmatpush.msra.mxu2 %v3680_v9 }
 0x4f5   :  { %v214_v11 = vpop.f32.mrf.mxu2 }
 0x4f6   :  { %v215_v12 = vadd.f32 %v3912_v10, %v214_v11  ;;  %v3679_v10 = vld [vmem:[%s5424_s1 + $0x48] sm:$0xff]  ;;  %v3678_v11 = vld [vmem:[%s5424_s1 + $0x40] sm:$0xff] }
 0x4f7   :  { %361 = vmatpush.msra.mxu0 %v3679_v10  ;;  %809 = vmatpush.msra.mxu2 %v3679_v10 }
 0x4f8   :  { %v3675_v0 = vmul.f32 -1.442695, %v215_v12 }
 0x4f9   :  { %362 = vmatpush.msra.mxu0 %v3678_v11  ;;  %810 = vmatpush.msra.mxu2 %v3678_v11 }
 0x4fa   :  { %3952 = vpow2.f32 %v3675_v0 }
 0x4fb   :  { %660 = vmatpush.msrb.mxu0 %v4435_v63 }
 0x4fd   :  { %661 = vmatpush.msrb.mxu0 %v4441_v5 }
 0x4ff   :  { %662 = vmatpush.msrb.mxu0 %v4447_v6 }
 0x500   :  { %v3953_v1 = vpop.eup %3952 }
 0x501   :  { %v221_v13 = vadd.f32 1.0, %v3953_v1  ;;  %663 = vmatpush.msrb.mxu0 %v4453_v7  ;;  %v3913_v1 = vld [vmem:[%s5426_s3 + $0x2] ss:$0 sm:$0xff] }
 0x503   :  { %3954 = vrcp.f32 %v221_v13  ;;  %v233_v16 = vand.u32 2147483648, %v221_v13  ;;  %v231_v18 = vand.u32 2147483647, %v221_v13  ;;  %vm227_vm13 = vweird.f32 %v221_v13 }
 0x504   :  { %3956 = vtanh.f32 %v215_v12 }
 0x505   :  { %v234_v20 = vor.u32 1.1754944e-38, %v233_v16  ;;  %vm232_vm15 = vcmp.eq.f32.partialorder %v231_v18, 8.507059e+37 }
 0x509   :  { %v3955_v2 = vpop.eup %3954 }
 0x50a   :  { %v223_v3 = vmul.f32 %v3955_v2, %v221_v13  ;;  %vm228_vm12 = vweird.f32 %v3955_v2  ;;  %v3957_v22 = vpop.eup %3956 }
 0x50b   :  { %vm229_vm14 = vmor %vm227_vm13, %vm228_vm12 }
 0x50c   :  { %v224_v14 = vsub.f32 1.0, %v223_v3 }
 0x50e   :  { %v225_v17 = vmul.f32 %v3955_v2, %v224_v14 }
 0x510   :  { %v226_v19 = vadd.f32 %v3955_v2, %v225_v17 }
 0x512   :  { %v230_v21 = vsel %vm229_vm14, %v3955_v2, %v226_v19 }
 0x513   :  { %v235_v23 = vsel %vm232_vm15, %v234_v20, %v230_v21 }
 0x514   :  { %v237_v24 = vsel %vm27_vm3, %v3957_v22, %v235_v23 }
 0x515   :  { %239 = vrot.lane.b32.xlu2 %v237_v24, %s4320_s9 }
 0x56f   :  { %v240_v25 = vpop.permute.xlu2 %239 }
 0x570   :  { %v242_v26 = vmul.f32 %v240_v25, %v237_v24 }
 0x572   :  { %3958 = vtanh.f32 %v242_v26  ;;  %v302_v28 = vrot.slane %v242_v26, 7 }
 0x578   :  { %v3959_v27 = vpop.eup %3958 }
 0x579   :  { %245 = vrot.lane.b32.xlu0 %v3959_v27, %s4321_s10 }
 0x581   :  { %303 = vrot.lane.b32.xlu0 %v302_v28, %s4320_s9 }
 0x5eb   :  { %v246_v37 = vpop.permute.xlu0 %245 }
 0x5ec   :  { %v248_v38 = vmul.f32 %v246_v37, %v237_v24  ;;  %v3685_v37 = vld [vmem:[%s5427_s2 + $0x58] sm:$0xff] }
 0x5ed   :  { %418 = vmatpush.msra.mxu1 %v3685_v37 }
 0x5ee   :  { %250 = vrot.lane.b32.xlu1 %v248_v38, %s4321_s10  ;;  %v3684_v38 = vld [vmem:[%s5427_s2 + $0x50] sm:$0xff] }
 0x5ef   :  { %419 = vmatpush.msra.mxu1 %v3684_v38 }
 0x5f3   :  { %v304_v56 = vpop.permute.xlu0 %303 }
 0x660   :  { %v251_v39 = vpop.permute.xlu1 %250 }
 0x661   :  { %253 = vst.msk [vmem:[#allocation2] sm:$0x1] %vm101_vm6, %v251_v39  ;;  %3676 = vmatmul.msk.f32.vlgmr.msra.gmra.mxu3 %vm41_vm0, %v251_v39  ;;  %v3683_v39 = vld [vmem:[%s5427_s2 + $0x48] sm:$0xff] }
 0x662   :  { %866 = vmatpush.msra.mxu3 %v3685_v37  ;;  %420 = vmatpush.msra.mxu1 %v3683_v39 }
 0x664   :  { %867 = vmatpush.msra.mxu3 %v3684_v38 }
 0x666   :  { %868 = vmatpush.msra.mxu3 %v3683_v39 }
 0x6e4   :  { %v273_v40 = vpop.f32.mrf.mxu3 }
 0x6e5   :  { %v277_v41 = vrot.slane %v273_v40, 7  ;;  %v3682_v40 = vld [vmem:[%s5427_s2 + $0x40] sm:$0xff] }
 0x6e6   :  { %421 = vmatpush.msra.mxu1 %v3682_v40  ;;  %869 = vmatpush.msra.mxu3 %v3682_v40 }
 0x6e7   :  { %v279_v42 = vadd.f32 %v277_v41, %v215_v12 }
 0x6e8   :  { %719 = vmatpush.msrb.mxu1 %v4473_v33 }
 0x6e9   :  { %v3677_v43 = vmul.f32 -1.442695, %v279_v42 }
 0x6ea   :  { %720 = vmatpush.msrb.mxu1 %v4478_v34 }
 0x6eb   :  { %3960 = vpow2.f32 %v3677_v43 }
 0x6ec   :  { %721 = vmatpush.msrb.mxu1 %v4484_v35 }
 0x6ee   :  { %722 = vmatpush.msrb.mxu1 %v4490_v36 }
 0x6f1   :  { %v3961_v29 = vpop.eup %3960 }
 0x6f2   :  { %v284_v30 = vadd.f32 1.0, %v3961_v29 }
 0x6f4   :  { %3962 = vrcp.f32 %v284_v30  ;;  %v296_v45 = vand.u32 2147483648, %v284_v30  ;;  %v294_v47 = vand.u32 2147483647, %v284_v30  ;;  %vm290_vm2 = vweird.f32 %v284_v30 }
 0x6f5   :  { %3964 = vtanh.f32 %v279_v42 }
 0x6f6   :  { %v297_v49 = vor.u32 1.1754944e-38, %v296_v45  ;;  %vm295_vm5 = vcmp.eq.f32.partialorder %v294_v47, 8.507059e+37 }
 0x6fa   :  { %v3963_v31 = vpop.eup %3962 }
 0x6fb   :  { %v286_v44 = vmul.f32 %v3963_v31, %v284_v30  ;;  %vm291_vm1 = vweird.f32 %v3963_v31  ;;  %v3965_v51 = vpop.eup %3964 }
 0x6fc   :  { %vm292_vm4 = vmor %vm290_vm2, %vm291_vm1 }
 0x6fd   :  { %v287_v32 = vsub.f32 1.0, %v286_v44 }
 0x6ff   :  { %v288_v46 = vmul.f32 %v3963_v31, %v287_v32 }
 0x701   :  { %v289_v48 = vadd.f32 %v3963_v31, %v288_v46 }
 0x703   :  { %v293_v50 = vsel %vm292_vm4, %v3963_v31, %v289_v48 }
 0x704   :  { %v298_v52 = vsel %vm295_vm5, %v297_v49, %v293_v50 }
 0x705   :  { %v300_v53 = vsel %vm27_vm3, %v3965_v51, %v298_v52 }
 0x706   :  { %308 = vrot.lane.b32.xlu2 %v300_v53, %s4320_s9  ;;  %v306_v57 = vmul.f32 %v304_v56, %v300_v53 }
 0x760   :  { %v309_v54 = vpop.permute.xlu2 %308 }
 0x761   :  { %v311_v55 = vmul.f32 %v309_v54, %v300_v53 }
 0x763   :  { %313 = vrot.lane.b32.xlu1 %v311_v55, %s4320_s9 }
 0x7d5   :  { %v314_v58 = vpop.permute.xlu1 %313 }
 0x7d6   :  { %v316_v59 = vadd.f32 %v314_v58, %v306_v57 }
 0x7d8   :  { %3966 = vtanh.f32 %v316_v59 }
 0x7de   :  { %v3967_v60 = vpop.eup %3966 }
 0x7df   :  { %319 = vrot.lane.b32.xlu2 %v3967_v60, %s4320_s9 }
 0x839   :  { %v320_v61 = vpop.permute.xlu2 %319 }
 0x83a   :  { %v322_v62 = vmul.f32 %v320_v61, %v300_v53 }
 0x83c   :  { %324 = vrot.lane.b32.xlu0 %v322_v62, %s4321_s10 }
 0x8ae   :  { %v325_v12 = vpop.permute.xlu0 %324 }
 0x8af   :  { %327 = vst.msk [vmem:[#allocation2] sm:$0x2] %vm176_vm11, %v325_v12 }
 0x8b6   :  { %v328_v0 = vld [vmem:[#allocation2] sm:$0x3] }
 0x8b7   :  { %3687 = vmatmul.msk.f32.vlgmr.msra.gmra.mxu0 %vm41_vm0, %v328_v0  ;;  %v3914_v0 = vld [vmem:[%s5426_s3] ss:$0 sm:$0xff] }
 0x934   :  { %v364_v13 = vpop.f32.mrf.mxu0 }
 0x935   :  { %v365_v2 = vadd.f32 %v3913_v1, %v364_v13 }
 0x937   :  { %v3688_v3 = vmul.f32 -1.442695, %v365_v2 }
 0x939   :  { %3968 = vpow2.f32 %v3688_v3 }
 0x93f   :  { %v3969_v63 = vpop.eup %3968 }
 0x940   :  { %v371_v5 = vadd.f32 1.0, %v3969_v63 }
 0x942   :  { %3970 = vrcp.f32 %v371_v5  ;;  %v383_v16 = vand.u32 2147483648, %v371_v5  ;;  %v381_v18 = vand.u32 2147483647, %v371_v5  ;;  %vm377_vm8 = vweird.f32 %v371_v5 }
 0x943   :  { %3972 = vtanh.f32 %v365_v2 }
 0x944   :  { %v384_v20 = vor.u32 1.1754944e-38, %v383_v16  ;;  %vm382_vm10 = vcmp.eq.f32.partialorder %v381_v18, 8.507059e+37 }
 0x948   :  { %v3971_v6 = vpop.eup %3970 }
 0x949   :  { %v373_v14 = vmul.f32 %v3971_v6, %v371_v5  ;;  %vm378_vm7 = vweird.f32 %v3971_v6  ;;  %v3973_v22 = vpop.eup %3972 }
 0x94a   :  { %vm379_vm9 = vmor %vm377_vm8, %vm378_vm7 }
 0x94b   :  { %v374_v7 = vsub.f32 1.0, %v373_v14 }
 0x94d   :  { %v375_v17 = vmul.f32 %v3971_v6, %v374_v7 }
 0x94f   :  { %v376_v19 = vadd.f32 %v3971_v6, %v375_v17 }
 0x951   :  { %v380_v21 = vsel %vm379_vm9, %v3971_v6, %v376_v19 }
 0x952   :  { %v385_v23 = vsel %vm382_vm10, %v384_v20, %v380_v21 }
 0x953   :  { %v387_v24 = vsel %vm27_vm3, %v3973_v22, %v385_v23 }
 0x954   :  { %389 = vrot.lane.b32.xlu1 %v387_v24, %s4320_s9 }
 0x9c6   :  { %v390_v25 = vpop.permute.xlu1 %389 }
 0x9c7   :  { %v392_v26 = vmul.f32 %v390_v25, %v387_v24 }
 0x9c9   :  { %3974 = vtanh.f32 %v392_v26  ;;  %v452_v28 = vrot.slane %v392_v26, 7 }
 0x9cf   :  { %v3975_v27 = vpop.eup %3974 }
 0x9d0   :  { %395 = vrot.lane.b32.xlu2 %v3975_v27, %s4321_s10 }
 0x9d8   :  { %453 = vrot.lane.b32.xlu2 %v452_v28, %s4320_s9 }
 0xa2a   :  { %v396_v41 = vpop.permute.xlu2 %395 }
 0xa2b   :  { %v398_v42 = vmul.f32 %v396_v41, %v387_v24 }
 0xa2d   :  { %400 = vrot.lane.b32.xlu0 %v398_v42, %s4321_s10 }
 0xa32   :  { %v454_v56 = vpop.permute.xlu2 %453 }
 0xa9f   :  { %v401_v43 = vpop.permute.xlu0 %400 }
 0xaa0   :  { %403 = vst.msk [vmem:[#allocation2] sm:$0x1] %vm101_vm6, %v401_v43  ;;  %3689 = vmatmul.msk.f32.vlgmr.msra.gmra.mxu1 %vm41_vm0, %v401_v43 }
 0xb1d   :  { %v423_v29 = vpop.f32.mrf.mxu1 }
 0xb1e   :  { %v427_v30 = vrot.slane %v423_v29, 7 }
 0xb20   :  { %v429_v31 = vadd.f32 %v427_v30, %v365_v2 }
 0xb22   :  { %v3690_v44 = vmul.f32 -1.442695, %v429_v31 }
 0xb24   :  { %3976 = vpow2.f32 %v3690_v44 }
 0xb2a   :  { %v3977_v33 = vpop.eup %3976 }
 0xb2b   :  { %v434_v34 = vadd.f32 1.0, %v3977_v33 }
 0xb2d   :  { %3978 = vrcp.f32 %v434_v34  ;;  %v446_v45 = vand.u32 2147483648, %v434_v34  ;;  %v444_v47 = vand.u32 2147483647, %v434_v34  ;;  %vm440_vm13 = vweird.f32 %v434_v34 }
 0xb2e   :  { %3980 = vtanh.f32 %v429_v31 }
 0xb2f   :  { %v447_v49 = vor.u32 1.1754944e-38, %v446_v45  ;;  %vm445_vm15 = vcmp.eq.f32.partialorder %v444_v47, 8.507059e+37 }
 0xb33   :  { %v3979_v35 = vpop.eup %3978 }
 0xb34   :  { %v436_v32 = vmul.f32 %v3979_v35, %v434_v34  ;;  %vm441_vm12 = vweird.f32 %v3979_v35  ;;  %v3981_v51 = vpop.eup %3980 }
 0xb35   :  { %vm442_vm14 = vmor %vm440_vm13, %vm441_vm12 }
 0xb36   :  { %v437_v36 = vsub.f32 1.0, %v436_v32 }
 0xb38   :  { %v438_v46 = vmul.f32 %v3979_v35, %v437_v36 }
 0xb3a   :  { %v439_v48 = vadd.f32 %v3979_v35, %v438_v46 }
 0xb3c   :  { %v443_v50 = vsel %vm442_vm14, %v3979_v35, %v439_v48 }
 0xb3d   :  { %v448_v52 = vsel %vm445_vm15, %v447_v49, %v443_v50 }
 0xb3e   :  { %v450_v53 = vsel %vm27_vm3, %v3981_v51, %v448_v52 }
 0xb3f   :  { %458 = vrot.lane.b32.xlu1 %v450_v53, %s4320_s9  ;;  %v456_v57 = vmul.f32 %v454_v56, %v450_v53 }
 0xbb1   :  { %v459_v54 = vpop.permute.xlu1 %458 }
 0xbb2   :  { %v461_v55 = vmul.f32 %v459_v54, %v450_v53 }
 0xbb4   :  { %463 = vrot.lane.b32.xlu0 %v461_v55, %s4320_s9 }
 0xc26   :  { %v464_v58 = vpop.permute.xlu0 %463 }
 0xc27   :  { %v466_v59 = vadd.f32 %v464_v58, %v456_v57 }
 0xc29   :  { %3982 = vtanh.f32 %v466_v59  ;;  %v3915_v59 = vld [vmem:[%s5426_s3 + $0x1] ss:$0 sm:$0xff] }
 0xc2f   :  { %v3983_v60 = vpop.eup %3982 }
 0xc30   :  { %469 = vrot.lane.b32.xlu1 %v3983_v60, %s4320_s9 }
 0xca2   :  { %v470_v61 = vpop.permute.xlu1 %469 }
 0xca3   :  { %v472_v62 = vmul.f32 %v470_v61, %v450_v53 }
 0xca5   :  { %474 = vrot.lane.b32.xlu2 %v472_v62, %s4321_s10 }
 0xcff   :  { %v475_v8 = vpop.permute.xlu2 %474 }
 0xd00   :  { %477 = vst.msk [vmem:[#allocation2] sm:$0x2] %vm176_vm11, %v475_v8 }
 0xd07   :  { %v478_v9 = vld [vmem:[#allocation2] sm:$0x3] }
 0xd08   :  { %479 = vst.msk [vmem:[#allocation3] sm:$0x1] %vm101_vm6, %v478_v9  ;;  %v481_v10 = vsub.f32 %v4382_v4, %v478_v9 }
 0xd09   :  { %480 = vst.msk [vmem:[#allocation3 + $0x7] sm:$0x2] %vm176_vm11, %v478_v9 }
 0xd0a   :  { %v482_v11 = vmul.f32 0.5, %v481_v10 }
 0xd0c   :  { %v483_v12 = vadd.f32 %v482_v11, %v478_v9 }
 0xd0e   :  { %3692 = vmatmul.msk.f32.vlgmr.msrb.gmra.mxu2 %vm41_vm0, %v483_v12 }
 0xd91   :  { %v518_v1 = vpop.f32.mrf.mxu2 }
 0xd92   :  { %v519_v13 = vadd.f32 %v3914_v0, %v518_v1 }
 0xd94   :  { %v3693_v2 = vmul.f32 -1.442695, %v519_v13 }
 0xd96   :  { %3984 = vpow2.f32 %v3693_v2 }
 0xd9c   :  { %v3985_v3 = vpop.eup %3984 }
 0xd9d   :  { %v525_v63 = vadd.f32 1.0, %v3985_v3 }
 0xd9f   :  { %3986 = vrcp.f32 %v525_v63  ;;  %v537_v14 = vand.u32 2147483648, %v525_v63  ;;  %v535_v16 = vand.u32 2147483647, %v525_v63  ;;  %vm531_vm2 = vweird.f32 %v525_v63 }
 0xda0   :  { %3988 = vtanh.f32 %v519_v13 }
 0xda1   :  { %v538_v18 = vor.u32 1.1754944e-38, %v537_v14  ;;  %vm536_vm5 = vcmp.eq.f32.partialorder %v535_v16, 8.507059e+37 }
 0xda5   :  { %v3987_v5 = vpop.eup %3986 }
 0xda6   :  { %v527_v6 = vmul.f32 %v3987_v5, %v525_v63  ;;  %vm532_vm1 = vweird.f32 %v3987_v5  ;;  %v3989_v20 = vpop.eup %3988 }
 0xda7   :  { %vm533_vm4 = vmor %vm531_vm2, %vm532_vm1 }
 0xda8   :  { %v528_v4 = vsub.f32 1.0, %v527_v6 }
 0xdaa   :  { %v529_v7 = vmul.f32 %v3987_v5, %v528_v4 }
 0xdac   :  { %v530_v17 = vadd.f32 %v3987_v5, %v529_v7 }
 0xdae   :  { %v534_v19 = vsel %vm533_vm4, %v3987_v5, %v530_v17 }
 0xdaf   :  { %v539_v21 = vsel %vm536_vm5, %v538_v18, %v534_v19 }
 0xdb0   :  { %v541_v22 = vsel %vm27_vm3, %v3989_v20, %v539_v21 }
 0xdb1   :  { %543 = vrot.lane.b32.xlu0 %v541_v22, %s4320_s9 }
 0xe23   :  { %v544_v23 = vpop.permute.xlu0 %543 }
 0xe24   :  { %v546_v24 = vmul.f32 %v544_v23, %v541_v22 }
 0xe26   :  { %3990 = vtanh.f32 %v546_v24  ;;  %v606_v26 = vrot.slane %v546_v24, 7 }
 0xe2c   :  { %v3991_v25 = vpop.eup %3990 }
 0xe2d   :  { %549 = vrot.lane.b32.xlu1 %v3991_v25, %s4321_s10 }
 0xe35   :  { %607 = vrot.lane.b32.xlu1 %v606_v26, %s4320_s9 }
 0xe9f   :  { %v550_v27 = vpop.permute.xlu1 %549 }
 0xea0   :  { %v552_v28 = vmul.f32 %v550_v27, %v541_v22 }
 0xea2   :  { %554 = vrot.lane.b32.xlu2 %v552_v28, %s4321_s10 }
 0xea7   :  { %v608_v50 = vpop.permute.xlu1 %607 }
 0xefc   :  { %v555_v37 = vpop.permute.xlu2 %554 }
 0xefd   :  { %557 = vst.msk [vmem:[#allocation2] sm:$0x1] %vm101_vm6, %v555_v37  ;;  %3694 = vmatmul.msk.f32.vlgmr.msrb.gmra.mxu3 %vm41_vm0, %v555_v37 }
 0xf80   :  { %v577_v38 = vpop.f32.mrf.mxu3 }
 0xf81   :  { %v581_v39 = vrot.slane %v577_v38, 7 }
 0xf83   :  { %v583_v40 = vadd.f32 %v581_v39, %v519_v13 }
 0xf85   :  { %v3695_v41 = vmul.f32 -1.442695, %v583_v40 }
 0xf87   :  { %3992 = vpow2.f32 %v3695_v41 }
 0xf8d   :  { %v3993_v42 = vpop.eup %3992 }
 0xf8e   :  { %v588_v43 = vadd.f32 1.0, %v3993_v42 }
 0xf90   :  { %3994 = vrcp.f32 %v588_v43  ;;  %v600_v44 = vand.u32 2147483648, %v588_v43  ;;  %v598_v34 = vand.u32 2147483647, %v588_v43  ;;  %vm594_vm8 = vweird.f32 %v588_v43 }
 0xf91   :  { %3996 = vtanh.f32 %v583_v40 }
 0xf92   :  { %v601_v32 = vor.u32 1.1754944e-38, %v600_v44  ;;  %vm599_vm10 = vcmp.eq.f32.partialorder %v598_v34, 8.507059e+37 }
 0xf96   :  { %v3995_v29 = vpop.eup %3994 }
 0xf97   :  { %v590_v30 = vmul.f32 %v3995_v29, %v588_v43  ;;  %vm595_vm7 = vweird.f32 %v3995_v29  ;;  %v3997_v45 = vpop.eup %3996 }
 0xf98   :  { %vm596_vm9 = vmor %vm594_vm8, %vm595_vm7 }
 0xf99   :  { %v591_v31 = vsub.f32 1.0, %v590_v30 }
 0xf9b   :  { %v592_v33 = vmul.f32 %v3995_v29, %v591_v31 }
 0xf9d   :  { %v593_v35 = vadd.f32 %v3995_v29, %v592_v33 }
 0xf9f   :  { %v597_v36 = vsel %vm596_vm9, %v3995_v29, %v593_v35 }
 0xfa0   :  { %v602_v46 = vsel %vm599_vm10, %v601_v32, %v597_v36 }
 0xfa1   :  { %v604_v47 = vsel %vm27_vm3, %v3997_v45, %v602_v46 }
 0xfa2   :  { %612 = vrot.lane.b32.xlu0 %v604_v47, %s4320_s9  ;;  %v610_v51 = vmul.f32 %v608_v50, %v604_v47  ;;  %v3916_v50 = vld [vmem:[%s5426_s3 + $0x2] ss:$0 sm:$0xff] }
0x1014   :  { %v613_v48 = vpop.permute.xlu0 %612 }
0x1015   :  { %v615_v49 = vmul.f32 %v613_v48, %v604_v47 }
0x1017   :  { %617 = vrot.lane.b32.xlu2 %v615_v49, %s4320_s9 }
0x1071   :  { %v618_v52 = vpop.permute.xlu2 %617 }
0x1072   :  { %v620_v53 = vadd.f32 %v618_v52, %v610_v51 }
0x1074   :  { %3998 = vtanh.f32 %v620_v53 }
0x107a   :  { %v3999_v54 = vpop.eup %3998 }
0x107b   :  { %623 = vrot.lane.b32.xlu0 %v3999_v54, %s4320_s9 }
0x10ed   :  { %v624_v55 = vpop.permute.xlu0 %623 }
0x10ee   :  { %v626_v56 = vmul.f32 %v624_v55, %v604_v47 }
0x10f0   :  { %628 = vrot.lane.b32.xlu1 %v626_v56, %s4321_s10 }
0x1162   :  { %v629_v57 = vpop.permute.xlu1 %628 }
0x1163   :  { %631 = vst.msk [vmem:[#allocation2] sm:$0x2] %vm176_vm11, %v629_v57 }
0x116a   :  { %v632_v58 = vld [vmem:[#allocation2] sm:$0x3] }
0x116b   :  { %3705 = vmatmul.msk.f32.vlgmr.msrb.gmra.mxu0 %vm41_vm0, %v632_v58 }
0x11e8   :  { %v665_v60 = vpop.f32.mrf.mxu0 }
0x11e9   :  { %v666_v61 = vadd.f32 %v3915_v59, %v665_v60 }
0x11eb   :  { %v3706_v62 = vmul.f32 -1.442695, %v666_v61 }
0x11ed   :  { %4000 = vpow2.f32 %v3706_v62 }
0x11f3   :  { %v4001_v8 = vpop.eup %4000 }
0x11f4   :  { %v672_v9 = vadd.f32 1.0, %v4001_v8 }
0x11f6   :  { %4002 = vrcp.f32 %v672_v9  ;;  %v684_v0 = vand.u32 2147483648, %v672_v9  ;;  %v682_v13 = vand.u32 2147483647, %v672_v9  ;;  %vm678_vm13 = vweird.f32 %v672_v9 }
0x11f7   :  { %4004 = vtanh.f32 %v666_v61 }
0x11f8   :  { %v685_v3 = vor.u32 1.1754944e-38, %v684_v0  ;;  %vm683_vm15 = vcmp.eq.f32.partialorder %v682_v13, 8.507059e+37 }
0x11fc   :  { %v4003_v10 = vpop.eup %4002 }
0x11fd   :  { %v674_v11 = vmul.f32 %v4003_v10, %v672_v9  ;;  %vm679_vm12 = vweird.f32 %v4003_v10  ;;  %v4005_v5 = vpop.eup %4004 }
0x11fe   :  { %vm680_vm14 = vmor %vm678_vm13, %vm679_vm12 }
0x11ff   :  { %v675_v12 = vsub.f32 1.0, %v674_v11 }
0x1201   :  { %v676_v1 = vmul.f32 %v4003_v10, %v675_v12 }
0x1203   :  { %v677_v2 = vadd.f32 %v4003_v10, %v676_v1 }
0x1205   :  { %v681_v63 = vsel %vm680_vm14, %v4003_v10, %v677_v2 }
0x1206   :  { %v686_v6 = vsel %vm683_vm15, %v685_v3, %v681_v63 }
0x1207   :  { %v688_v4 = vsel %vm27_vm3, %v4005_v5, %v686_v6 }
0x1208   :  { %690 = vrot.lane.b32.xlu2 %v688_v4, %s4320_s9 }
0x1262   :  { %v691_v14 = vpop.permute.xlu2 %690 }
0x1263   :  { %v693_v7 = vmul.f32 %v691_v14, %v688_v4 }
0x1265   :  { %4006 = vtanh.f32 %v693_v7  ;;  %v753_v17 = vrot.slane %v693_v7, 7 }
0x126b   :  { %v4007_v16 = vpop.eup %4006 }
0x126c   :  { %696 = vrot.lane.b32.xlu0 %v4007_v16, %s4321_s10 }
0x1274   :  { %754 = vrot.lane.b32.xlu0 %v753_v17, %s4320_s9 }
0x12de   :  { %v697_v18 = vpop.permute.xlu0 %696 }
0x12df   :  { %v699_v19 = vmul.f32 %v697_v18, %v688_v4 }
0x12e1   :  { %701 = vrot.lane.b32.xlu1 %v699_v19, %s4321_s10 }
0x12e6   :  { %v755_v34 = vpop.permute.xlu0 %754 }
0x1353   :  { %v702_v20 = vpop.permute.xlu1 %701 }
0x1354   :  { %704 = vst.msk [vmem:[#allocation2] sm:$0x1] %vm101_vm6, %v702_v20  ;;  %3707 = vmatmul.msk.f32.vlgmr.msrb.gmra.mxu1 %vm41_vm0, %v702_v20 }
0x13d1   :  { %v724_v21 = vpop.f32.mrf.mxu1 }
0x13d2   :  { %v728_v22 = vrot.slane %v724_v21, 7 }
0x13d4   :  { %v730_v23 = vadd.f32 %v728_v22, %v666_v61 }
0x13d6   :  { %v3708_v24 = vmul.f32 -1.442695, %v730_v23 }
0x13d8   :  { %4008 = vpow2.f32 %v3708_v24 }
0x13de   :  { %v4009_v25 = vpop.eup %4008 }
0x13df   :  { %v735_v26 = vadd.f32 1.0, %v4009_v25 }
0x13e1   :  { %4010 = vrcp.f32 %v735_v26  ;;  %v747_v38 = vand.u32 2147483648, %v735_v26  ;;  %v745_v40 = vand.u32 2147483647, %v735_v26  ;;  %vm741_vm2 = vweird.f32 %v735_v26 }
0x13e2   :  { %4012 = vtanh.f32 %v730_v23 }
0x13e3   :  { %v748_v42 = vor.u32 1.1754944e-38, %v747_v38  ;;  %vm746_vm5 = vcmp.eq.f32.partialorder %v745_v40, 8.507059e+37 }
0x13e7   :  { %v4011_v27 = vpop.eup %4010 }
0x13e8   :  { %v737_v28 = vmul.f32 %v4011_v27, %v735_v26  ;;  %vm742_vm1 = vweird.f32 %v4011_v27  ;;  %v4013_v29 = vpop.eup %4012 }
0x13e9   :  { %vm743_vm4 = vmor %vm741_vm2, %vm742_vm1 }
0x13ea   :  { %v738_v37 = vsub.f32 1.0, %v737_v28 }
0x13ec   :  { %v739_v39 = vmul.f32 %v4011_v27, %v738_v37 }
0x13ee   :  { %v740_v41 = vadd.f32 %v4011_v27, %v739_v39 }
0x13f0   :  { %v744_v43 = vsel %vm743_vm4, %v4011_v27, %v740_v41 }
0x13f1   :  { %v749_v30 = vsel %vm746_vm5, %v748_v42, %v744_v43 }
0x13f2   :  { %v751_v31 = vsel %vm27_vm3, %v4013_v29, %v749_v30 }
0x13f3   :  { %759 = vrot.lane.b32.xlu2 %v751_v31, %s4320_s9  ;;  %v757_v35 = vmul.f32 %v755_v34, %v751_v31  ;;  %v4632_v34 = vld [vmem:[%s5424_s1 + $0x8] sm:$0xff] }
0x144d   :  { %v760_v44 = vpop.permute.xlu2 %759 }
0x144e   :  { %v762_v33 = vmul.f32 %v760_v44, %v751_v31  ;;  %v4621_v44 = vld [vmem:[%s5424_s1 + $0x18] sm:$0xff] }
0x144f   :  { %961 = vmatpush.msra.mxu0 %v4621_v44 }
0x1450   :  { %764 = vrot.lane.b32.xlu1 %v762_v33, %s4320_s9  ;;  %v4627_v33 = vld [vmem:[%s5424_s1 + $0x10] sm:$0xff] }
0x1451   :  { %962 = vmatpush.msra.mxu0 %v4627_v33 }
0x1453   :  { %963 = vmatpush.msra.mxu0 %v4632_v34 }
0x14c2   :  { %v765_v32 = vpop.permute.xlu1 %764 }
0x14c3   :  { %v767_v36 = vadd.f32 %v765_v32, %v757_v35  ;;  %v4638_v35 = vld [vmem:[%s5424_s1] sm:$0xff] }
0x14c4   :  { %964 = vmatpush.msra.mxu0 %v4638_v35 }
0x14c5   :  { %4014 = vtanh.f32 %v767_v36  ;;  %v3691_v36 = vld [vmem:[%s5425_s0 + $0x2] sm:$0x3] }
0x14cb   :  { %v4015_v45 = vpop.eup %4014 }
0x14cc   :  { %770 = vrot.lane.b32.xlu2 %v4015_v45, %s4320_s9 }
0x1526   :  { %v771_v46 = vpop.permute.xlu2 %770 }
0x1527   :  { %v773_v47 = vmul.f32 %v771_v46, %v751_v31 }
0x1529   :  { %775 = vrot.lane.b32.xlu0 %v773_v47, %s4321_s10 }
0x159b   :  { %v776_v48 = vpop.permute.xlu0 %775 }
0x159c   :  { %778 = vst.msk [vmem:[#allocation2] sm:$0x2] %vm176_vm11, %v776_v48 }
0x15a3   :  { %v779_v49 = vld [vmem:[#allocation2] sm:$0x3] }
0x15a4   :  { %3718 = vmatmul.msk.f32.vlgmr.msra.gmra.mxu2 %vm41_vm0, %v779_v49  ;;  %v3917_v49 = vld [vmem:[%s5426_s3] ss:$0 sm:$0xff] }
0x1627   :  { %v812_v51 = vpop.f32.mrf.mxu2 }
0x1628   :  { %v813_v52 = vadd.f32 %v3916_v50, %v812_v51 }
0x162a   :  { %v3719_v53 = vmul.f32 -1.442695, %v813_v52 }
0x162c   :  { %4016 = vpow2.f32 %v3719_v53 }
0x1632   :  { %v4017_v54 = vpop.eup %4016 }
0x1633   :  { %v819_v55 = vadd.f32 1.0, %v4017_v54 }
0x1635   :  { %4018 = vrcp.f32 %v819_v55  ;;  %v831_v59 = vand.u32 2147483648, %v819_v55  ;;  %v829_v61 = vand.u32 2147483647, %v819_v55  ;;  %vm825_vm8 = vweird.f32 %v819_v55 }
0x1636   :  { %4020 = vtanh.f32 %v813_v52 }
0x1637   :  { %v832_v8 = vor.u32 1.1754944e-38, %v831_v59  ;;  %vm830_vm10 = vcmp.eq.f32.partialorder %v829_v61, 8.507059e+37 }
0x163b   :  { %v4019_v56 = vpop.eup %4018 }
0x163c   :  { %v821_v57 = vmul.f32 %v4019_v56, %v819_v55  ;;  %vm826_vm7 = vweird.f32 %v4019_v56  ;;  %v4021_v10 = vpop.eup %4020 }
0x163d   :  { %vm827_vm9 = vmor %vm825_vm8, %vm826_vm7 }
0x163e   :  { %v822_v58 = vsub.f32 1.0, %v821_v57 }
0x1640   :  { %v823_v60 = vmul.f32 %v4019_v56, %v822_v58 }
0x1642   :  { %v824_v62 = vadd.f32 %v4019_v56, %v823_v60 }
0x1644   :  { %v828_v9 = vsel %vm827_vm9, %v4019_v56, %v824_v62 }
0x1645   :  { %v833_v11 = vsel %vm830_vm10, %v832_v8, %v828_v9 }
0x1646   :  { %v835_v12 = vsel %vm27_vm3, %v4021_v10, %v833_v11 }
0x1647   :  { %837 = vrot.lane.b32.xlu1 %v835_v12, %s4320_s9 }
0x16b9   :  { %v838_v0 = vpop.permute.xlu1 %837 }
0x16ba   :  { %v840_v1 = vmul.f32 %v838_v0, %v835_v12 }
0x16bc   :  { %4022 = vtanh.f32 %v840_v1  ;;  %v900_v2 = vrot.slane %v840_v1, 7 }
0x16c2   :  { %v4023_v13 = vpop.eup %4022 }
0x16c3   :  { %843 = vrot.lane.b32.xlu2 %v4023_v13, %s4321_s10 }
0x16cb   :  { %901 = vrot.lane.b32.xlu2 %v900_v2, %s4320_s9  ;;  %v4660_v2 = vld [vmem:[%s5427_s2 + $0x18] sm:$0xff] }
0x16cc   :  { %1020 = vmatpush.msra.mxu1 %v4660_v2 }
0x171d   :  { %v844_v3 = vpop.permute.xlu2 %843 }
0x171e   :  { %v846_v63 = vmul.f32 %v844_v3, %v835_v12  ;;  %v4665_v3 = vld [vmem:[%s5427_s2 + $0x10] sm:$0xff] }
0x171f   :  { %1021 = vmatpush.msra.mxu1 %v4665_v3 }
0x1720   :  { %848 = vrot.lane.b32.xlu0 %v846_v63, %s4321_s10  ;;  %v4671_v63 = vld [vmem:[%s5427_s2 + $0x8] sm:$0xff] }
0x1721   :  { %1022 = vmatpush.msra.mxu1 %v4671_v63 }
0x1725   :  { %v902_v40 = vpop.permute.xlu2 %901 }
0x1792   :  { %v849_v5 = vpop.permute.xlu0 %848 }
0x1793   :  { %851 = vst.msk [vmem:[#allocation2] sm:$0x1] %vm101_vm6, %v849_v5  ;;  %3720 = vmatmul.msk.f32.vlgmr.msra.gmra.mxu3 %vm41_vm0, %v849_v5  ;;  %v4677_v5 = vld [vmem:[%s5427_s2] sm:$0xff] }
0x1794   :  { %1023 = vmatpush.msra.mxu1 %v4677_v5 }
0x1816   :  { %v871_v6 = vpop.f32.mrf.mxu3 }
0x1817   :  { %v875_v4 = vrot.slane %v871_v6, 7 }
0x1819   :  { %v877_v14 = vadd.f32 %v875_v4, %v813_v52 }
0x181b   :  { %v3721_v7 = vmul.f32 -1.442695, %v877_v14 }
0x181d   :  { %4024 = vpow2.f32 %v3721_v7 }
0x1823   :  { %v4025_v16 = vpop.eup %4024 }
0x1824   :  { %v882_v17 = vadd.f32 1.0, %v4025_v16 }
0x1826   :  { %4026 = vrcp.f32 %v882_v17  ;;  %v894_v21 = vand.u32 2147483648, %v882_v17  ;;  %v892_v23 = vand.u32 2147483647, %v882_v17  ;;  %vm888_vm13 = vweird.f32 %v882_v17 }
0x1827   :  { %4028 = vtanh.f32 %v877_v14 }
0x1828   :  { %v895_v25 = vor.u32 1.1754944e-38, %v894_v21  ;;  %vm893_vm15 = vcmp.eq.f32.partialorder %v892_v23, 8.507059e+37 }
0x182c   :  { %v4027_v18 = vpop.eup %4026 }
0x182d   :  { %v884_v19 = vmul.f32 %v4027_v18, %v882_v17  ;;  %vm889_vm12 = vweird.f32 %v4027_v18  ;;  %v4029_v27 = vpop.eup %4028 }
0x182e   :  { %vm890_vm14 = vmor %vm888_vm13, %vm889_vm12 }
0x182f   :  { %v885_v20 = vsub.f32 1.0, %v884_v19 }
0x1831   :  { %v886_v22 = vmul.f32 %v4027_v18, %v885_v20 }
0x1833   :  { %v887_v24 = vadd.f32 %v4027_v18, %v886_v22 }
0x1835   :  { %v891_v26 = vsel %vm890_vm14, %v4027_v18, %v887_v24 }
0x1836   :  { %v896_v28 = vsel %vm893_vm15, %v895_v25, %v891_v26 }
0x1837   :  { %v898_v37 = vsel %vm27_vm3, %v4029_v27, %v896_v28 }
0x1838   :  { %906 = vrot.lane.b32.xlu1 %v898_v37, %s4320_s9  ;;  %v904_v41 = vmul.f32 %v902_v40, %v898_v37 }
0x18aa   :  { %v907_v38 = vpop.permute.xlu1 %906 }
0x18ab   :  { %v909_v39 = vmul.f32 %v907_v38, %v898_v37 }
0x18ad   :  { %911 = vrot.lane.b32.xlu0 %v909_v39, %s4320_s9 }
0x191f   :  { %v912_v42 = vpop.permute.xlu0 %911 }
0x1920   :  { %v914_v43 = vadd.f32 %v912_v42, %v904_v41 }
0x1922   :  { %4030 = vtanh.f32 %v914_v43 }
0x1928   :  { %v4031_v29 = vpop.eup %4030 }
0x1929   :  { %917 = vrot.lane.b32.xlu1 %v4031_v29, %s4320_s9 }
0x199b   :  { %v918_v30 = vpop.permute.xlu1 %917 }
0x199c   :  { %v920_v31 = vmul.f32 %v918_v30, %v898_v37 }
0x199e   :  { %922 = vrot.lane.b32.xlu2 %v920_v31, %s4321_s10 }
0x19f8   :  { %v923_v32 = vpop.permute.xlu2 %922 }
0x19f9   :  { %925 = vst.msk [vmem:[#allocation2] sm:$0x2] %vm176_vm11, %v923_v32 }
0x1a00   :  { %v926_v45 = vld [vmem:[#allocation2] sm:$0x3] }
0x1a01   :  { %927 = vst.msk [vmem:[#allocation3 + $0x1] sm:$0x1] %vm101_vm6, %v926_v45  ;;  %v929_v46 = vsub.f32 %v3691_v36, %v926_v45 }
0x1a02   :  { %928 = vst.msk [vmem:[#allocation3 + $0x8] sm:$0x2] %vm176_vm11, %v926_v45 }
0x1a03   :  { %v930_v47 = vmul.f32 0.5, %v929_v46  ;;  %v4693_v46 = vld [vmem:[%s5424_s1 + $0x38] sm:$0xff] }
0x1a04   :  { %1108 = vmatpush.msrb.mxu2 %v4693_v46 }
0x1a05   :  { %v931_v48 = vadd.f32 %v930_v47, %v926_v45  ;;  %v4699_v47 = vld [vmem:[%s5424_s1 + $0x30] sm:$0xff] }
0x1a06   :  { %1109 = vmatpush.msrb.mxu2 %v4699_v47 }
0x1a07   :  { %3723 = vmatmul.msk.f32.vlgmr.msra.gmra.mxu0 %vm41_vm0, %v931_v48  ;;  %v4705_v48 = vld [vmem:[%s5424_s1 + $0x28] sm:$0xff] }
0x1a08   :  { %1110 = vmatpush.msrb.mxu2 %v4705_v48 }
0x1a84   :  { %v966_v50 = vpop.f32.mrf.mxu0 }
0x1a85   :  { %v967_v51 = vadd.f32 %v3917_v49, %v966_v50  ;;  %v4711_v49 = vld [vmem:[%s5424_s1 + $0x20] sm:$0xff] }
0x1a86   :  { %1111 = vmatpush.msrb.mxu2 %v4711_v49 }
0x1a87   :  { %v3724_v52 = vmul.f32 -1.442695, %v967_v51 }
0x1a88   :  { %1409 = vmatpush.msra.mxu2 %v4621_v44 }
0x1a89   :  { %4032 = vpow2.f32 %v3724_v52  ;;  %v3918_v52 = vld [vmem:[%s5426_s3 + $0x1] ss:$0 sm:$0xff] }
0x1a8a   :  { %1410 = vmatpush.msra.mxu2 %v4627_v33 }
0x1a8c   :  { %1411 = vmatpush.msra.mxu2 %v4632_v34 }
0x1a8e   :  { %1412 = vmatpush.msra.mxu2 %v4638_v35 }
0x1a8f   :  { %v4033_v53 = vpop.eup %4032 }
0x1a90   :  { %v973_v54 = vadd.f32 1.0, %v4033_v53 }
0x1a92   :  { %4034 = vrcp.f32 %v973_v54  ;;  %v985_v58 = vand.u32 2147483648, %v973_v54  ;;  %v983_v60 = vand.u32 2147483647, %v973_v54  ;;  %vm979_vm2 = vweird.f32 %v973_v54 }
0x1a93   :  { %4036 = vtanh.f32 %v967_v51 }
0x1a94   :  { %v986_v62 = vor.u32 1.1754944e-38, %v985_v58  ;;  %vm984_vm5 = vcmp.eq.f32.partialorder %v983_v60, 8.507059e+37 }
0x1a98   :  { %v4035_v55 = vpop.eup %4034 }
0x1a99   :  { %v975_v56 = vmul.f32 %v4035_v55, %v973_v54  ;;  %vm980_vm1 = vweird.f32 %v4035_v55  ;;  %v4037_v9 = vpop.eup %4036 }
0x1a9a   :  { %vm981_vm4 = vmor %vm979_vm2, %vm980_vm1 }
0x1a9b   :  { %v976_v57 = vsub.f32 1.0, %v975_v56 }
0x1a9d   :  { %v977_v59 = vmul.f32 %v4035_v55, %v976_v57 }
0x1a9f   :  { %v978_v61 = vadd.f32 %v4035_v55, %v977_v59 }
0x1aa1   :  { %v982_v8 = vsel %vm981_vm4, %v4035_v55, %v978_v61 }
0x1aa2   :  { %v987_v10 = vsel %vm984_vm5, %v986_v62, %v982_v8 }
0x1aa3   :  { %v989_v11 = vsel %vm27_vm3, %v4037_v9, %v987_v10 }
0x1aa4   :  { %991 = vrot.lane.b32.xlu0 %v989_v11, %s4320_s9 }
0x1b16   :  { %v992_v12 = vpop.permute.xlu0 %991 }
0x1b17   :  { %v994_v0 = vmul.f32 %v992_v12, %v989_v11 }
0x1b19   :  { %4038 = vtanh.f32 %v994_v0  ;;  %v1054_v13 = vrot.slane %v994_v0, 7 }
0x1b1f   :  { %v4039_v1 = vpop.eup %4038 }
0x1b20   :  { %997 = vrot.lane.b32.xlu1 %v4039_v1, %s4321_s10 }
0x1b28   :  { %1055 = vrot.lane.b32.xlu1 %v1054_v13, %s4320_s9  ;;  %v4731_v13 = vld [vmem:[%s5427_s2 + $0x38] sm:$0xff] }
0x1b29   :  { %1167 = vmatpush.msrb.mxu3 %v4731_v13 }
0x1b92   :  { %v998_v6 = vpop.permute.xlu1 %997 }
0x1b93   :  { %v1000_v4 = vmul.f32 %v998_v6, %v989_v11  ;;  %v4736_v6 = vld [vmem:[%s5427_s2 + $0x30] sm:$0xff] }
0x1b94   :  { %1168 = vmatpush.msrb.mxu3 %v4736_v6 }
0x1b95   :  { %1002 = vrot.lane.b32.xlu2 %v1000_v4, %s4321_s10  ;;  %v4742_v4 = vld [vmem:[%s5427_s2 + $0x28] sm:$0xff] }
0x1b96   :  { %1169 = vmatpush.msrb.mxu3 %v4742_v4 }
0x1b9a   :  { %v1056_v43 = vpop.permute.xlu1 %1055 }
0x1bef   :  { %v1003_v14 = vpop.permute.xlu2 %1002 }
0x1bf0   :  { %1005 = vst.msk [vmem:[#allocation2] sm:$0x1] %vm101_vm6, %v1003_v14  ;;  %3725 = vmatmul.msk.f32.vlgmr.msra.gmra.mxu1 %vm41_vm0, %v1003_v14  ;;  %v4748_v14 = vld [vmem:[%s5427_s2 + $0x20] sm:$0xff] }
0x1bf1   :  { %1170 = vmatpush.msrb.mxu3 %v4748_v14 }
0x1bf3   :  { %1468 = vmatpush.msra.mxu3 %v4660_v2 }
0x1bf5   :  { %1469 = vmatpush.msra.mxu3 %v4665_v3 }
0x1bf7   :  { %1470 = vmatpush.msra.mxu3 %v4671_v63 }
0x1bf9   :  { %1471 = vmatpush.msra.mxu3 %v4677_v5 }
0x1c6d   :  { %v1025_v7 = vpop.f32.mrf.mxu1 }
0x1c6e   :  { %v1029_v16 = vrot.slane %v1025_v7, 7 }
0x1c70   :  { %v1031_v17 = vadd.f32 %v1029_v16, %v967_v51 }
0x1c72   :  { %v3726_v18 = vmul.f32 -1.442695, %v1031_v17 }
0x1c74   :  { %4040 = vpow2.f32 %v3726_v18 }
0x1c7a   :  { %v4041_v19 = vpop.eup %4040 }
0x1c7b   :  { %v1036_v20 = vadd.f32 1.0, %v4041_v19 }
0x1c7d   :  { %4042 = vrcp.f32 %v1036_v20  ;;  %v1048_v24 = vand.u32 2147483648, %v1036_v20  ;;  %v1046_v26 = vand.u32 2147483647, %v1036_v20  ;;  %vm1042_vm8 = vweird.f32 %v1036_v20 }
0x1c7e   :  { %4044 = vtanh.f32 %v1031_v17 }
0x1c7f   :  { %v1049_v28 = vor.u32 1.1754944e-38, %v1048_v24  ;;  %vm1047_vm10 = vcmp.eq.f32.partialorder %v1046_v26, 8.507059e+37 }
0x1c83   :  { %v4043_v21 = vpop.eup %4042 }
0x1c84   :  { %v1038_v22 = vmul.f32 %v4043_v21, %v1036_v20  ;;  %vm1043_vm7 = vweird.f32 %v4043_v21  ;;  %v4045_v38 = vpop.eup %4044 }
0x1c85   :  { %vm1044_vm9 = vmor %vm1042_vm8, %vm1043_vm7 }
0x1c86   :  { %v1039_v23 = vsub.f32 1.0, %v1038_v22 }
0x1c88   :  { %v1040_v25 = vmul.f32 %v4043_v21, %v1039_v23 }
0x1c8a   :  { %v1041_v27 = vadd.f32 %v4043_v21, %v1040_v25 }
0x1c8c   :  { %v1045_v37 = vsel %vm1044_vm9, %v4043_v21, %v1041_v27 }
0x1c8d   :  { %v1050_v39 = vsel %vm1047_vm10, %v1049_v28, %v1045_v37 }
0x1c8e   :  { %v1052_v40 = vsel %vm27_vm3, %v4045_v38, %v1050_v39 }
0x1c8f   :  { %1060 = vrot.lane.b32.xlu0 %v1052_v40, %s4320_s9  ;;  %v1058_v29 = vmul.f32 %v1056_v43, %v1052_v40 }
0x1d01   :  { %v1061_v41 = vpop.permute.xlu0 %1060 }
0x1d02   :  { %v1063_v42 = vmul.f32 %v1061_v41, %v1052_v40 }
0x1d04   :  { %1065 = vrot.lane.b32.xlu2 %v1063_v42, %s4320_s9 }
0x1d5e   :  { %v1066_v30 = vpop.permute.xlu2 %1065 }
0x1d5f   :  { %v1068_v31 = vadd.f32 %v1066_v30, %v1058_v29 }
0x1d61   :  { %4046 = vtanh.f32 %v1068_v31 }
0x1d67   :  { %v4047_v32 = vpop.eup %4046 }
0x1d68   :  { %1071 = vrot.lane.b32.xlu0 %v4047_v32, %s4320_s9 }
0x1dda   :  { %v1072_v36 = vpop.permute.xlu0 %1071 }
0x1ddb   :  { %v1074_v45 = vmul.f32 %v1072_v36, %v1052_v40 }
0x1ddd   :  { %1076 = vrot.lane.b32.xlu1 %v1074_v45, %s4321_s10  ;;  %v3743_v45 = vld [vmem:[%s5424_s1 + $0x58] sm:$0xff] }
0x1dde   :  { %1255 = vmatpush.msrb.mxu0 %v3743_v45 }
0x1e4f   :  { %v1077_v50 = vpop.permute.xlu1 %1076 }
0x1e50   :  { %1079 = vst.msk [vmem:[#allocation2] sm:$0x2] %vm176_vm11, %v1077_v50  ;;  %v3742_v50 = vld [vmem:[%s5424_s1 + $0x50] sm:$0xff] }
0x1e51   :  { %1256 = vmatpush.msrb.mxu0 %v3742_v50 }
0x1e57   :  { %v1080_v51 = vld [vmem:[#allocation2] sm:$0x3] }
0x1e58   :  { %3736 = vmatmul.msk.f32.vlgmr.msrb.gmra.mxu2 %vm41_vm0, %v1080_v51  ;;  %v3741_v51 = vld [vmem:[%s5424_s1 + $0x48] sm:$0xff] }
0x1e59   :  { %1703 = vmatpush.msrb.mxu2 %v3743_v45  ;;  %1257 = vmatpush.msrb.mxu0 %v3741_v51  ;;  %v3722_v45 = vld [vmem:[%s5425_s0 + $0x4] sm:$0x3] }
0x1e5b   :  { %1704 = vmatpush.msrb.mxu2 %v3742_v50 }
0x1e5d   :  { %1705 = vmatpush.msrb.mxu2 %v3741_v51 }
0x1edb   :  { %v1113_v53 = vpop.f32.mrf.mxu2 }
0x1edc   :  { %v1114_v54 = vadd.f32 %v3918_v52, %v1113_v53  ;;  %v3740_v52 = vld [vmem:[%s5424_s1 + $0x40] sm:$0xff] }
0x1edd   :  { %1258 = vmatpush.msrb.mxu0 %v3740_v52  ;;  %1706 = vmatpush.msrb.mxu2 %v3740_v52 }
0x1ede   :  { %v3737_v55 = vmul.f32 -1.442695, %v1114_v54 }
0x1edf   :  { %1556 = vmatpush.msra.mxu0 %v4693_v46 }
0x1ee0   :  { %4048 = vpow2.f32 %v3737_v55  ;;  %v3919_v55 = vld [vmem:[%s5426_s3 + $0x2] ss:$0 sm:$0xff] }
0x1ee1   :  { %1557 = vmatpush.msra.mxu0 %v4699_v47 }
0x1ee3   :  { %1558 = vmatpush.msra.mxu0 %v4705_v48 }
0x1ee5   :  { %1559 = vmatpush.msra.mxu0 %v4711_v49 }
0x1ee6   :  { %v4049_v44 = vpop.eup %4048 }
0x1ee7   :  { %v1120_v33 = vadd.f32 1.0, %v4049_v44 }
0x1ee9   :  { %4050 = vrcp.f32 %v1120_v33  ;;  %v1132_v57 = vand.u32 2147483648, %v1120_v33  ;;  %v1130_v59 = vand.u32 2147483647, %v1120_v33  ;;  %vm1126_vm13 = vweird.f32 %v1120_v33 }
0x1eea   :  { %4052 = vtanh.f32 %v1114_v54 }
0x1eeb   :  { %v1133_v61 = vor.u32 1.1754944e-38, %v1132_v57  ;;  %vm1131_vm15 = vcmp.eq.f32.partialorder %v1130_v59, 8.507059e+37 }
0x1eef   :  { %v4051_v34 = vpop.eup %4050 }
0x1ef0   :  { %v1122_v56 = vmul.f32 %v4051_v34, %v1120_v33  ;;  %vm1127_vm12 = vweird.f32 %v4051_v34  ;;  %v4053_v8 = vpop.eup %4052 }
0x1ef1   :  { %vm1128_vm14 = vmor %vm1126_vm13, %vm1127_vm12 }
0x1ef2   :  { %v1123_v35 = vsub.f32 1.0, %v1122_v56 }
0x1ef4   :  { %v1124_v58 = vmul.f32 %v4051_v34, %v1123_v35 }
0x1ef6   :  { %v1125_v60 = vadd.f32 %v4051_v34, %v1124_v58 }
0x1ef8   :  { %v1129_v62 = vsel %vm1128_vm14, %v4051_v34, %v1125_v60 }
0x1ef9   :  { %v1134_v9 = vsel %vm1131_vm15, %v1133_v61, %v1129_v62 }
0x1efa   :  { %v1136_v10 = vsel %vm27_vm3, %v4053_v8, %v1134_v9 }
0x1efb   :  { %1138 = vrot.lane.b32.xlu2 %v1136_v10, %s4320_s9 }
0x1f55   :  { %v1139_v11 = vpop.permute.xlu2 %1138 }
0x1f56   :  { %v1141_v12 = vmul.f32 %v1139_v11, %v1136_v10 }
0x1f58   :  { %4054 = vtanh.f32 %v1141_v12  ;;  %v1201_v1 = vrot.slane %v1141_v12, 7 }
0x1f5e   :  { %v4055_v0 = vpop.eup %4054 }
0x1f5f   :  { %1144 = vrot.lane.b32.xlu0 %v4055_v0, %s4321_s10 }
0x1f67   :  { %1202 = vrot.lane.b32.xlu0 %v1201_v1, %s4320_s9  ;;  %v3747_v1 = vld [vmem:[%s5427_s2 + $0x58] sm:$0xff] }
0x1f68   :  { %1314 = vmatpush.msrb.mxu1 %v3747_v1 }
0x1fd1   :  { %v1145_v7 = vpop.permute.xlu0 %1144 }
0x1fd2   :  { %v1147_v16 = vmul.f32 %v1145_v7, %v1136_v10  ;;  %v3746_v7 = vld [vmem:[%s5427_s2 + $0x50] sm:$0xff] }
0x1fd3   :  { %1315 = vmatpush.msrb.mxu1 %v3746_v7 }
0x1fd4   :  { %1149 = vrot.lane.b32.xlu1 %v1147_v16, %s4321_s10  ;;  %v3745_v16 = vld [vmem:[%s5427_s2 + $0x48] sm:$0xff] }
0x1fd5   :  { %1316 = vmatpush.msrb.mxu1 %v3745_v16 }
0x1fd9   :  { %v1203_v42 = vpop.permute.xlu0 %1202 }
0x2046   :  { %v1150_v17 = vpop.permute.xlu1 %1149 }
0x2047   :  { %1152 = vst.msk [vmem:[#allocation2] sm:$0x1] %vm101_vm6, %v1150_v17  ;;  %3738 = vmatmul.msk.f32.vlgmr.msrb.gmra.mxu3 %vm41_vm0, %v1150_v17  ;;  %v3744_v17 = vld [vmem:[%s5427_s2 + $0x40] sm:$0xff] }
0x2048   :  { %1762 = vmatpush.msrb.mxu3 %v3747_v1  ;;  %1317 = vmatpush.msrb.mxu1 %v3744_v17 }
0x204a   :  { %1763 = vmatpush.msrb.mxu3 %v3746_v7  ;;  %1615 = vmatpush.msra.mxu1 %v4731_v13 }
0x204c   :  { %1764 = vmatpush.msrb.mxu3 %v3745_v16  ;;  %1616 = vmatpush.msra.mxu1 %v4736_v6 }
0x204e   :  { %1765 = vmatpush.msrb.mxu3 %v3744_v17  ;;  %1617 = vmatpush.msra.mxu1 %v4742_v4 }
0x2050   :  { %1618 = vmatpush.msra.mxu1 %v4748_v14 }
0x20ca   :  { %v1172_v18 = vpop.f32.mrf.mxu3 }
0x20cb   :  { %v1176_v19 = vrot.slane %v1172_v18, 7 }
0x20cd   :  { %v1178_v20 = vadd.f32 %v1176_v19, %v1114_v54 }
0x20cf   :  { %v3739_v21 = vmul.f32 -1.442695, %v1178_v20 }
0x20d1   :  { %4056 = vpow2.f32 %v3739_v21 }
0x20d7   :  { %v4057_v2 = vpop.eup %4056 }
0x20d8   :  { %v1183_v3 = vadd.f32 1.0, %v4057_v2 }
0x20da   :  { %4058 = vrcp.f32 %v1183_v3  ;;  %v1195_v23 = vand.u32 2147483648, %v1183_v3  ;;  %v1193_v25 = vand.u32 2147483647, %v1183_v3  ;;  %vm1189_vm2 = vweird.f32 %v1183_v3 }
0x20db   :  { %4060 = vtanh.f32 %v1178_v20 }
0x20dc   :  { %v1196_v27 = vor.u32 1.1754944e-38, %v1195_v23  ;;  %vm1194_vm5 = vcmp.eq.f32.partialorder %v1193_v25, 8.507059e+37 }
0x20e0   :  { %v4059_v63 = vpop.eup %4058 }
0x20e1   :  { %v1185_v22 = vmul.f32 %v4059_v63, %v1183_v3  ;;  %vm1190_vm1 = vweird.f32 %v4059_v63  ;;  %v4061_v37 = vpop.eup %4060 }
0x20e2   :  { %vm1191_vm4 = vmor %vm1189_vm2, %vm1190_vm1 }
0x20e3   :  { %v1186_v5 = vsub.f32 1.0, %v1185_v22 }
0x20e5   :  { %v1187_v24 = vmul.f32 %v4059_v63, %v1186_v5 }
0x20e7   :  { %v1188_v26 = vadd.f32 %v4059_v63, %v1187_v24 }
0x20e9   :  { %v1192_v28 = vsel %vm1191_vm4, %v4059_v63, %v1188_v26 }
0x20ea   :  { %v1197_v38 = vsel %vm1194_vm5, %v1196_v27, %v1192_v28 }
0x20eb   :  { %v1199_v39 = vsel %vm27_vm3, %v4061_v37, %v1197_v38 }
0x20ec   :  { %1207 = vrot.lane.b32.xlu2 %v1199_v39, %s4320_s9  ;;  %v1205_v43 = vmul.f32 %v1203_v42, %v1199_v39 }
0x2146   :  { %v1208_v40 = vpop.permute.xlu2 %1207 }
0x2147   :  { %v1210_v41 = vmul.f32 %v1208_v40, %v1199_v39 }
0x2149   :  { %1212 = vrot.lane.b32.xlu1 %v1210_v41, %s4320_s9 }
0x21bb   :  { %v1213_v29 = vpop.permute.xlu1 %1212 }
0x21bc   :  { %v1215_v30 = vadd.f32 %v1213_v29, %v1205_v43 }
0x21be   :  { %4062 = vtanh.f32 %v1215_v30 }
0x21c4   :  { %v4063_v31 = vpop.eup %4062 }
0x21c5   :  { %1218 = vrot.lane.b32.xlu2 %v4063_v31, %s4320_s9 }
0x221f   :  { %v1219_v32 = vpop.permute.xlu2 %1218 }
0x2220   :  { %v1221_v36 = vmul.f32 %v1219_v32, %v1199_v39 }
0x2222   :  { %1223 = vrot.lane.b32.xlu0 %v1221_v36, %s4321_s10 }
0x2294   :  { %v1224_v53 = vpop.permute.xlu0 %1223 }
0x2295   :  { %1226 = vst.msk [vmem:[#allocation2] sm:$0x2] %vm176_vm11, %v1224_v53 }
0x229c   :  { %v1227_v54 = vld [vmem:[#allocation2] sm:$0x3] }
0x229d   :  { %3749 = vmatmul.msk.f32.vlgmr.msrb.gmra.mxu0 %vm41_vm0, %v1227_v54  ;;  %v3920_v54 = vld [vmem:[%s5426_s3] ss:$0 sm:$0xff] }
0x231a   :  { %v1260_v44 = vpop.f32.mrf.mxu0 }
0x231b   :  { %v1261_v33 = vadd.f32 %v3919_v55, %v1260_v44 }
0x231d   :  { %v3750_v34 = vmul.f32 -1.442695, %v1261_v33 }
0x231f   :  { %4064 = vpow2.f32 %v3750_v34 }
0x2325   :  { %v4065_v46 = vpop.eup %4064 }
0x2326   :  { %v1267_v47 = vadd.f32 1.0, %v4065_v46 }
0x2328   :  { %4066 = vrcp.f32 %v1267_v47  ;;  %v1279_v35 = vand.u32 2147483648, %v1267_v47  ;;  %v1277_v58 = vand.u32 2147483647, %v1267_v47  ;;  %vm1273_vm8 = vweird.f32 %v1267_v47 }
0x2329   :  { %4068 = vtanh.f32 %v1261_v33 }
0x232a   :  { %v1280_v60 = vor.u32 1.1754944e-38, %v1279_v35  ;;  %vm1278_vm10 = vcmp.eq.f32.partialorder %v1277_v58, 8.507059e+37 }
0x232e   :  { %v4067_v48 = vpop.eup %4066 }
0x232f   :  { %v1269_v56 = vmul.f32 %v4067_v48, %v1267_v47  ;;  %vm1274_vm7 = vweird.f32 %v4067_v48  ;;  %v4069_v62 = vpop.eup %4068 }
0x2330   :  { %vm1275_vm9 = vmor %vm1273_vm8, %vm1274_vm7 }
0x2331   :  { %v1270_v49 = vsub.f32 1.0, %v1269_v56 }
0x2333   :  { %v1271_v57 = vmul.f32 %v4067_v48, %v1270_v49 }
0x2335   :  { %v1272_v59 = vadd.f32 %v4067_v48, %v1271_v57 }
0x2337   :  { %v1276_v61 = vsel %vm1275_vm9, %v4067_v48, %v1272_v59 }
0x2338   :  { %v1281_v8 = vsel %vm1278_vm10, %v1280_v60, %v1276_v61 }
0x2339   :  { %v1283_v9 = vsel %vm27_vm3, %v4069_v62, %v1281_v8 }
0x233a   :  { %1285 = vrot.lane.b32.xlu1 %v1283_v9, %s4320_s9 }
0x23ac   :  { %v1286_v10 = vpop.permute.xlu1 %1285 }
0x23ad   :  { %v1288_v11 = vmul.f32 %v1286_v10, %v1283_v9 }
0x23af   :  { %4070 = vtanh.f32 %v1288_v11  ;;  %v1348_v0 = vrot.slane %v1288_v11, 7 }
0x23b5   :  { %v4071_v12 = vpop.eup %4070 }
0x23b6   :  { %1291 = vrot.lane.b32.xlu2 %v4071_v12, %s4321_s10 }
0x23be   :  { %1349 = vrot.lane.b32.xlu2 %v1348_v0, %s4320_s9 }
0x2410   :  { %v1292_v18 = vpop.permute.xlu2 %1291 }
0x2411   :  { %v1294_v19 = vmul.f32 %v1292_v18, %v1283_v9 }
0x2413   :  { %1296 = vrot.lane.b32.xlu0 %v1294_v19, %s4321_s10 }
0x2418   :  { %v1350_v41 = vpop.permute.xlu2 %1349 }
0x2485   :  { %v1297_v20 = vpop.permute.xlu0 %1296 }
0x2486   :  { %1299 = vst.msk [vmem:[#allocation2] sm:$0x1] %vm101_vm6, %v1297_v20  ;;  %3751 = vmatmul.msk.f32.vlgmr.msrb.gmra.mxu1 %vm41_vm0, %v1297_v20 }
0x2503   :  { %v1319_v21 = vpop.f32.mrf.mxu1 }
0x2504   :  { %v1323_v2 = vrot.slane %v1319_v21, 7 }
0x2506   :  { %v1325_v3 = vadd.f32 %v1323_v2, %v1261_v33 }
0x2508   :  { %v3752_v63 = vmul.f32 -1.442695, %v1325_v3 }
0x250a   :  { %4072 = vpow2.f32 %v3752_v63 }
0x2510   :  { %v4073_v13 = vpop.eup %4072 }
0x2511   :  { %v1330_v6 = vadd.f32 1.0, %v4073_v13 }
0x2513   :  { %4074 = vrcp.f32 %v1330_v6  ;;  %v1342_v5 = vand.u32 2147483648, %v1330_v6  ;;  %v1340_v24 = vand.u32 2147483647, %v1330_v6  ;;  %vm1336_vm13 = vweird.f32 %v1330_v6 }
0x2514   :  { %4076 = vtanh.f32 %v1325_v3 }
0x2515   :  { %v1343_v26 = vor.u32 1.1754944e-38, %v1342_v5  ;;  %vm1341_vm15 = vcmp.eq.f32.partialorder %v1340_v24, 8.507059e+37 }
0x2519   :  { %v4075_v4 = vpop.eup %4074 }
0x251a   :  { %v1332_v22 = vmul.f32 %v4075_v4, %v1330_v6  ;;  %vm1337_vm12 = vweird.f32 %v4075_v4  ;;  %v4077_v28 = vpop.eup %4076 }
0x251b   :  { %vm1338_vm14 = vmor %vm1336_vm13, %vm1337_vm12 }
0x251c   :  { %v1333_v14 = vsub.f32 1.0, %v1332_v22 }
0x251e   :  { %v1334_v23 = vmul.f32 %v4075_v4, %v1333_v14 }
0x2520   :  { %v1335_v25 = vadd.f32 %v4075_v4, %v1334_v23 }
0x2522   :  { %v1339_v27 = vsel %vm1338_vm14, %v4075_v4, %v1335_v25 }
0x2523   :  { %v1344_v37 = vsel %vm1341_vm15, %v1343_v26, %v1339_v27 }
0x2524   :  { %v1346_v38 = vsel %vm27_vm3, %v4077_v28, %v1344_v37 }
0x2525   :  { %1354 = vrot.lane.b32.xlu1 %v1346_v38, %s4320_s9  ;;  %v1352_v42 = vmul.f32 %v1350_v41, %v1346_v38 }
0x2597   :  { %v1355_v39 = vpop.permute.xlu1 %1354 }
0x2598   :  { %v1357_v40 = vmul.f32 %v1355_v39, %v1346_v38 }
0x259a   :  { %1359 = vrot.lane.b32.xlu0 %v1357_v40, %s4320_s9 }
0x260c   :  { %v1360_v43 = vpop.permute.xlu0 %1359 }
0x260d   :  { %v1362_v29 = vadd.f32 %v1360_v43, %v1352_v42 }
0x260f   :  { %4078 = vtanh.f32 %v1362_v29 }
0x2615   :  { %v4079_v30 = vpop.eup %4078 }
0x2616   :  { %1365 = vrot.lane.b32.xlu1 %v4079_v30, %s4320_s9  ;;  %v3921_v30 = vld [vmem:[%s5426_s3 + $0x1] ss:$0 sm:$0xff] }
0x2688   :  { %v1366_v31 = vpop.permute.xlu1 %1365 }
0x2689   :  { %v1368_v32 = vmul.f32 %v1366_v31, %v1346_v38 }
0x268b   :  { %1370 = vrot.lane.b32.xlu2 %v1368_v32, %s4321_s10 }
0x26e5   :  { %v1371_v36 = vpop.permute.xlu2 %1370 }
0x26e6   :  { %1373 = vst.msk [vmem:[#allocation2] sm:$0x2] %vm176_vm11, %v1371_v36 }
0x26ed   :  { %v1374_v50 = vld [vmem:[#allocation2] sm:$0x3] }
0x26ee   :  { %1375 = vst.msk [vmem:[#allocation3 + $0x2] sm:$0x1] %vm101_vm6, %v1374_v50  ;;  %v1377_v51 = vsub.f32 %v3722_v45, %v1374_v50 }
0x26ef   :  { %1376 = vst.msk [vmem:[#allocation3 + $0x9] sm:$0x2] %vm176_vm11, %v1374_v50 }
0x26f0   :  { %v1378_v52 = vmul.f32 0.5, %v1377_v51 }
0x26f2   :  { %v1379_v53 = vadd.f32 %v1378_v52, %v1374_v50 }
0x26f4   :  { %3754 = vmatmul.msk.f32.vlgmr.msra.gmra.mxu2 %vm41_vm0, %v1379_v53 }
0x2777   :  { %v1414_v55 = vpop.f32.mrf.mxu2 }
0x2778   :  { %v1415_v44 = vadd.f32 %v3920_v54, %v1414_v55 }
0x277a   :  { %v3755_v33 = vmul.f32 -1.442695, %v1415_v44 }
0x277c   :  { %4080 = vpow2.f32 %v3755_v33 }
0x2782   :  { %v4081_v34 = vpop.eup %4080 }
0x2783   :  { %v1421_v46 = vadd.f32 1.0, %v4081_v34 }
0x2785   :  { %4082 = vrcp.f32 %v1421_v46  ;;  %v1433_v49 = vand.u32 2147483648, %v1421_v46  ;;  %v1431_v57 = vand.u32 2147483647, %v1421_v46  ;;  %vm1427_vm2 = vweird.f32 %v1421_v46 }
0x2786   :  { %4084 = vtanh.f32 %v1415_v44 }
0x2787   :  { %v1434_v59 = vor.u32 1.1754944e-38, %v1433_v49  ;;  %vm1432_vm5 = vcmp.eq.f32.partialorder %v1431_v57, 8.507059e+37 }
0x278b   :  { %v4083_v47 = vpop.eup %4082 }
0x278c   :  { %v1423_v48 = vmul.f32 %v4083_v47, %v1421_v46  ;;  %vm1428_vm1 = vweird.f32 %v4083_v47  ;;  %v4085_v61 = vpop.eup %4084 }
0x278d   :  { %vm1429_vm4 = vmor %vm1427_vm2, %vm1428_vm1 }
0x278e   :  { %v1424_v56 = vsub.f32 1.0, %v1423_v48 }
0x2790   :  { %v1425_v35 = vmul.f32 %v4083_v47, %v1424_v56 }
0x2792   :  { %v1426_v58 = vadd.f32 %v4083_v47, %v1425_v35 }
0x2794   :  { %v1430_v60 = vsel %vm1429_vm4, %v4083_v47, %v1426_v58 }
0x2795   :  { %v1435_v62 = vsel %vm1432_vm5, %v1434_v59, %v1430_v60 }
0x2796   :  { %v1437_v8 = vsel %vm27_vm3, %v4085_v61, %v1435_v62 }
0x2797   :  { %1439 = vrot.lane.b32.xlu0 %v1437_v8, %s4320_s9 }
0x2809   :  { %v1440_v9 = vpop.permute.xlu0 %1439 }
0x280a   :  { %v1442_v10 = vmul.f32 %v1440_v9, %v1437_v8 }
0x280c   :  { %4086 = vtanh.f32 %v1442_v10  ;;  %v1502_v12 = vrot.slane %v1442_v10, 7 }
0x2812   :  { %v4087_v11 = vpop.eup %4086 }
0x2813   :  { %1445 = vrot.lane.b32.xlu1 %v4087_v11, %s4321_s10 }
0x281b   :  { %1503 = vrot.lane.b32.xlu1 %v1502_v12, %s4320_s9 }
0x2885   :  { %v1446_v0 = vpop.permute.xlu1 %1445 }
0x2886   :  { %v1448_v1 = vmul.f32 %v1446_v0, %v1437_v8 }
0x2888   :  { %1450 = vrot.lane.b32.xlu2 %v1448_v1, %s4321_s10 }
0x288d   :  { %v1504_v28 = vpop.permute.xlu1 %1503 }
0x28e2   :  { %v1451_v7 = vpop.permute.xlu2 %1450 }
0x28e3   :  { %1453 = vst.msk [vmem:[#allocation2] sm:$0x1] %vm101_vm6, %v1451_v7  ;;  %3756 = vmatmul.msk.f32.vlgmr.msra.gmra.mxu3 %vm41_vm0, %v1451_v7 }
0x2966   :  { %v1473_v16 = vpop.f32.mrf.mxu3 }
0x2967   :  { %v1477_v17 = vrot.slane %v1473_v16, 7 }
0x2969   :  { %v1479_v18 = vadd.f32 %v1477_v17, %v1415_v44 }
0x296b   :  { %v3757_v19 = vmul.f32 -1.442695, %v1479_v18 }
0x296d   :  { %4088 = vpow2.f32 %v3757_v19 }
0x2973   :  { %v4089_v20 = vpop.eup %4088 }
0x2974   :  { %v1484_v21 = vadd.f32 1.0, %v4089_v20 }
0x2976   :  { %4090 = vrcp.f32 %v1484_v21  ;;  %v1496_v13 = vand.u32 2147483648, %v1484_v21  ;;  %v1494_v4 = vand.u32 2147483647, %v1484_v21  ;;  %vm1490_vm8 = vweird.f32 %v1484_v21 }
0x2977   :  { %4092 = vtanh.f32 %v1479_v18 }
0x2978   :  { %v1497_v14 = vor.u32 1.1754944e-38, %v1496_v13  ;;  %vm1495_vm10 = vcmp.eq.f32.partialorder %v1494_v4, 8.507059e+37 }
0x297c   :  { %v4091_v2 = vpop.eup %4090 }
0x297d   :  { %v1486_v3 = vmul.f32 %v4091_v2, %v1484_v21  ;;  %vm1491_vm7 = vweird.f32 %v4091_v2  ;;  %v4093_v23 = vpop.eup %4092 }
0x297e   :  { %vm1492_vm9 = vmor %vm1490_vm8, %vm1491_vm7 }
0x297f   :  { %v1487_v63 = vsub.f32 1.0, %v1486_v3 }
0x2981   :  { %v1488_v6 = vmul.f32 %v4091_v2, %v1487_v63 }
0x2983   :  { %v1489_v22 = vadd.f32 %v4091_v2, %v1488_v6 }
0x2985   :  { %v1493_v5 = vsel %vm1492_vm9, %v4091_v2, %v1489_v22 }
0x2986   :  { %v1498_v24 = vsel %vm1495_vm10, %v1497_v14, %v1493_v5 }
0x2987   :  { %v1500_v25 = vsel %vm27_vm3, %v4093_v23, %v1498_v24 }
0x2988   :  { %1508 = vrot.lane.b32.xlu0 %v1500_v25, %s4320_s9  ;;  %v1506_v37 = vmul.f32 %v1504_v28, %v1500_v25  ;;  %v3922_v28 = vld [vmem:[%s5426_s3 + $0x2] ss:$0 sm:$0xff] }
0x29fa   :  { %v1509_v26 = vpop.permute.xlu0 %1508 }
0x29fb   :  { %v1511_v27 = vmul.f32 %v1509_v26, %v1500_v25 }
0x29fd   :  { %1513 = vrot.lane.b32.xlu2 %v1511_v27, %s4320_s9 }
0x2a57   :  { %v1514_v38 = vpop.permute.xlu2 %1513 }
0x2a58   :  { %v1516_v39 = vadd.f32 %v1514_v38, %v1506_v37 }
0x2a5a   :  { %4094 = vtanh.f32 %v1516_v39 }
0x2a60   :  { %v4095_v40 = vpop.eup %4094 }
0x2a61   :  { %1519 = vrot.lane.b32.xlu0 %v4095_v40, %s4320_s9 }
0x2ad3   :  { %v1520_v41 = vpop.permute.xlu0 %1519 }
0x2ad4   :  { %v1522_v42 = vmul.f32 %v1520_v41, %v1500_v25 }
0x2ad6   :  { %1524 = vrot.lane.b32.xlu1 %v1522_v42, %s4321_s10 }
0x2b48   :  { %v1525_v43 = vpop.permute.xlu1 %1524 }
0x2b49   :  { %1527 = vst.msk [vmem:[#allocation2] sm:$0x2] %vm176_vm11, %v1525_v43 }
0x2b50   :  { %v1528_v29 = vld [vmem:[#allocation2] sm:$0x3] }
0x2b51   :  { %3767 = vmatmul.msk.f32.vlgmr.msra.gmra.mxu0 %vm41_vm0, %v1528_v29 }
0x2bce   :  { %v1561_v31 = vpop.f32.mrf.mxu0 }
0x2bcf   :  { %v1562_v32 = vadd.f32 %v3921_v30, %v1561_v31 }
0x2bd1   :  { %v3768_v36 = vmul.f32 -1.442695, %v1562_v32 }
0x2bd3   :  { %4096 = vpow2.f32 %v3768_v36 }
0x2bd9   :  { %v4097_v45 = vpop.eup %4096 }
0x2bda   :  { %v1568_v50 = vadd.f32 1.0, %v4097_v45 }
0x2bdc   :  { %4098 = vrcp.f32 %v1568_v50  ;;  %v1580_v54 = vand.u32 2147483648, %v1568_v50  ;;  %v1578_v44 = vand.u32 2147483647, %v1568_v50  ;;  %vm1574_vm13 = vweird.f32 %v1568_v50 }
0x2bdd   :  { %4100 = vtanh.f32 %v1562_v32 }
0x2bde   :  { %v1581_v34 = vor.u32 1.1754944e-38, %v1580_v54  ;;  %vm1579_vm15 = vcmp.eq.f32.partialorder %v1578_v44, 8.507059e+37 }
0x2be2   :  { %v4099_v51 = vpop.eup %4098 }
0x2be3   :  { %v1570_v52 = vmul.f32 %v4099_v51, %v1568_v50  ;;  %vm1575_vm12 = vweird.f32 %v4099_v51  ;;  %v4101_v47 = vpop.eup %4100 }
0x2be4   :  { %vm1576_vm14 = vmor %vm1574_vm13, %vm1575_vm12 }
0x2be5   :  { %v1571_v53 = vsub.f32 1.0, %v1570_v52 }
0x2be7   :  { %v1572_v55 = vmul.f32 %v4099_v51, %v1571_v53 }
0x2be9   :  { %v1573_v33 = vadd.f32 %v4099_v51, %v1572_v55 }
0x2beb   :  { %v1577_v46 = vsel %vm1576_vm14, %v4099_v51, %v1573_v33 }
0x2bec   :  { %v1582_v48 = vsel %vm1579_vm15, %v1581_v34, %v1577_v46 }
0x2bed   :  { %v1584_v56 = vsel %vm27_vm3, %v4101_v47, %v1582_v48 }
0x2bee   :  { %1586 = vrot.lane.b32.xlu2 %v1584_v56, %s4320_s9 }
0x2c48   :  { %v1587_v49 = vpop.permute.xlu2 %1586 }
0x2c49   :  { %v1589_v35 = vmul.f32 %v1587_v49, %v1584_v56 }
0x2c4b   :  { %4102 = vtanh.f32 %v1589_v35  ;;  %v1649_v58 = vrot.slane %v1589_v35, 7 }
0x2c51   :  { %v4103_v57 = vpop.eup %4102 }
0x2c52   :  { %1592 = vrot.lane.b32.xlu0 %v4103_v57, %s4321_s10 }
0x2c5a   :  { %1650 = vrot.lane.b32.xlu0 %v1649_v58, %s4320_s9 }
0x2cc4   :  { %v1593_v59 = vpop.permute.xlu0 %1592 }
0x2cc5   :  { %v1595_v60 = vmul.f32 %v1593_v59, %v1584_v56 }
0x2cc7   :  { %1597 = vrot.lane.b32.xlu1 %v1595_v60, %s4321_s10 }
0x2ccc   :  { %v1651_v4 = vpop.permute.xlu0 %1650 }
0x2d39   :  { %v1598_v61 = vpop.permute.xlu1 %1597 }
0x2d3a   :  { %1600 = vst.msk [vmem:[#allocation2] sm:$0x1] %vm101_vm6, %v1598_v61  ;;  %3769 = vmatmul.msk.f32.vlgmr.msra.gmra.mxu1 %vm41_vm0, %v1598_v61 }
0x2db7   :  { %v1620_v62 = vpop.f32.mrf.mxu1 }
0x2db8   :  { %v1624_v8 = vrot.slane %v1620_v62, 7 }
0x2dba   :  { %v1626_v9 = vadd.f32 %v1624_v8, %v1562_v32 }
0x2dbc   :  { %v3770_v10 = vmul.f32 -1.442695, %v1626_v9 }
0x2dbe   :  { %4104 = vpow2.f32 %v3770_v10 }
0x2dc4   :  { %v4105_v11 = vpop.eup %4104 }
0x2dc5   :  { %v1631_v12 = vadd.f32 1.0, %v4105_v11 }
0x2dc7   :  { %4106 = vrcp.f32 %v1631_v12  ;;  %v1643_v16 = vand.u32 2147483648, %v1631_v12  ;;  %v1641_v18 = vand.u32 2147483647, %v1631_v12  ;;  %vm1637_vm2 = vweird.f32 %v1631_v12 }
0x2dc8   :  { %4108 = vtanh.f32 %v1626_v9 }
0x2dc9   :  { %v1644_v20 = vor.u32 1.1754944e-38, %v1643_v16  ;;  %vm1642_vm5 = vcmp.eq.f32.partialorder %v1641_v18, 8.507059e+37 }
0x2dcd   :  { %v4107_v0 = vpop.eup %4106 }
0x2dce   :  { %v1633_v1 = vmul.f32 %v4107_v0, %v1631_v12  ;;  %vm1638_vm1 = vweird.f32 %v4107_v0  ;;  %v4109_v2 = vpop.eup %4108 }
0x2dcf   :  { %vm1639_vm4 = vmor %vm1637_vm2, %vm1638_vm1 }
0x2dd0   :  { %v1634_v7 = vsub.f32 1.0, %v1633_v1 }
0x2dd2   :  { %v1635_v17 = vmul.f32 %v4107_v0, %v1634_v7 }
0x2dd4   :  { %v1636_v19 = vadd.f32 %v4107_v0, %v1635_v17 }
0x2dd6   :  { %v1640_v21 = vsel %vm1639_vm4, %v4107_v0, %v1636_v19 }
0x2dd7   :  { %v1645_v3 = vsel %vm1642_vm5, %v1644_v20, %v1640_v21 }
0x2dd8   :  { %v1647_v63 = vsel %vm27_vm3, %v4109_v2, %v1645_v3 }
0x2dd9   :  { %1655 = vrot.lane.b32.xlu2 %v1647_v63, %s4320_s9  ;;  %v1653_v22 = vmul.f32 %v1651_v4, %v1647_v63  ;;  %v4892_v4 = vld [vmem:[%s5424_s1 + $0x8] sm:$0xff] }
0x2e33   :  { %v1656_v13 = vpop.permute.xlu2 %1655 }
0x2e34   :  { %v1658_v6 = vmul.f32 %v1656_v13, %v1647_v63  ;;  %v4881_v13 = vld [vmem:[%s5424_s1 + $0x18] sm:$0xff] }
0x2e35   :  { %1857 = vmatpush.msrb.mxu0 %v4881_v13 }
0x2e36   :  { %1660 = vrot.lane.b32.xlu1 %v1658_v6, %s4320_s9  ;;  %v4887_v6 = vld [vmem:[%s5424_s1 + $0x10] sm:$0xff] }
0x2e37   :  { %1858 = vmatpush.msrb.mxu0 %v4887_v6 }
0x2e39   :  { %1859 = vmatpush.msrb.mxu0 %v4892_v4 }
0x2ea8   :  { %v1661_v14 = vpop.permute.xlu1 %1660 }
0x2ea9   :  { %v1663_v5 = vadd.f32 %v1661_v14, %v1653_v22  ;;  %v4898_v22 = vld [vmem:[%s5424_s1] sm:$0xff] }
0x2eaa   :  { %1860 = vmatpush.msrb.mxu0 %v4898_v22 }
0x2eab   :  { %4110 = vtanh.f32 %v1663_v5  ;;  %v3753_v5 = vld [vmem:[%s5425_s0 + $0x6] sm:$0x3] }
0x2eb1   :  { %v4111_v23 = vpop.eup %4110 }
0x2eb2   :  { %1666 = vrot.lane.b32.xlu2 %v4111_v23, %s4320_s9 }
0x2f0c   :  { %v1667_v24 = vpop.permute.xlu2 %1666 }
0x2f0d   :  { %v1669_v25 = vmul.f32 %v1667_v24, %v1647_v63 }
0x2f0f   :  { %1671 = vrot.lane.b32.xlu0 %v1669_v25, %s4321_s10 }
0x2f81   :  { %v1672_v26 = vpop.permute.xlu0 %1671 }
0x2f82   :  { %1674 = vst.msk [vmem:[#allocation2] sm:$0x2] %vm176_vm11, %v1672_v26 }
0x2f89   :  { %v1675_v27 = vld [vmem:[#allocation2] sm:$0x3] }
0x2f8a   :  { %3780 = vmatmul.msk.f32.vlgmr.msrb.gmra.mxu2 %vm41_vm0, %v1675_v27  ;;  %v3923_v27 = vld [vmem:[%s5426_s3] ss:$0 sm:$0xff] }
0x300d   :  { %v1708_v37 = vpop.f32.mrf.mxu2 }
0x300e   :  { %v1709_v38 = vadd.f32 %v3922_v28, %v1708_v37 }
0x3010   :  { %v3781_v39 = vmul.f32 -1.442695, %v1709_v38 }
0x3012   :  { %4112 = vpow2.f32 %v3781_v39 }
0x3018   :  { %v4113_v40 = vpop.eup %4112 }
0x3019   :  { %v1715_v41 = vadd.f32 1.0, %v4113_v40 }
0x301b   :  { %4114 = vrcp.f32 %v1715_v41  ;;  %v1727_v30 = vand.u32 2147483648, %v1715_v41  ;;  %v1725_v32 = vand.u32 2147483647, %v1715_v41  ;;  %vm1721_vm8 = vweird.f32 %v1715_v41 }
0x301c   :  { %4116 = vtanh.f32 %v1709_v38 }
0x301d   :  { %v1728_v45 = vor.u32 1.1754944e-38, %v1727_v30  ;;  %vm1726_vm10 = vcmp.eq.f32.partialorder %v1725_v32, 8.507059e+37 }
0x3021   :  { %v4115_v42 = vpop.eup %4114 }
0x3022   :  { %v1717_v43 = vmul.f32 %v4115_v42, %v1715_v41  ;;  %vm1722_vm7 = vweird.f32 %v4115_v42  ;;  %v4117_v51 = vpop.eup %4116 }
0x3023   :  { %vm1723_vm9 = vmor %vm1721_vm8, %vm1722_vm7 }
0x3024   :  { %v1718_v29 = vsub.f32 1.0, %v1717_v43 }
0x3026   :  { %v1719_v31 = vmul.f32 %v4115_v42, %v1718_v29 }
0x3028   :  { %v1720_v36 = vadd.f32 %v4115_v42, %v1719_v31 }
0x302a   :  { %v1724_v50 = vsel %vm1723_vm9, %v4115_v42, %v1720_v36 }
0x302b   :  { %v1729_v52 = vsel %vm1726_vm10, %v1728_v45, %v1724_v50 }
0x302c   :  { %v1731_v53 = vsel %vm27_vm3, %v4117_v51, %v1729_v52 }
0x302d   :  { %1733 = vrot.lane.b32.xlu1 %v1731_v53, %s4320_s9 }
0x309f   :  { %v1734_v54 = vpop.permute.xlu1 %1733 }
0x30a0   :  { %v1736_v55 = vmul.f32 %v1734_v54, %v1731_v53 }
0x30a2   :  { %4118 = vtanh.f32 %v1736_v55  ;;  %v1796_v33 = vrot.slane %v1736_v55, 7 }
0x30a8   :  { %v4119_v44 = vpop.eup %4118 }
0x30a9   :  { %1739 = vrot.lane.b32.xlu2 %v4119_v44, %s4321_s10 }
0x30b1   :  { %1797 = vrot.lane.b32.xlu2 %v1796_v33, %s4320_s9  ;;  %v4920_v33 = vld [vmem:[%s5427_s2 + $0x18] sm:$0xff] }
0x30b2   :  { %1916 = vmatpush.msrb.mxu1 %v4920_v33 }
0x3103   :  { %v1740_v34 = vpop.permute.xlu2 %1739 }
0x3104   :  { %v1742_v46 = vmul.f32 %v1740_v34, %v1731_v53  ;;  %v4925_v34 = vld [vmem:[%s5427_s2 + $0x10] sm:$0xff] }
0x3105   :  { %1917 = vmatpush.msrb.mxu1 %v4925_v34 }
0x3106   :  { %1744 = vrot.lane.b32.xlu0 %v1742_v46, %s4321_s10  ;;  %v4931_v46 = vld [vmem:[%s5427_s2 + $0x8] sm:$0xff] }
0x3107   :  { %1918 = vmatpush.msrb.mxu1 %v4931_v46 }
0x310b   :  { %v1798_v18 = vpop.permute.xlu2 %1797 }
0x3178   :  { %v1745_v47 = vpop.permute.xlu0 %1744 }
0x3179   :  { %1747 = vst.msk [vmem:[#allocation2] sm:$0x1] %vm101_vm6, %v1745_v47  ;;  %3782 = vmatmul.msk.f32.vlgmr.msrb.gmra.mxu3 %vm41_vm0, %v1745_v47  ;;  %v4937_v47 = vld [vmem:[%s5427_s2] sm:$0xff] }
0x317a   :  { %1919 = vmatpush.msrb.mxu1 %v4937_v47 }
0x31fc   :  { %v1767_v48 = vpop.f32.mrf.mxu3 }
0x31fd   :  { %v1771_v56 = vrot.slane %v1767_v48, 7 }
0x31ff   :  { %v1773_v49 = vadd.f32 %v1771_v56, %v1709_v38 }
0x3201   :  { %v3783_v35 = vmul.f32 -1.442695, %v1773_v49 }
0x3203   :  { %4120 = vpow2.f32 %v3783_v35 }
0x3209   :  { %v4121_v57 = vpop.eup %4120 }
0x320a   :  { %v1778_v58 = vadd.f32 1.0, %v4121_v57 }
0x320c   :  { %4122 = vrcp.f32 %v1778_v58  ;;  %v1790_v62 = vand.u32 2147483648, %v1778_v58  ;;  %v1788_v9 = vand.u32 2147483647, %v1778_v58  ;;  %vm1784_vm13 = vweird.f32 %v1778_v58 }
0x320d   :  { %4124 = vtanh.f32 %v1773_v49 }
0x320e   :  { %v1791_v11 = vor.u32 1.1754944e-38, %v1790_v62  ;;  %vm1789_vm15 = vcmp.eq.f32.partialorder %v1788_v9, 8.507059e+37 }
0x3212   :  { %v4123_v59 = vpop.eup %4122 }
0x3213   :  { %v1780_v60 = vmul.f32 %v4123_v59, %v1778_v58  ;;  %vm1785_vm12 = vweird.f32 %v4123_v59  ;;  %v4125_v0 = vpop.eup %4124 }
0x3214   :  { %vm1786_vm14 = vmor %vm1784_vm13, %vm1785_vm12 }
0x3215   :  { %v1781_v61 = vsub.f32 1.0, %v1780_v60 }
0x3217   :  { %v1782_v8 = vmul.f32 %v4123_v59, %v1781_v61 }
0x3219   :  { %v1783_v10 = vadd.f32 %v4123_v59, %v1782_v8 }
0x321b   :  { %v1787_v12 = vsel %vm1786_vm14, %v4123_v59, %v1783_v10 }
0x321c   :  { %v1792_v1 = vsel %vm1789_vm15, %v1791_v11, %v1787_v12 }
0x321d   :  { %v1794_v7 = vsel %vm27_vm3, %v4125_v0, %v1792_v1 }
0x321e   :  { %1802 = vrot.lane.b32.xlu1 %v1794_v7, %s4320_s9  ;;  %v1800_v19 = vmul.f32 %v1798_v18, %v1794_v7 }
0x3290   :  { %v1803_v16 = vpop.permute.xlu1 %1802 }
0x3291   :  { %v1805_v17 = vmul.f32 %v1803_v16, %v1794_v7 }
0x3293   :  { %1807 = vrot.lane.b32.xlu0 %v1805_v17, %s4320_s9 }
0x3305   :  { %v1808_v20 = vpop.permute.xlu0 %1807 }
0x3306   :  { %v1810_v21 = vadd.f32 %v1808_v20, %v1800_v19 }
0x3308   :  { %4126 = vtanh.f32 %v1810_v21 }
0x330e   :  { %v4127_v2 = vpop.eup %4126 }
0x330f   :  { %1813 = vrot.lane.b32.xlu1 %v4127_v2, %s4320_s9 }
0x3381   :  { %v1814_v3 = vpop.permute.xlu1 %1813 }
0x3382   :  { %v1816_v63 = vmul.f32 %v1814_v3, %v1794_v7 }
0x3384   :  { %1818 = vrot.lane.b32.xlu2 %v1816_v63, %s4321_s10 }
0x33de   :  { %v1819_v14 = vpop.permute.xlu2 %1818 }
0x33df   :  { %1821 = vst.msk [vmem:[#allocation2] sm:$0x2] %vm176_vm11, %v1819_v14 }
0x33e6   :  { %v1822_v23 = vld [vmem:[#allocation2] sm:$0x3] }
0x33e7   :  { %1823 = vst.msk [vmem:[#allocation3 + $0x3] sm:$0x1] %vm101_vm6, %v1822_v23  ;;  %v1825_v24 = vsub.f32 %v3753_v5, %v1822_v23 }
0x33e8   :  { %1824 = vst.msk [vmem:[#allocation3 + $0xa] sm:$0x2] %vm176_vm11, %v1822_v23 }
0x33e9   :  { %v1826_v25 = vmul.f32 0.5, %v1825_v24  ;;  %v4953_v24 = vld [vmem:[%s5424_s1 + $0x38] sm:$0xff] }
0x33ea   :  { %2004 = vmatpush.msra.mxu2 %v4953_v24 }
0x33eb   :  { %v1827_v26 = vadd.f32 %v1826_v25, %v1822_v23  ;;  %v4959_v25 = vld [vmem:[%s5424_s1 + $0x30] sm:$0xff] }
0x33ec   :  { %2005 = vmatpush.msra.mxu2 %v4959_v25 }
0x33ed   :  { %3785 = vmatmul.msk.f32.vlgmr.msrb.gmra.mxu0 %vm41_vm0, %v1827_v26  ;;  %v4965_v26 = vld [vmem:[%s5424_s1 + $0x28] sm:$0xff] }
0x33ee   :  { %2006 = vmatpush.msra.mxu2 %v4965_v26 }
0x346a   :  { %v1862_v28 = vpop.f32.mrf.mxu0 }
0x346b   :  { %v1863_v37 = vadd.f32 %v3923_v27, %v1862_v28  ;;  %v4971_v27 = vld [vmem:[%s5424_s1 + $0x20] sm:$0xff] }
0x346c   :  { %2007 = vmatpush.msra.mxu2 %v4971_v27 }
0x346d   :  { %v3786_v38 = vmul.f32 -1.442695, %v1863_v37 }
0x346e   :  { %2305 = vmatpush.msrb.mxu2 %v4881_v13 }
0x346f   :  { %4128 = vpow2.f32 %v3786_v38  ;;  %v3924_v38 = vld [vmem:[%s5426_s3 + $0x1] ss:$0 sm:$0xff] }
0x3470   :  { %2306 = vmatpush.msrb.mxu2 %v4887_v6 }
0x3472   :  { %2307 = vmatpush.msrb.mxu2 %v4892_v4 }
0x3474   :  { %2308 = vmatpush.msrb.mxu2 %v4898_v22 }
0x3475   :  { %v4129_v39 = vpop.eup %4128 }
0x3476   :  { %v1869_v40 = vadd.f32 1.0, %v4129_v39 }
0x3478   :  { %4130 = vrcp.f32 %v1869_v40  ;;  %v1881_v29 = vand.u32 2147483648, %v1869_v40  ;;  %v1879_v31 = vand.u32 2147483647, %v1869_v40  ;;  %vm1875_vm2 = vweird.f32 %v1869_v40 }
0x3479   :  { %4132 = vtanh.f32 %v1863_v37 }
0x347a   :  { %v1882_v36 = vor.u32 1.1754944e-38, %v1881_v29  ;;  %vm1880_vm5 = vcmp.eq.f32.partialorder %v1879_v31, 8.507059e+37 }
0x347e   :  { %v4131_v41 = vpop.eup %4130 }
0x347f   :  { %v1871_v42 = vmul.f32 %v4131_v41, %v1869_v40  ;;  %vm1876_vm1 = vweird.f32 %v4131_v41  ;;  %v4133_v50 = vpop.eup %4132 }
0x3480   :  { %vm1877_vm4 = vmor %vm1875_vm2, %vm1876_vm1 }
0x3481   :  { %v1872_v43 = vsub.f32 1.0, %v1871_v42 }
0x3483   :  { %v1873_v30 = vmul.f32 %v4131_v41, %v1872_v43 }
0x3485   :  { %v1874_v32 = vadd.f32 %v4131_v41, %v1873_v30 }
0x3487   :  { %v1878_v45 = vsel %vm1877_vm4, %v4131_v41, %v1874_v32 }
0x3488   :  { %v1883_v51 = vsel %vm1880_vm5, %v1882_v36, %v1878_v45 }
0x3489   :  { %v1885_v52 = vsel %vm27_vm3, %v4133_v50, %v1883_v51 }
0x348a   :  { %1887 = vrot.lane.b32.xlu0 %v1885_v52, %s4320_s9 }
0x34fc   :  { %v1888_v53 = vpop.permute.xlu0 %1887 }
0x34fd   :  { %v1890_v54 = vmul.f32 %v1888_v53, %v1885_v52 }
0x34ff   :  { %4134 = vtanh.f32 %v1890_v54  ;;  %v1950_v44 = vrot.slane %v1890_v54, 7 }
0x3505   :  { %v4135_v55 = vpop.eup %4134 }
0x3506   :  { %1893 = vrot.lane.b32.xlu1 %v4135_v55, %s4321_s10 }
0x350e   :  { %1951 = vrot.lane.b32.xlu1 %v1950_v44, %s4320_s9  ;;  %v4991_v44 = vld [vmem:[%s5427_s2 + $0x38] sm:$0xff] }
0x350f   :  { %2063 = vmatpush.msra.mxu3 %v4991_v44 }
0x3578   :  { %v1894_v48 = vpop.permute.xlu1 %1893 }
0x3579   :  { %v1896_v56 = vmul.f32 %v1894_v48, %v1885_v52  ;;  %v4996_v48 = vld [vmem:[%s5427_s2 + $0x30] sm:$0xff] }
0x357a   :  { %2064 = vmatpush.msra.mxu3 %v4996_v48 }
0x357b   :  { %1898 = vrot.lane.b32.xlu2 %v1896_v56, %s4321_s10  ;;  %v5002_v56 = vld [vmem:[%s5427_s2 + $0x28] sm:$0xff] }
0x357c   :  { %2065 = vmatpush.msra.mxu3 %v5002_v56 }
0x3580   :  { %v1952_v21 = vpop.permute.xlu1 %1951 }
0x35d5   :  { %v1899_v49 = vpop.permute.xlu2 %1898 }
0x35d6   :  { %1901 = vst.msk [vmem:[#allocation2] sm:$0x1] %vm101_vm6, %v1899_v49  ;;  %3787 = vmatmul.msk.f32.vlgmr.msrb.gmra.mxu1 %vm41_vm0, %v1899_v49  ;;  %v5008_v49 = vld [vmem:[%s5427_s2 + $0x20] sm:$0xff] }
0x35d7   :  { %2066 = vmatpush.msra.mxu3 %v5008_v49 }
0x35d9   :  { %2364 = vmatpush.msrb.mxu3 %v4920_v33 }
0x35db   :  { %2365 = vmatpush.msrb.mxu3 %v4925_v34 }
0x35dd   :  { %2366 = vmatpush.msrb.mxu3 %v4931_v46 }
0x35df   :  { %2367 = vmatpush.msrb.mxu3 %v4937_v47 }
0x3653   :  { %v1921_v35 = vpop.f32.mrf.mxu1 }
0x3654   :  { %v1925_v57 = vrot.slane %v1921_v35, 7 }
0x3656   :  { %v1927_v58 = vadd.f32 %v1925_v57, %v1863_v37 }
0x3658   :  { %v3788_v59 = vmul.f32 -1.442695, %v1927_v58 }
0x365a   :  { %4136 = vpow2.f32 %v3788_v59 }
0x3660   :  { %v4137_v60 = vpop.eup %4136 }
0x3661   :  { %v1932_v61 = vadd.f32 1.0, %v4137_v60 }
0x3663   :  { %4138 = vrcp.f32 %v1932_v61  ;;  %v1944_v10 = vand.u32 2147483648, %v1932_v61  ;;  %v1942_v12 = vand.u32 2147483647, %v1932_v61  ;;  %vm1938_vm8 = vweird.f32 %v1932_v61 }
0x3664   :  { %4140 = vtanh.f32 %v1927_v58 }
0x3665   :  { %v1945_v1 = vor.u32 1.1754944e-38, %v1944_v10  ;;  %vm1943_vm10 = vcmp.eq.f32.partialorder %v1942_v12, 8.507059e+37 }
0x3669   :  { %v4139_v62 = vpop.eup %4138 }
0x366a   :  { %v1934_v8 = vmul.f32 %v4139_v62, %v1932_v61  ;;  %vm1939_vm7 = vweird.f32 %v4139_v62  ;;  %v4141_v16 = vpop.eup %4140 }
0x366b   :  { %vm1940_vm9 = vmor %vm1938_vm8, %vm1939_vm7 }
0x366c   :  { %v1935_v9 = vsub.f32 1.0, %v1934_v8 }
0x366e   :  { %v1936_v11 = vmul.f32 %v4139_v62, %v1935_v9 }
0x3670   :  { %v1937_v0 = vadd.f32 %v4139_v62, %v1936_v11 }
0x3672   :  { %v1941_v7 = vsel %vm1940_vm9, %v4139_v62, %v1937_v0 }
0x3673   :  { %v1946_v17 = vsel %vm1943_vm10, %v1945_v1, %v1941_v7 }
0x3674   :  { %v1948_v18 = vsel %vm27_vm3, %v4141_v16, %v1946_v17 }
0x3675   :  { %1956 = vrot.lane.b32.xlu0 %v1948_v18, %s4320_s9  ;;  %v1954_v2 = vmul.f32 %v1952_v21, %v1948_v18 }
0x36e7   :  { %v1957_v19 = vpop.permute.xlu0 %1956 }
0x36e8   :  { %v1959_v20 = vmul.f32 %v1957_v19, %v1948_v18 }
0x36ea   :  { %1961 = vrot.lane.b32.xlu2 %v1959_v20, %s4320_s9 }
0x3744   :  { %v1962_v3 = vpop.permute.xlu2 %1961 }
0x3745   :  { %v1964_v63 = vadd.f32 %v1962_v3, %v1954_v2 }
0x3747   :  { %4142 = vtanh.f32 %v1964_v63 }
0x374d   :  { %v4143_v14 = vpop.eup %4142 }
0x374e   :  { %1967 = vrot.lane.b32.xlu0 %v4143_v14, %s4320_s9 }
0x37c0   :  { %v1968_v5 = vpop.permute.xlu0 %1967 }
0x37c1   :  { %v1970_v23 = vmul.f32 %v1968_v5, %v1948_v18 }
0x37c3   :  { %1972 = vrot.lane.b32.xlu1 %v1970_v23, %s4321_s10  ;;  %v3805_v23 = vld [vmem:[%s5424_s1 + $0x58] sm:$0xff] }
0x37c4   :  { %2151 = vmatpush.msra.mxu0 %v3805_v23 }
0x3835   :  { %v1973_v28 = vpop.permute.xlu1 %1972 }
0x3836   :  { %1975 = vst.msk [vmem:[#allocation2] sm:$0x2] %vm176_vm11, %v1973_v28  ;;  %v3804_v28 = vld [vmem:[%s5424_s1 + $0x50] sm:$0xff] }
0x3837   :  { %2152 = vmatpush.msra.mxu0 %v3804_v28 }
0x383d   :  { %v1976_v37 = vld [vmem:[#allocation2] sm:$0x3] }
0x383e   :  { %3798 = vmatmul.msk.f32.vlgmr.msra.gmra.mxu2 %vm41_vm0, %v1976_v37  ;;  %v3803_v37 = vld [vmem:[%s5424_s1 + $0x48] sm:$0xff] }
0x383f   :  { %2599 = vmatpush.msra.mxu2 %v3805_v23  ;;  %2153 = vmatpush.msra.mxu0 %v3803_v37  ;;  %v3784_v23 = vld [vmem:[%s5425_s0 + $0x8] sm:$0x3] }
0x3841   :  { %2600 = vmatpush.msra.mxu2 %v3804_v28 }
0x3843   :  { %2601 = vmatpush.msra.mxu2 %v3803_v37 }
0x38c1   :  { %v2009_v39 = vpop.f32.mrf.mxu2 }
0x38c2   :  { %v2010_v40 = vadd.f32 %v3924_v38, %v2009_v39  ;;  %v3802_v38 = vld [vmem:[%s5424_s1 + $0x40] sm:$0xff] }
0x38c3   :  { %2154 = vmatpush.msra.mxu0 %v3802_v38  ;;  %2602 = vmatpush.msra.mxu2 %v3802_v38 }
0x38c4   :  { %v3799_v41 = vmul.f32 -1.442695, %v2010_v40 }
0x38c5   :  { %2452 = vmatpush.msrb.mxu0 %v4953_v24 }
0x38c6   :  { %4144 = vpow2.f32 %v3799_v41  ;;  %v3925_v41 = vld [vmem:[%s5426_s3 + $0x2] ss:$0 sm:$0xff] }
0x38c7   :  { %2453 = vmatpush.msrb.mxu0 %v4959_v25 }
0x38c9   :  { %2454 = vmatpush.msrb.mxu0 %v4965_v26 }
0x38cb   :  { %2455 = vmatpush.msrb.mxu0 %v4971_v27 }
0x38cc   :  { %v4145_v13 = vpop.eup %4144 }
0x38cd   :  { %v2016_v6 = vadd.f32 1.0, %v4145_v13 }
0x38cf   :  { %4146 = vrcp.f32 %v2016_v6  ;;  %v2028_v43 = vand.u32 2147483648, %v2016_v6  ;;  %v2026_v30 = vand.u32 2147483647, %v2016_v6  ;;  %vm2022_vm13 = vweird.f32 %v2016_v6 }
0x38d0   :  { %4148 = vtanh.f32 %v2010_v40 }
0x38d1   :  { %v2029_v32 = vor.u32 1.1754944e-38, %v2028_v43  ;;  %vm2027_vm15 = vcmp.eq.f32.partialorder %v2026_v30, 8.507059e+37 }
0x38d5   :  { %v4147_v4 = vpop.eup %4146 }
0x38d6   :  { %v2018_v42 = vmul.f32 %v4147_v4, %v2016_v6  ;;  %vm2023_vm12 = vweird.f32 %v4147_v4  ;;  %v4149_v45 = vpop.eup %4148 }
0x38d7   :  { %vm2024_vm14 = vmor %vm2022_vm13, %vm2023_vm12 }
0x38d8   :  { %v2019_v22 = vsub.f32 1.0, %v2018_v42 }
0x38da   :  { %v2020_v29 = vmul.f32 %v4147_v4, %v2019_v22 }
0x38dc   :  { %v2021_v31 = vadd.f32 %v4147_v4, %v2020_v29 }
0x38de   :  { %v2025_v36 = vsel %vm2024_vm14, %v4147_v4, %v2021_v31 }
0x38df   :  { %v2030_v50 = vsel %vm2027_vm15, %v2029_v32, %v2025_v36 }
0x38e0   :  { %v2032_v51 = vsel %vm27_vm3, %v4149_v45, %v2030_v50 }
0x38e1   :  { %2034 = vrot.lane.b32.xlu2 %v2032_v51, %s4320_s9 }
0x393b   :  { %v2035_v52 = vpop.permute.xlu2 %2034 }
0x393c   :  { %v2037_v53 = vmul.f32 %v2035_v52, %v2032_v51 }
0x393e   :  { %4150 = vtanh.f32 %v2037_v53  ;;  %v2097_v55 = vrot.slane %v2037_v53, 7 }
0x3944   :  { %v4151_v54 = vpop.eup %4150 }
0x3945   :  { %2040 = vrot.lane.b32.xlu0 %v4151_v54, %s4321_s10 }
0x394d   :  { %2098 = vrot.lane.b32.xlu0 %v2097_v55, %s4320_s9  ;;  %v3809_v55 = vld [vmem:[%s5427_s2 + $0x58] sm:$0xff] }
0x394e   :  { %2210 = vmatpush.msra.mxu1 %v3809_v55 }
0x39b7   :  { %v2041_v35 = vpop.permute.xlu0 %2040 }
0x39b8   :  { %v2043_v57 = vmul.f32 %v2041_v35, %v2032_v51  ;;  %v3808_v35 = vld [vmem:[%s5427_s2 + $0x50] sm:$0xff] }
0x39b9   :  { %2211 = vmatpush.msra.mxu1 %v3808_v35 }
0x39ba   :  { %2045 = vrot.lane.b32.xlu1 %v2043_v57, %s4321_s10  ;;  %v3807_v57 = vld [vmem:[%s5427_s2 + $0x48] sm:$0xff] }
0x39bb   :  { %2212 = vmatpush.msra.mxu1 %v3807_v57 }
0x39bf   :  { %v2099_v20 = vpop.permute.xlu0 %2098 }
0x3a2c   :  { %v2046_v58 = vpop.permute.xlu1 %2045 }
0x3a2d   :  { %2048 = vst.msk [vmem:[#allocation2] sm:$0x1] %vm101_vm6, %v2046_v58  ;;  %3800 = vmatmul.msk.f32.vlgmr.msra.gmra.mxu3 %vm41_vm0, %v2046_v58  ;;  %v3806_v58 = vld [vmem:[%s5427_s2 + $0x40] sm:$0xff] }
0x3a2e   :  { %2658 = vmatpush.msra.mxu3 %v3809_v55  ;;  %2213 = vmatpush.msra.mxu1 %v3806_v58 }
0x3a30   :  { %2659 = vmatpush.msra.mxu3 %v3808_v35  ;;  %2511 = vmatpush.msrb.mxu1 %v4991_v44 }
0x3a32   :  { %2660 = vmatpush.msra.mxu3 %v3807_v57  ;;  %2512 = vmatpush.msrb.mxu1 %v4996_v48 }
0x3a34   :  { %2661 = vmatpush.msra.mxu3 %v3806_v58  ;;  %2513 = vmatpush.msrb.mxu1 %v5002_v56 }
0x3a36   :  { %2514 = vmatpush.msrb.mxu1 %v5008_v49 }
0x3ab0   :  { %v2068_v59 = vpop.f32.mrf.mxu3 }
0x3ab1   :  { %v2072_v60 = vrot.slane %v2068_v59, 7 }
0x3ab3   :  { %v2074_v61 = vadd.f32 %v2072_v60, %v2010_v40 }
0x3ab5   :  { %v3801_v62 = vmul.f32 -1.442695, %v2074_v61 }
0x3ab7   :  { %4152 = vpow2.f32 %v3801_v62 }
0x3abd   :  { %v4153_v33 = vpop.eup %4152 }
0x3abe   :  { %v2079_v34 = vadd.f32 1.0, %v4153_v33 }
0x3ac0   :  { %4154 = vrcp.f32 %v2079_v34  ;;  %v2091_v9 = vand.u32 2147483648, %v2079_v34  ;;  %v2089_v11 = vand.u32 2147483647, %v2079_v34  ;;  %vm2085_vm2 = vweird.f32 %v2079_v34 }
0x3ac1   :  { %4156 = vtanh.f32 %v2074_v61 }
0x3ac2   :  { %v2092_v0 = vor.u32 1.1754944e-38, %v2091_v9  ;;  %vm2090_vm5 = vcmp.eq.f32.partialorder %v2089_v11, 8.507059e+37 }
0x3ac6   :  { %v4155_v46 = vpop.eup %4154 }
0x3ac7   :  { %v2081_v8 = vmul.f32 %v4155_v46, %v2079_v34  ;;  %vm2086_vm1 = vweird.f32 %v4155_v46  ;;  %v4157_v7 = vpop.eup %4156 }
0x3ac8   :  { %vm2087_vm4 = vmor %vm2085_vm2, %vm2086_vm1 }
0x3ac9   :  { %v2082_v47 = vsub.f32 1.0, %v2081_v8 }
0x3acb   :  { %v2083_v10 = vmul.f32 %v4155_v46, %v2082_v47 }
0x3acd   :  { %v2084_v12 = vadd.f32 %v4155_v46, %v2083_v10 }
0x3acf   :  { %v2088_v1 = vsel %vm2087_vm4, %v4155_v46, %v2084_v12 }
0x3ad0   :  { %v2093_v16 = vsel %vm2090_vm5, %v2092_v0, %v2088_v1 }
0x3ad1   :  { %v2095_v17 = vsel %vm27_vm3, %v4157_v7, %v2093_v16 }
0x3ad2   :  { %2103 = vrot.lane.b32.xlu2 %v2095_v17, %s4320_s9  ;;  %v2101_v21 = vmul.f32 %v2099_v20, %v2095_v17 }
0x3b2c   :  { %v2104_v18 = vpop.permute.xlu2 %2103 }
0x3b2d   :  { %v2106_v19 = vmul.f32 %v2104_v18, %v2095_v17 }
0x3b2f   :  { %2108 = vrot.lane.b32.xlu1 %v2106_v19, %s4320_s9 }
0x3ba1   :  { %v2109_v2 = vpop.permute.xlu1 %2108 }
0x3ba2   :  { %v2111_v3 = vadd.f32 %v2109_v2, %v2101_v21 }
0x3ba4   :  { %4158 = vtanh.f32 %v2111_v3 }
0x3baa   :  { %v4159_v63 = vpop.eup %4158 }
0x3bab   :  { %2114 = vrot.lane.b32.xlu2 %v4159_v63, %s4320_s9 }
0x3c05   :  { %v2115_v14 = vpop.permute.xlu2 %2114 }
0x3c06   :  { %v2117_v5 = vmul.f32 %v2115_v14, %v2095_v17 }
0x3c08   :  { %2119 = vrot.lane.b32.xlu0 %v2117_v5, %s4321_s10 }
0x3c7a   :  { %v2120_v39 = vpop.permute.xlu0 %2119 }
0x3c7b   :  { %2122 = vst.msk [vmem:[#allocation2] sm:$0x2] %vm176_vm11, %v2120_v39 }
0x3c82   :  { %v2123_v40 = vld [vmem:[#allocation2] sm:$0x3] }
0x3c83   :  { %3811 = vmatmul.msk.f32.vlgmr.msra.gmra.mxu0 %vm41_vm0, %v2123_v40  ;;  %v3926_v40 = vld [vmem:[%s5426_s3] ss:$0 sm:$0xff] }
0x3d00   :  { %v2156_v13 = vpop.f32.mrf.mxu0 }
0x3d01   :  { %v2157_v6 = vadd.f32 %v3925_v41, %v2156_v13 }
0x3d03   :  { %v3812_v4 = vmul.f32 -1.442695, %v2157_v6 }
0x3d05   :  { %4160 = vpow2.f32 %v3812_v4 }
0x3d0b   :  { %v4161_v24 = vpop.eup %4160 }
0x3d0c   :  { %v2163_v25 = vadd.f32 1.0, %v4161_v24 }
0x3d0e   :  { %4162 = vrcp.f32 %v2163_v25  ;;  %v2175_v22 = vand.u32 2147483648, %v2163_v25  ;;  %v2173_v29 = vand.u32 2147483647, %v2163_v25  ;;  %vm2169_vm8 = vweird.f32 %v2163_v25 }
0x3d0f   :  { %4164 = vtanh.f32 %v2157_v6 }
0x3d10   :  { %v2176_v31 = vor.u32 1.1754944e-38, %v2175_v22  ;;  %vm2174_vm10 = vcmp.eq.f32.partialorder %v2173_v29, 8.507059e+37 }
0x3d14   :  { %v4163_v26 = vpop.eup %4162 }
0x3d15   :  { %v2165_v42 = vmul.f32 %v4163_v26, %v2163_v25  ;;  %vm2170_vm7 = vweird.f32 %v4163_v26  ;;  %v4165_v36 = vpop.eup %4164 }
0x3d16   :  { %vm2171_vm9 = vmor %vm2169_vm8, %vm2170_vm7 }
0x3d17   :  { %v2166_v27 = vsub.f32 1.0, %v2165_v42 }
0x3d19   :  { %v2167_v43 = vmul.f32 %v4163_v26, %v2166_v27 }
0x3d1b   :  { %v2168_v30 = vadd.f32 %v4163_v26, %v2167_v43 }
0x3d1d   :  { %v2172_v32 = vsel %vm2171_vm9, %v4163_v26, %v2168_v30 }
0x3d1e   :  { %v2177_v45 = vsel %vm2174_vm10, %v2176_v31, %v2172_v32 }
0x3d1f   :  { %v2179_v50 = vsel %vm27_vm3, %v4165_v36, %v2177_v45 }
0x3d20   :  { %2181 = vrot.lane.b32.xlu1 %v2179_v50, %s4320_s9 }
0x3d92   :  { %v2182_v51 = vpop.permute.xlu1 %2181 }
0x3d93   :  { %v2184_v52 = vmul.f32 %v2182_v51, %v2179_v50 }
0x3d95   :  { %4166 = vtanh.f32 %v2184_v52  ;;  %v2244_v54 = vrot.slane %v2184_v52, 7 }
0x3d9b   :  { %v4167_v53 = vpop.eup %4166 }
0x3d9c   :  { %2187 = vrot.lane.b32.xlu2 %v4167_v53, %s4321_s10 }
0x3da4   :  { %2245 = vrot.lane.b32.xlu2 %v2244_v54, %s4320_s9 }
0x3df6   :  { %v2188_v59 = vpop.permute.xlu2 %2187 }
0x3df7   :  { %v2190_v60 = vmul.f32 %v2188_v59, %v2179_v50 }
0x3df9   :  { %2192 = vrot.lane.b32.xlu0 %v2190_v60, %s4321_s10 }
0x3dfe   :  { %v2246_v19 = vpop.permute.xlu2 %2245 }
0x3e6b   :  { %v2193_v61 = vpop.permute.xlu0 %2192 }
0x3e6c   :  { %2195 = vst.msk [vmem:[#allocation2] sm:$0x1] %vm101_vm6, %v2193_v61  ;;  %3813 = vmatmul.msk.f32.vlgmr.msra.gmra.mxu1 %vm41_vm0, %v2193_v61 }
0x3ee9   :  { %v2215_v62 = vpop.f32.mrf.mxu1 }
0x3eea   :  { %v2219_v33 = vrot.slane %v2215_v62, 7 }
0x3eec   :  { %v2221_v34 = vadd.f32 %v2219_v33, %v2157_v6 }
0x3eee   :  { %v3814_v46 = vmul.f32 -1.442695, %v2221_v34 }
0x3ef0   :  { %4168 = vpow2.f32 %v3814_v46 }
0x3ef6   :  { %v4169_v44 = vpop.eup %4168 }
0x3ef7   :  { %v2226_v48 = vadd.f32 1.0, %v4169_v44 }
0x3ef9   :  { %4170 = vrcp.f32 %v2226_v48  ;;  %v2238_v47 = vand.u32 2147483648, %v2226_v48  ;;  %v2236_v10 = vand.u32 2147483647, %v2226_v48  ;;  %vm2232_vm13 = vweird.f32 %v2226_v48 }
0x3efa   :  { %4172 = vtanh.f32 %v2221_v34 }
0x3efb   :  { %v2239_v12 = vor.u32 1.1754944e-38, %v2238_v47  ;;  %vm2237_vm15 = vcmp.eq.f32.partialorder %v2236_v10, 8.507059e+37 }
0x3eff   :  { %v4171_v56 = vpop.eup %4170 }
0x3f00   :  { %v2228_v8 = vmul.f32 %v4171_v56, %v2226_v48  ;;  %vm2233_vm12 = vweird.f32 %v4171_v56  ;;  %v4173_v1 = vpop.eup %4172 }
0x3f01   :  { %vm2234_vm14 = vmor %vm2232_vm13, %vm2233_vm12 }
0x3f02   :  { %v2229_v49 = vsub.f32 1.0, %v2228_v8 }
0x3f04   :  { %v2230_v9 = vmul.f32 %v4171_v56, %v2229_v49 }
0x3f06   :  { %v2231_v11 = vadd.f32 %v4171_v56, %v2230_v9 }
0x3f08   :  { %v2235_v0 = vsel %vm2234_vm14, %v4171_v56, %v2231_v11 }
0x3f09   :  { %v2240_v7 = vsel %vm2237_vm15, %v2239_v12, %v2235_v0 }
0x3f0a   :  { %v2242_v16 = vsel %vm27_vm3, %v4173_v1, %v2240_v7 }
0x3f0b   :  { %2250 = vrot.lane.b32.xlu1 %v2242_v16, %s4320_s9  ;;  %v2248_v20 = vmul.f32 %v2246_v19, %v2242_v16 }
0x3f7d   :  { %v2251_v17 = vpop.permute.xlu1 %2250 }
0x3f7e   :  { %v2253_v18 = vmul.f32 %v2251_v17, %v2242_v16 }
0x3f80   :  { %2255 = vrot.lane.b32.xlu0 %v2253_v18, %s4320_s9 }
0x3ff2   :  { %v2256_v21 = vpop.permute.xlu0 %2255 }
0x3ff3   :  { %v2258_v2 = vadd.f32 %v2256_v21, %v2248_v20 }
0x3ff5   :  { %4174 = vtanh.f32 %v2258_v2 }
0x3ffb   :  { %v4175_v3 = vpop.eup %4174 }
0x3ffc   :  { %2261 = vrot.lane.b32.xlu1 %v4175_v3, %s4320_s9  ;;  %v3927_v3 = vld [vmem:[%s5426_s3 + $0x1] ss:$0 sm:$0xff] }
0x406e   :  { %v2262_v63 = vpop.permute.xlu1 %2261 }
0x406f   :  { %v2264_v14 = vmul.f32 %v2262_v63, %v2242_v16 }
0x4071   :  { %2266 = vrot.lane.b32.xlu2 %v2264_v14, %s4321_s10 }
0x40cb   :  { %v2267_v5 = vpop.permute.xlu2 %2266 }
0x40cc   :  { %2269 = vst.msk [vmem:[#allocation2] sm:$0x2] %vm176_vm11, %v2267_v5 }
0x40d3   :  { %v2270_v28 = vld [vmem:[#allocation2] sm:$0x3] }
0x40d4   :  { %2271 = vst.msk [vmem:[#allocation3 + $0x4] sm:$0x1] %vm101_vm6, %v2270_v28  ;;  %v2273_v37 = vsub.f32 %v3784_v23, %v2270_v28 }
0x40d5   :  { %2272 = vst.msk [vmem:[#allocation3 + $0xb] sm:$0x2] %vm176_vm11, %v2270_v28 }
0x40d6   :  { %v2274_v38 = vmul.f32 0.5, %v2273_v37 }
0x40d8   :  { %v2275_v39 = vadd.f32 %v2274_v38, %v2270_v28 }
0x40da   :  { %3816 = vmatmul.msk.f32.vlgmr.msrb.gmra.mxu2 %vm41_vm0, %v2275_v39 }
0x415d   :  { %v2310_v41 = vpop.f32.mrf.mxu2 }
0x415e   :  { %v2311_v13 = vadd.f32 %v3926_v40, %v2310_v41 }
0x4160   :  { %v3817_v6 = vmul.f32 -1.442695, %v2311_v13 }
0x4162   :  { %4176 = vpow2.f32 %v3817_v6 }
0x4168   :  { %v4177_v4 = vpop.eup %4176 }
0x4169   :  { %v2317_v24 = vadd.f32 1.0, %v4177_v4 }
0x416b   :  { %4178 = vrcp.f32 %v2317_v24  ;;  %v2329_v27 = vand.u32 2147483648, %v2317_v24  ;;  %v2327_v43 = vand.u32 2147483647, %v2317_v24  ;;  %vm2323_vm2 = vweird.f32 %v2317_v24 }
0x416c   :  { %4180 = vtanh.f32 %v2311_v13 }
0x416d   :  { %v2330_v30 = vor.u32 1.1754944e-38, %v2329_v27  ;;  %vm2328_vm5 = vcmp.eq.f32.partialorder %v2327_v43, 8.507059e+37 }
0x4171   :  { %v4179_v25 = vpop.eup %4178 }
0x4172   :  { %v2319_v26 = vmul.f32 %v4179_v25, %v2317_v24  ;;  %vm2324_vm1 = vweird.f32 %v4179_v25  ;;  %v4181_v32 = vpop.eup %4180 }
0x4173   :  { %vm2325_vm4 = vmor %vm2323_vm2, %vm2324_vm1 }
0x4174   :  { %v2320_v42 = vsub.f32 1.0, %v2319_v26 }
0x4176   :  { %v2321_v22 = vmul.f32 %v4179_v25, %v2320_v42 }
0x4178   :  { %v2322_v29 = vadd.f32 %v4179_v25, %v2321_v22 }
0x417a   :  { %v2326_v31 = vsel %vm2325_vm4, %v4179_v25, %v2322_v29 }
0x417b   :  { %v2331_v36 = vsel %vm2328_vm5, %v2330_v30, %v2326_v31 }
0x417c   :  { %v2333_v45 = vsel %vm27_vm3, %v4181_v32, %v2331_v36 }
0x417d   :  { %2335 = vrot.lane.b32.xlu0 %v2333_v45, %s4320_s9 }
0x41ef   :  { %v2336_v50 = vpop.permute.xlu0 %2335 }
0x41f0   :  { %v2338_v51 = vmul.f32 %v2336_v50, %v2333_v45 }
0x41f2   :  { %4182 = vtanh.f32 %v2338_v51  ;;  %v2398_v53 = vrot.slane %v2338_v51, 7 }
0x41f8   :  { %v4183_v52 = vpop.eup %4182 }
0x41f9   :  { %2341 = vrot.lane.b32.xlu1 %v4183_v52, %s4321_s10 }
0x4201   :  { %2399 = vrot.lane.b32.xlu1 %v2398_v53, %s4320_s9 }
0x426b   :  { %v2342_v54 = vpop.permute.xlu1 %2341 }
0x426c   :  { %v2344_v55 = vmul.f32 %v2342_v54, %v2333_v45 }
0x426e   :  { %2346 = vrot.lane.b32.xlu2 %v2344_v55, %s4321_s10 }
0x4273   :  { %v2400_v1 = vpop.permute.xlu1 %2399 }
0x42c8   :  { %v2347_v35 = vpop.permute.xlu2 %2346 }
0x42c9   :  { %2349 = vst.msk [vmem:[#allocation2] sm:$0x1] %vm101_vm6, %v2347_v35  ;;  %3818 = vmatmul.msk.f32.vlgmr.msrb.gmra.mxu3 %vm41_vm0, %v2347_v35 }
0x434c   :  { %v2369_v57 = vpop.f32.mrf.mxu3 }
0x434d   :  { %v2373_v58 = vrot.slane %v2369_v57, 7 }
0x434f   :  { %v2375_v59 = vadd.f32 %v2373_v58, %v2311_v13 }
0x4351   :  { %v3819_v60 = vmul.f32 -1.442695, %v2375_v59 }
0x4353   :  { %4184 = vpow2.f32 %v3819_v60 }
0x4359   :  { %v4185_v61 = vpop.eup %4184 }
0x435a   :  { %v2380_v62 = vadd.f32 1.0, %v4185_v61 }
0x435c   :  { %4186 = vrcp.f32 %v2380_v62  ;;  %v2392_v44 = vand.u32 2147483648, %v2380_v62  ;;  %v2390_v56 = vand.u32 2147483647, %v2380_v62  ;;  %vm2386_vm8 = vweird.f32 %v2380_v62 }
0x435d   :  { %4188 = vtanh.f32 %v2375_v59 }
0x435e   :  { %v2393_v49 = vor.u32 1.1754944e-38, %v2392_v44  ;;  %vm2391_vm10 = vcmp.eq.f32.partialorder %v2390_v56, 8.507059e+37 }
0x4362   :  { %v4187_v33 = vpop.eup %4186 }
0x4363   :  { %v2382_v34 = vmul.f32 %v4187_v33, %v2380_v62  ;;  %vm2387_vm7 = vweird.f32 %v4187_v33  ;;  %v4189_v9 = vpop.eup %4188 }
0x4364   :  { %vm2388_vm9 = vmor %vm2386_vm8, %vm2387_vm7 }
0x4365   :  { %v2383_v46 = vsub.f32 1.0, %v2382_v34 }
0x4367   :  { %v2384_v48 = vmul.f32 %v4187_v33, %v2383_v46 }
0x4369   :  { %v2385_v8 = vadd.f32 %v4187_v33, %v2384_v48 }
0x436b   :  { %v2389_v47 = vsel %vm2388_vm9, %v4187_v33, %v2385_v8 }
0x436c   :  { %v2394_v10 = vsel %vm2391_vm10, %v2393_v49, %v2389_v47 }
0x436d   :  { %v2396_v11 = vsel %vm27_vm3, %v4189_v9, %v2394_v10 }
0x436e   :  { %2404 = vrot.lane.b32.xlu0 %v2396_v11, %s4320_s9  ;;  %v2402_v7 = vmul.f32 %v2400_v1, %v2396_v11  ;;  %v3928_v1 = vld [vmem:[%s5426_s3 + $0x2] ss:$0 sm:$0xff] }
0x43e0   :  { %v2405_v12 = vpop.permute.xlu0 %2404 }
0x43e1   :  { %v2407_v0 = vmul.f32 %v2405_v12, %v2396_v11 }
0x43e3   :  { %2409 = vrot.lane.b32.xlu2 %v2407_v0, %s4320_s9 }
0x443d   :  { %v2410_v16 = vpop.permute.xlu2 %2409 }
0x443e   :  { %v2412_v17 = vadd.f32 %v2410_v16, %v2402_v7 }
0x4440   :  { %4190 = vtanh.f32 %v2412_v17 }
0x4446   :  { %v4191_v18 = vpop.eup %4190 }
0x4447   :  { %2415 = vrot.lane.b32.xlu0 %v4191_v18, %s4320_s9 }
0x44b9   :  { %v2416_v19 = vpop.permute.xlu0 %2415 }
0x44ba   :  { %v2418_v20 = vmul.f32 %v2416_v19, %v2396_v11 }
0x44bc   :  { %2420 = vrot.lane.b32.xlu1 %v2418_v20, %s4321_s10 }
0x452e   :  { %v2421_v21 = vpop.permute.xlu1 %2420 }
0x452f   :  { %2423 = vst.msk [vmem:[#allocation2] sm:$0x2] %vm176_vm11, %v2421_v21 }
0x4536   :  { %v2424_v2 = vld [vmem:[#allocation2] sm:$0x3] }
0x4537   :  { %3829 = vmatmul.msk.f32.vlgmr.msrb.gmra.mxu0 %vm41_vm0, %v2424_v2 }
0x45b4   :  { %v2457_v63 = vpop.f32.mrf.mxu0 }
0x45b5   :  { %v2458_v14 = vadd.f32 %v3927_v3, %v2457_v63 }
0x45b7   :  { %v3830_v5 = vmul.f32 -1.442695, %v2458_v14 }
0x45b9   :  { %4192 = vpow2.f32 %v3830_v5 }
0x45bf   :  { %v4193_v23 = vpop.eup %4192 }
0x45c0   :  { %v2464_v28 = vadd.f32 1.0, %v4193_v23 }
0x45c2   :  { %4194 = vrcp.f32 %v2464_v28  ;;  %v2476_v40 = vand.u32 2147483648, %v2464_v28  ;;  %v2474_v13 = vand.u32 2147483647, %v2464_v28  ;;  %vm2470_vm13 = vweird.f32 %v2464_v28 }
0x45c3   :  { %4196 = vtanh.f32 %v2458_v14 }
0x45c4   :  { %v2477_v4 = vor.u32 1.1754944e-38, %v2476_v40  ;;  %vm2475_vm15 = vcmp.eq.f32.partialorder %v2474_v13, 8.507059e+37 }
0x45c8   :  { %v4195_v37 = vpop.eup %4194 }
0x45c9   :  { %v2466_v38 = vmul.f32 %v4195_v37, %v2464_v28  ;;  %vm2471_vm12 = vweird.f32 %v4195_v37  ;;  %v4197_v25 = vpop.eup %4196 }
0x45ca   :  { %vm2472_vm14 = vmor %vm2470_vm13, %vm2471_vm12 }
0x45cb   :  { %v2467_v39 = vsub.f32 1.0, %v2466_v38 }
0x45cd   :  { %v2468_v41 = vmul.f32 %v4195_v37, %v2467_v39 }
0x45cf   :  { %v2469_v6 = vadd.f32 %v4195_v37, %v2468_v41 }
0x45d1   :  { %v2473_v24 = vsel %vm2472_vm14, %v4195_v37, %v2469_v6 }
0x45d2   :  { %v2478_v26 = vsel %vm2475_vm15, %v2477_v4, %v2473_v24 }
0x45d3   :  { %v2480_v42 = vsel %vm27_vm3, %v4197_v25, %v2478_v26 }
0x45d4   :  { %2482 = vrot.lane.b32.xlu2 %v2480_v42, %s4320_s9 }
0x462e   :  { %v2483_v27 = vpop.permute.xlu2 %2482 }
0x462f   :  { %v2485_v22 = vmul.f32 %v2483_v27, %v2480_v42 }
0x4631   :  { %4198 = vtanh.f32 %v2485_v22  ;;  %v2545_v29 = vrot.slane %v2485_v22, 7 }
0x4637   :  { %v4199_v43 = vpop.eup %4198 }
0x4638   :  { %2488 = vrot.lane.b32.xlu0 %v4199_v43, %s4321_s10 }
0x4640   :  { %2546 = vrot.lane.b32.xlu0 %v2545_v29, %s4320_s9 }
0x46aa   :  { %v2489_v30 = vpop.permute.xlu0 %2488 }
0x46ab   :  { %v2491_v31 = vmul.f32 %v2489_v30, %v2480_v42 }
0x46ad   :  { %2493 = vrot.lane.b32.xlu1 %v2491_v31, %s4321_s10 }
0x46b2   :  { %v2547_v56 = vpop.permute.xlu0 %2546 }
0x471f   :  { %v2494_v32 = vpop.permute.xlu1 %2493 }
0x4720   :  { %2496 = vst.msk [vmem:[#allocation2] sm:$0x1] %vm101_vm6, %v2494_v32  ;;  %3831 = vmatmul.msk.f32.vlgmr.msrb.gmra.mxu1 %vm41_vm0, %v2494_v32 }
0x479d   :  { %v2516_v36 = vpop.f32.mrf.mxu1 }
0x479e   :  { %v2520_v45 = vrot.slane %v2516_v36, 7 }
0x47a0   :  { %v2522_v50 = vadd.f32 %v2520_v45, %v2458_v14 }
0x47a2   :  { %v3832_v51 = vmul.f32 -1.442695, %v2522_v50 }
0x47a4   :  { %4200 = vpow2.f32 %v3832_v51 }
0x47aa   :  { %v4201_v52 = vpop.eup %4200 }
0x47ab   :  { %v2527_v53 = vadd.f32 1.0, %v4201_v52 }
0x47ad   :  { %4202 = vrcp.f32 %v2527_v53  ;;  %v2539_v57 = vand.u32 2147483648, %v2527_v53  ;;  %v2537_v59 = vand.u32 2147483647, %v2527_v53  ;;  %vm2533_vm2 = vweird.f32 %v2527_v53 }
0x47ae   :  { %4204 = vtanh.f32 %v2522_v50 }
0x47af   :  { %v2540_v61 = vor.u32 1.1754944e-38, %v2539_v57  ;;  %vm2538_vm5 = vcmp.eq.f32.partialorder %v2537_v59, 8.507059e+37 }
0x47b3   :  { %v4203_v54 = vpop.eup %4202 }
0x47b4   :  { %v2529_v55 = vmul.f32 %v4203_v54, %v2527_v53  ;;  %vm2534_vm1 = vweird.f32 %v4203_v54  ;;  %v4205_v33 = vpop.eup %4204 }
0x47b5   :  { %vm2535_vm4 = vmor %vm2533_vm2, %vm2534_vm1 }
0x47b6   :  { %v2530_v35 = vsub.f32 1.0, %v2529_v55 }
0x47b8   :  { %v2531_v58 = vmul.f32 %v4203_v54, %v2530_v35 }
0x47ba   :  { %v2532_v60 = vadd.f32 %v4203_v54, %v2531_v58 }
0x47bc   :  { %v2536_v62 = vsel %vm2535_vm4, %v4203_v54, %v2532_v60 }
0x47bd   :  { %v2541_v34 = vsel %vm2538_vm5, %v2540_v61, %v2536_v62 }
0x47be   :  { %v2543_v46 = vsel %vm27_vm3, %v4205_v33, %v2541_v34 }
0x47bf   :  { %2551 = vrot.lane.b32.xlu2 %v2543_v46, %s4320_s9  ;;  %v2549_v8 = vmul.f32 %v2547_v56, %v2543_v46  ;;  %v5152_v56 = vld [vmem:[%s5424_s1 + $0x8] sm:$0xff] }
0x4819   :  { %v2552_v44 = vpop.permute.xlu2 %2551 }
0x481a   :  { %v2554_v48 = vmul.f32 %v2552_v44, %v2543_v46  ;;  %v5141_v44 = vld [vmem:[%s5424_s1 + $0x18] sm:$0xff] }
0x481b   :  { %2753 = vmatpush.msra.mxu0 %v5141_v44 }
0x481c   :  { %2556 = vrot.lane.b32.xlu1 %v2554_v48, %s4320_s9  ;;  %v5146_v48 = vld [vmem:[%s5424_s1 + $0x10] sm:$0xff] }
0x481d   :  { %2754 = vmatpush.msra.mxu0 %v5146_v48 }
0x481f   :  { %2755 = vmatpush.msra.mxu0 %v5152_v56 }
0x488e   :  { %v2557_v49 = vpop.permute.xlu1 %2556 }
0x488f   :  { %v2559_v47 = vadd.f32 %v2557_v49, %v2549_v8  ;;  %v5158_v8 = vld [vmem:[%s5424_s1] sm:$0xff] }
0x4890   :  { %2756 = vmatpush.msra.mxu0 %v5158_v8 }
0x4891   :  { %4206 = vtanh.f32 %v2559_v47  ;;  %v3815_v47 = vld [vmem:[%s5425_s0 + $0xa] sm:$0x3] }
0x4897   :  { %v4207_v9 = vpop.eup %4206 }
0x4898   :  { %2562 = vrot.lane.b32.xlu2 %v4207_v9, %s4320_s9 }
0x48f2   :  { %v2563_v10 = vpop.permute.xlu2 %2562 }
0x48f3   :  { %v2565_v11 = vmul.f32 %v2563_v10, %v2543_v46 }
0x48f5   :  { %2567 = vrot.lane.b32.xlu0 %v2565_v11, %s4321_s10 }
0x4967   :  { %v2568_v12 = vpop.permute.xlu0 %2567 }
0x4968   :  { %2570 = vst.msk [vmem:[#allocation2] sm:$0x2] %vm176_vm11, %v2568_v12 }
0x496f   :  { %v2571_v0 = vld [vmem:[#allocation2] sm:$0x3] }
0x4970   :  { %3842 = vmatmul.msk.f32.vlgmr.msra.gmra.mxu2 %vm41_vm0, %v2571_v0  ;;  %v3929_v0 = vld [vmem:[%s5426_s3] ss:$0 sm:$0xff] }
0x49f3   :  { %v2604_v7 = vpop.f32.mrf.mxu2 }
0x49f4   :  { %v2605_v16 = vadd.f32 %v3928_v1, %v2604_v7 }
0x49f6   :  { %v3843_v17 = vmul.f32 -1.442695, %v2605_v16 }
0x49f8   :  { %4208 = vpow2.f32 %v3843_v17 }
0x49fe   :  { %v4209_v18 = vpop.eup %4208 }
0x49ff   :  { %v2611_v19 = vadd.f32 1.0, %v4209_v18 }
0x4a01   :  { %4210 = vrcp.f32 %v2611_v19  ;;  %v2623_v3 = vand.u32 2147483648, %v2611_v19  ;;  %v2621_v14 = vand.u32 2147483647, %v2611_v19  ;;  %vm2617_vm8 = vweird.f32 %v2611_v19 }
0x4a02   :  { %4212 = vtanh.f32 %v2605_v16 }
0x4a03   :  { %v2624_v23 = vor.u32 1.1754944e-38, %v2623_v3  ;;  %vm2622_vm10 = vcmp.eq.f32.partialorder %v2621_v14, 8.507059e+37 }
0x4a07   :  { %v4211_v20 = vpop.eup %4210 }
0x4a08   :  { %v2613_v21 = vmul.f32 %v4211_v20, %v2611_v19  ;;  %vm2618_vm7 = vweird.f32 %v4211_v20  ;;  %v4213_v37 = vpop.eup %4212 }
0x4a09   :  { %vm2619_vm9 = vmor %vm2617_vm8, %vm2618_vm7 }
0x4a0a   :  { %v2614_v2 = vsub.f32 1.0, %v2613_v21 }
0x4a0c   :  { %v2615_v63 = vmul.f32 %v4211_v20, %v2614_v2 }
0x4a0e   :  { %v2616_v5 = vadd.f32 %v4211_v20, %v2615_v63 }
0x4a10   :  { %v2620_v28 = vsel %vm2619_vm9, %v4211_v20, %v2616_v5 }
0x4a11   :  { %v2625_v38 = vsel %vm2622_vm10, %v2624_v23, %v2620_v28 }
0x4a12   :  { %v2627_v39 = vsel %vm27_vm3, %v4213_v37, %v2625_v38 }
0x4a13   :  { %2629 = vrot.lane.b32.xlu1 %v2627_v39, %s4320_s9 }
0x4a85   :  { %v2630_v40 = vpop.permute.xlu1 %2629 }
0x4a86   :  { %v2632_v41 = vmul.f32 %v2630_v40, %v2627_v39 }
0x4a88   :  { %4214 = vtanh.f32 %v2632_v41  ;;  %v2692_v6 = vrot.slane %v2632_v41, 7 }
0x4a8e   :  { %v4215_v13 = vpop.eup %4214 }
0x4a8f   :  { %2635 = vrot.lane.b32.xlu2 %v4215_v13, %s4321_s10 }
0x4a97   :  { %2693 = vrot.lane.b32.xlu2 %v2692_v6, %s4320_s9  ;;  %v5180_v6 = vld [vmem:[%s5427_s2 + $0x18] sm:$0xff] }
0x4a98   :  { %2812 = vmatpush.msra.mxu1 %v5180_v6 }
0x4ae9   :  { %v2636_v4 = vpop.permute.xlu2 %2635 }
0x4aea   :  { %v2638_v24 = vmul.f32 %v2636_v4, %v2627_v39  ;;  %v5185_v4 = vld [vmem:[%s5427_s2 + $0x10] sm:$0xff] }
0x4aeb   :  { %2813 = vmatpush.msra.mxu1 %v5185_v4 }
0x4aec   :  { %2640 = vrot.lane.b32.xlu0 %v2638_v24, %s4321_s10  ;;  %v5191_v24 = vld [vmem:[%s5427_s2 + $0x8] sm:$0xff] }
0x4aed   :  { %2814 = vmatpush.msra.mxu1 %v5191_v24 }
0x4af1   :  { %v2694_v59 = vpop.permute.xlu2 %2693 }
0x4b5e   :  { %v2641_v25 = vpop.permute.xlu0 %2640 }
0x4b5f   :  { %2643 = vst.msk [vmem:[#allocation2] sm:$0x1] %vm101_vm6, %v2641_v25  ;;  %3844 = vmatmul.msk.f32.vlgmr.msra.gmra.mxu3 %vm41_vm0, %v2641_v25  ;;  %v5197_v25 = vld [vmem:[%s5427_s2] sm:$0xff] }
0x4b60   :  { %2815 = vmatpush.msra.mxu1 %v5197_v25 }
0x4be2   :  { %v2663_v26 = vpop.f32.mrf.mxu3 }
0x4be3   :  { %v2667_v42 = vrot.slane %v2663_v26, 7 }
0x4be5   :  { %v2669_v27 = vadd.f32 %v2667_v42, %v2605_v16 }
0x4be7   :  { %v3845_v22 = vmul.f32 -1.442695, %v2669_v27 }
0x4be9   :  { %4216 = vpow2.f32 %v3845_v22 }
0x4bef   :  { %v4217_v43 = vpop.eup %4216 }
0x4bf0   :  { %v2674_v29 = vadd.f32 1.0, %v4217_v43 }
0x4bf2   :  { %4218 = vrcp.f32 %v2674_v29  ;;  %v2686_v36 = vand.u32 2147483648, %v2674_v29  ;;  %v2684_v50 = vand.u32 2147483647, %v2674_v29  ;;  %vm2680_vm13 = vweird.f32 %v2674_v29 }
0x4bf3   :  { %4220 = vtanh.f32 %v2669_v27 }
0x4bf4   :  { %v2687_v52 = vor.u32 1.1754944e-38, %v2686_v36  ;;  %vm2685_vm15 = vcmp.eq.f32.partialorder %v2684_v50, 8.507059e+37 }
0x4bf8   :  { %v4219_v30 = vpop.eup %4218 }
0x4bf9   :  { %v2676_v31 = vmul.f32 %v4219_v30, %v2674_v29  ;;  %vm2681_vm12 = vweird.f32 %v4219_v30  ;;  %v4221_v54 = vpop.eup %4220 }
0x4bfa   :  { %vm2682_vm14 = vmor %vm2680_vm13, %vm2681_vm12 }
0x4bfb   :  { %v2677_v32 = vsub.f32 1.0, %v2676_v31 }
0x4bfd   :  { %v2678_v45 = vmul.f32 %v4219_v30, %v2677_v32 }
0x4bff   :  { %v2679_v51 = vadd.f32 %v4219_v30, %v2678_v45 }
0x4c01   :  { %v2683_v53 = vsel %vm2682_vm14, %v4219_v30, %v2679_v51 }
0x4c02   :  { %v2688_v55 = vsel %vm2685_vm15, %v2687_v52, %v2683_v53 }
0x4c03   :  { %v2690_v35 = vsel %vm27_vm3, %v4221_v54, %v2688_v55 }
0x4c04   :  { %2698 = vrot.lane.b32.xlu1 %v2690_v35, %s4320_s9  ;;  %v2696_v60 = vmul.f32 %v2694_v59, %v2690_v35 }
0x4c76   :  { %v2699_v57 = vpop.permute.xlu1 %2698 }
0x4c77   :  { %v2701_v58 = vmul.f32 %v2699_v57, %v2690_v35 }
0x4c79   :  { %2703 = vrot.lane.b32.xlu0 %v2701_v58, %s4320_s9 }
0x4ceb   :  { %v2704_v61 = vpop.permute.xlu0 %2703 }
0x4cec   :  { %v2706_v62 = vadd.f32 %v2704_v61, %v2696_v60 }
0x4cee   :  { %4222 = vtanh.f32 %v2706_v62 }
0x4cf4   :  { %v4223_v33 = vpop.eup %4222 }
0x4cf5   :  { %2709 = vrot.lane.b32.xlu1 %v4223_v33, %s4320_s9 }
0x4d67   :  { %v2710_v34 = vpop.permute.xlu1 %2709 }
0x4d68   :  { %v2712_v46 = vmul.f32 %v2710_v34, %v2690_v35 }
0x4d6a   :  { %2714 = vrot.lane.b32.xlu2 %v2712_v46, %s4321_s10 }
0x4dc4   :  { %v2715_v49 = vpop.permute.xlu2 %2714 }
0x4dc5   :  { %2717 = vst.msk [vmem:[#allocation2] sm:$0x2] %vm176_vm11, %v2715_v49 }
0x4dcc   :  { %v2718_v9 = vld [vmem:[#allocation2] sm:$0x3] }
0x4dcd   :  { %v2721_v10 = vsub.f32 %v3815_v47, %v2718_v9  ;;  %2719 = vst.msk [vmem:[#allocation3 + $0x5] sm:$0x1] %vm101_vm6, %v2718_v9 }
0x4dce   :  { %2720 = vst.msk [vmem:[#allocation3 + $0xc] sm:$0x2] %vm176_vm11, %v2718_v9 }
0x4dcf   :  { %v2722_v11 = vmul.f32 0.5, %v2721_v10  ;;  %v5213_v10 = vld [vmem:[%s5424_s1 + $0x38] sm:$0xff] }
0x4dd0   :  { %2900 = vmatpush.msrb.mxu2 %v5213_v10 }
0x4dd1   :  { %v2723_v12 = vadd.f32 %v2722_v11, %v2718_v9  ;;  %v5218_v11 = vld [vmem:[%s5424_s1 + $0x30] sm:$0xff] }
0x4dd2   :  { %2901 = vmatpush.msrb.mxu2 %v5218_v11 }
0x4dd3   :  { %3847 = vmatmul.msk.f32.vlgmr.msra.gmra.mxu0 %vm41_vm0, %v2723_v12  ;;  %v5224_v12 = vld [vmem:[%s5424_s1 + $0x28] sm:$0xff] }
0x4dd4   :  { %2902 = vmatpush.msrb.mxu2 %v5224_v12 }
0x4e50   :  { %v2758_v1 = vpop.f32.mrf.mxu0 }
0x4e51   :  { %v2759_v7 = vadd.f32 %v3929_v0, %v2758_v1  ;;  %v5230_v0 = vld [vmem:[%s5424_s1 + $0x20] sm:$0xff] }
0x4e52   :  { %2903 = vmatpush.msrb.mxu2 %v5230_v0 }
0x4e53   :  { %v3848_v16 = vmul.f32 -1.442695, %v2759_v7 }
0x4e54   :  { %3199 = vmatpush.msra.mxu2 %v5141_v44 }
0x4e55   :  { %4224 = vpow2.f32 %v3848_v16  ;;  %v3930_v16 = vld [vmem:[%s5426_s3 + $0x1] ss:$0 sm:$0xff] }
0x4e56   :  { %3200 = vmatpush.msra.mxu2 %v5146_v48 }
0x4e58   :  { %3201 = vmatpush.msra.mxu2 %v5152_v56 }
0x4e5a   :  { %3202 = vmatpush.msra.mxu2 %v5158_v8 }
0x4e5b   :  { %v4225_v17 = vpop.eup %4224 }
0x4e5c   :  { %v2765_v18 = vadd.f32 1.0, %v4225_v17 }
0x4e5e   :  { %4226 = vrcp.f32 %v2765_v18  ;;  %v2777_v2 = vand.u32 2147483648, %v2765_v18  ;;  %v2775_v63 = vand.u32 2147483647, %v2765_v18  ;;  %vm2771_vm2 = vweird.f32 %v2765_v18 }
0x4e5f   :  { %4228 = vtanh.f32 %v2759_v7 }
0x4e60   :  { %v2778_v5 = vor.u32 1.1754944e-38, %v2777_v2  ;;  %vm2776_vm5 = vcmp.eq.f32.partialorder %v2775_v63, 8.507059e+37 }
0x4e64   :  { %v4227_v19 = vpop.eup %4226 }
0x4e65   :  { %v2767_v20 = vmul.f32 %v4227_v19, %v2765_v18  ;;  %vm2772_vm1 = vweird.f32 %v4227_v19  ;;  %v4229_v28 = vpop.eup %4228 }
0x4e66   :  { %vm2773_vm4 = vmor %vm2771_vm2, %vm2772_vm1 }
0x4e67   :  { %v2768_v21 = vsub.f32 1.0, %v2767_v20 }
0x4e69   :  { %v2769_v3 = vmul.f32 %v4227_v19, %v2768_v21 }
0x4e6b   :  { %v2770_v14 = vadd.f32 %v4227_v19, %v2769_v3 }
0x4e6d   :  { %v2774_v23 = vsel %vm2773_vm4, %v4227_v19, %v2770_v14 }
0x4e6e   :  { %v2779_v37 = vsel %vm2776_vm5, %v2778_v5, %v2774_v23 }
0x4e6f   :  { %v2781_v38 = vsel %vm27_vm3, %v4229_v28, %v2779_v37 }
0x4e70   :  { %2783 = vrot.lane.b32.xlu0 %v2781_v38, %s4320_s9 }
0x4ee2   :  { %v2784_v39 = vpop.permute.xlu0 %2783 }
0x4ee3   :  { %v2786_v40 = vmul.f32 %v2784_v39, %v2781_v38 }
0x4ee5   :  { %4230 = vtanh.f32 %v2786_v40  ;;  %v2846_v13 = vrot.slane %v2786_v40, 7 }
0x4eeb   :  { %v4231_v41 = vpop.eup %4230 }
0x4eec   :  { %2789 = vrot.lane.b32.xlu1 %v4231_v41, %s4321_s10 }
0x4ef4   :  { %2847 = vrot.lane.b32.xlu1 %v2846_v13, %s4320_s9  ;;  %v5251_v13 = vld [vmem:[%s5427_s2 + $0x38] sm:$0xff] }
0x4ef5   :  { %2959 = vmatpush.msrb.mxu3 %v5251_v13 }
0x4f5e   :  { %v2790_v26 = vpop.permute.xlu1 %2789 }
0x4f5f   :  { %v2792_v42 = vmul.f32 %v2790_v26, %v2781_v38  ;;  %v5256_v26 = vld [vmem:[%s5427_s2 + $0x30] sm:$0xff] }
0x4f60   :  { %2960 = vmatpush.msrb.mxu3 %v5256_v26 }
0x4f61   :  { %2794 = vrot.lane.b32.xlu2 %v2792_v42, %s4321_s10  ;;  %v5262_v42 = vld [vmem:[%s5427_s2 + $0x28] sm:$0xff] }
0x4f62   :  { %2961 = vmatpush.msrb.mxu3 %v5262_v42 }
0x4f66   :  { %v2848_v62 = vpop.permute.xlu1 %2847 }
0x4fbb   :  { %v2795_v27 = vpop.permute.xlu2 %2794 }
0x4fbc   :  { %2797 = vst.msk [vmem:[#allocation2] sm:$0x1] %vm101_vm6, %v2795_v27  ;;  %3849 = vmatmul.msk.f32.vlgmr.msra.gmra.mxu1 %vm41_vm0, %v2795_v27  ;;  %v5268_v27 = vld [vmem:[%s5427_s2 + $0x20] sm:$0xff] }
0x4fbd   :  { %2962 = vmatpush.msrb.mxu3 %v5268_v27 }
0x4fbf   :  { %3258 = vmatpush.msra.mxu3 %v5180_v6 }
0x4fc1   :  { %3259 = vmatpush.msra.mxu3 %v5185_v4 }
0x4fc3   :  { %3260 = vmatpush.msra.mxu3 %v5191_v24 }
0x4fc5   :  { %3261 = vmatpush.msra.mxu3 %v5197_v25 }
0x5039   :  { %v2817_v22 = vpop.f32.mrf.mxu1 }
0x503a   :  { %v2821_v43 = vrot.slane %v2817_v22, 7 }
0x503c   :  { %v2823_v29 = vadd.f32 %v2821_v43, %v2759_v7 }
0x503e   :  { %v3850_v30 = vmul.f32 -1.442695, %v2823_v29 }
0x5040   :  { %4232 = vpow2.f32 %v3850_v30 }
0x5046   :  { %v4233_v31 = vpop.eup %4232 }
0x5047   :  { %v2828_v32 = vadd.f32 1.0, %v4233_v31 }
0x5049   :  { %4234 = vrcp.f32 %v2828_v32  ;;  %v2840_v51 = vand.u32 2147483648, %v2828_v32  ;;  %v2838_v53 = vand.u32 2147483647, %v2828_v32  ;;  %vm2834_vm8 = vweird.f32 %v2828_v32 }
0x504a   :  { %4236 = vtanh.f32 %v2823_v29 }
0x504b   :  { %v2841_v55 = vor.u32 1.1754944e-38, %v2840_v51  ;;  %vm2839_vm10 = vcmp.eq.f32.partialorder %v2838_v53, 8.507059e+37 }
0x504f   :  { %v4235_v36 = vpop.eup %4234 }
0x5050   :  { %v2830_v45 = vmul.f32 %v4235_v36, %v2828_v32  ;;  %vm2835_vm7 = vweird.f32 %v4235_v36  ;;  %v4237_v57 = vpop.eup %4236 }
0x5051   :  { %vm2836_vm9 = vmor %vm2834_vm8, %vm2835_vm7 }
0x5052   :  { %v2831_v50 = vsub.f32 1.0, %v2830_v45 }
0x5054   :  { %v2832_v52 = vmul.f32 %v4235_v36, %v2831_v50 }
0x5056   :  { %v2833_v54 = vadd.f32 %v4235_v36, %v2832_v52 }
0x5058   :  { %v2837_v35 = vsel %vm2836_vm9, %v4235_v36, %v2833_v54 }
0x5059   :  { %v2842_v58 = vsel %vm2839_vm10, %v2841_v55, %v2837_v35 }
0x505a   :  { %v2844_v59 = vsel %vm27_vm3, %v4237_v57, %v2842_v58 }
0x505b   :  { %2852 = vrot.lane.b32.xlu0 %v2844_v59, %s4320_s9  ;;  %v2850_v33 = vmul.f32 %v2848_v62, %v2844_v59 }
0x50cd   :  { %v2853_v60 = vpop.permute.xlu0 %2852 }
0x50ce   :  { %v2855_v61 = vmul.f32 %v2853_v60, %v2844_v59 }
0x50d0   :  { %2857 = vrot.lane.b32.xlu2 %v2855_v61, %s4320_s9 }
0x512a   :  { %v2858_v34 = vpop.permute.xlu2 %2857 }
0x512b   :  { %v2860_v46 = vadd.f32 %v2858_v34, %v2850_v33 }
0x512d   :  { %4238 = vtanh.f32 %v2860_v46 }
0x5133   :  { %v4239_v49 = vpop.eup %4238 }
0x5134   :  { %2863 = vrot.lane.b32.xlu0 %v4239_v49, %s4320_s9 }
0x51a6   :  { %v2864_v47 = vpop.permute.xlu0 %2863 }
0x51a7   :  { %v2866_v9 = vmul.f32 %v2864_v47, %v2844_v59 }
0x51a9   :  { %2868 = vrot.lane.b32.xlu1 %v2866_v9, %s4321_s10  ;;  %v3867_v9 = vld [vmem:[%s5424_s1 + $0x58] sm:$0xff] }
0x51aa   :  { %3047 = vmatpush.msrb.mxu0 %v3867_v9 }
0x521b   :  { %v2869_v1 = vpop.permute.xlu1 %2868 }
0x521c   :  { %2871 = vst.msk [vmem:[#allocation2] sm:$0x2] %vm176_vm11, %v2869_v1  ;;  %v3866_v1 = vld [vmem:[%s5424_s1 + $0x50] sm:$0xff] }
0x521d   :  { %3048 = vmatpush.msrb.mxu0 %v3866_v1 }
0x5223   :  { %v2872_v7 = vld [vmem:[#allocation2] sm:$0x3] }
0x5224   :  { %3860 = vmatmul.msk.f32.vlgmr.msrb.gmra.mxu2 %vm41_vm0, %v2872_v7  ;;  %v3865_v7 = vld [vmem:[%s5424_s1 + $0x48] sm:$0xff] }
0x5225   :  { %3493 = vmatpush.msrb.mxu2 %v3867_v9  ;;  %3049 = vmatpush.msrb.mxu0 %v3865_v7  ;;  %v3846_v9 = vld [vmem:[%s5425_s0 + $0xc] sm:$0x3] }
0x5227   :  { %3494 = vmatpush.msrb.mxu2 %v3866_v1 }
0x5229   :  { %3495 = vmatpush.msrb.mxu2 %v3865_v7 }
0x52a7   :  { %v2905_v17 = vpop.f32.mrf.mxu2 }
0x52a8   :  { %v2906_v18 = vadd.f32 %v3930_v16, %v2905_v17  ;;  %v3864_v16 = vld [vmem:[%s5424_s1 + $0x40] sm:$0xff] }
0x52a9   :  { %3050 = vmatpush.msrb.mxu0 %v3864_v16  ;;  %3496 = vmatpush.msrb.mxu2 %v3864_v16 }
0x52aa   :  { %v3861_v19 = vmul.f32 -1.442695, %v2906_v18 }
0x52ab   :  { %3346 = vmatpush.msra.mxu0 %v5213_v10 }
0x52ac   :  { %4240 = vpow2.f32 %v3861_v19  ;;  %v3931_v19 = vld [vmem:[%s5426_s3 + $0x2] ss:$0 sm:$0xff] }
0x52ad   :  { %3347 = vmatpush.msra.mxu0 %v5218_v11 }
0x52af   :  { %3348 = vmatpush.msra.mxu0 %v5224_v12 }
0x52b1   :  { %3349 = vmatpush.msra.mxu0 %v5230_v0 }
0x52b2   :  { %v4241_v44 = vpop.eup %4240 }
0x52b3   :  { %v2912_v48 = vadd.f32 1.0, %v4241_v44 }
0x52b5   :  { %4242 = vrcp.f32 %v2912_v48  ;;  %v2924_v21 = vand.u32 2147483648, %v2912_v48  ;;  %v2922_v3 = vand.u32 2147483647, %v2912_v48  ;;  %vm2918_vm13 = vweird.f32 %v2912_v48 }
0x52b6   :  { %4244 = vtanh.f32 %v2906_v18 }
0x52b7   :  { %v2925_v14 = vor.u32 1.1754944e-38, %v2924_v21  ;;  %vm2923_vm15 = vcmp.eq.f32.partialorder %v2922_v3, 8.507059e+37 }
0x52bb   :  { %v4243_v56 = vpop.eup %4242 }
0x52bc   :  { %v2914_v20 = vmul.f32 %v4243_v56, %v2912_v48  ;;  %vm2919_vm12 = vweird.f32 %v4243_v56  ;;  %v4245_v23 = vpop.eup %4244 }
0x52bd   :  { %vm2920_vm14 = vmor %vm2918_vm13, %vm2919_vm12 }
0x52be   :  { %v2915_v8 = vsub.f32 1.0, %v2914_v20 }
0x52c0   :  { %v2916_v2 = vmul.f32 %v4243_v56, %v2915_v8 }
0x52c2   :  { %v2917_v63 = vadd.f32 %v4243_v56, %v2916_v2 }
0x52c4   :  { %v2921_v5 = vsel %vm2920_vm14, %v4243_v56, %v2917_v63 }
0x52c5   :  { %v2926_v28 = vsel %vm2923_vm15, %v2925_v14, %v2921_v5 }
0x52c6   :  { %v2928_v37 = vsel %vm27_vm3, %v4245_v23, %v2926_v28 }
0x52c7   :  { %2930 = vrot.lane.b32.xlu2 %v2928_v37, %s4320_s9 }
0x5321   :  { %v2931_v38 = vpop.permute.xlu2 %2930 }
0x5322   :  { %v2933_v39 = vmul.f32 %v2931_v38, %v2928_v37 }
0x5324   :  { %4246 = vtanh.f32 %v2933_v39  ;;  %v2993_v41 = vrot.slane %v2933_v39, 7 }
0x532a   :  { %v4247_v40 = vpop.eup %4246 }
0x532b   :  { %2936 = vrot.lane.b32.xlu0 %v4247_v40, %s4321_s10 }
0x5333   :  { %2994 = vrot.lane.b32.xlu0 %v2993_v41, %s4320_s9  ;;  %v3871_v41 = vld [vmem:[%s5427_s2 + $0x58] sm:$0xff] }
0x5334   :  { %3106 = vmatpush.msrb.mxu1 %v3871_v41 }
0x539d   :  { %v2937_v22 = vpop.permute.xlu0 %2936 }
0x539e   :  { %v2939_v43 = vmul.f32 %v2937_v22, %v2928_v37  ;;  %v3870_v22 = vld [vmem:[%s5427_s2 + $0x50] sm:$0xff] }
0x539f   :  { %3107 = vmatpush.msrb.mxu1 %v3870_v22 }
0x53a0   :  { %2941 = vrot.lane.b32.xlu1 %v2939_v43, %s4321_s10  ;;  %v3869_v43 = vld [vmem:[%s5427_s2 + $0x48] sm:$0xff] }
0x53a1   :  { %3108 = vmatpush.msrb.mxu1 %v3869_v43 }
0x53a5   :  { %v2995_v61 = vpop.permute.xlu0 %2994 }
0x5412   :  { %v2942_v29 = vpop.permute.xlu1 %2941 }
0x5413   :  { %2944 = vst.msk [vmem:[#allocation2] sm:$0x1] %vm101_vm6, %v2942_v29  ;;  %3862 = vmatmul.msk.f32.vlgmr.msrb.gmra.mxu3 %vm41_vm0, %v2942_v29  ;;  %v3868_v29 = vld [vmem:[%s5427_s2 + $0x40] sm:$0xff] }
0x5414   :  { %3552 = vmatpush.msrb.mxu3 %v3871_v41  ;;  %3109 = vmatpush.msrb.mxu1 %v3868_v29 }
0x5416   :  { %3553 = vmatpush.msrb.mxu3 %v3870_v22  ;;  %3405 = vmatpush.msra.mxu1 %v5251_v13 }
0x5418   :  { %3554 = vmatpush.msrb.mxu3 %v3869_v43  ;;  %3406 = vmatpush.msra.mxu1 %v5256_v26 }
0x541a   :  { %3555 = vmatpush.msrb.mxu3 %v3868_v29  ;;  %3407 = vmatpush.msra.mxu1 %v5262_v42 }
0x541c   :  { %3408 = vmatpush.msra.mxu1 %v5268_v27 }
0x5496   :  { %v2964_v30 = vpop.f32.mrf.mxu3 }
0x5497   :  { %v2968_v31 = vrot.slane %v2964_v30, 7 }
0x5499   :  { %v2970_v32 = vadd.f32 %v2968_v31, %v2906_v18 }
0x549b   :  { %v3863_v36 = vmul.f32 -1.442695, %v2970_v32 }
0x549d   :  { %4248 = vpow2.f32 %v3863_v36 }
0x54a3   :  { %v4249_v6 = vpop.eup %4248 }
0x54a4   :  { %v2975_v4 = vadd.f32 1.0, %v4249_v6 }
0x54a6   :  { %4250 = vrcp.f32 %v2975_v4  ;;  %v2987_v50 = vand.u32 2147483648, %v2975_v4  ;;  %v2985_v52 = vand.u32 2147483647, %v2975_v4  ;;  %vm2981_vm2 = vweird.f32 %v2975_v4 }
0x54a7   :  { %4252 = vtanh.f32 %v2970_v32 }
0x54a8   :  { %v2988_v54 = vor.u32 1.1754944e-38, %v2987_v50  ;;  %vm2986_vm5 = vcmp.eq.f32.partialorder %v2985_v52, 8.507059e+37 }
0x54ac   :  { %v4251_v24 = vpop.eup %4250 }
0x54ad   :  { %v2977_v45 = vmul.f32 %v4251_v24, %v2975_v4  ;;  %vm2982_vm1 = vweird.f32 %v4251_v24  ;;  %v4253_v35 = vpop.eup %4252 }
0x54ae   :  { %vm2983_vm4 = vmor %vm2981_vm2, %vm2982_vm1 }
0x54af   :  { %v2978_v25 = vsub.f32 1.0, %v2977_v45 }
0x54b1   :  { %v2979_v51 = vmul.f32 %v4251_v24, %v2978_v25 }
0x54b3   :  { %v2980_v53 = vadd.f32 %v4251_v24, %v2979_v51 }
0x54b5   :  { %v2984_v55 = vsel %vm2983_vm4, %v4251_v24, %v2980_v53 }
0x54b6   :  { %v2989_v57 = vsel %vm2986_vm5, %v2988_v54, %v2984_v55 }
0x54b7   :  { %v2991_v58 = vsel %vm27_vm3, %v4253_v35, %v2989_v57 }
0x54b8   :  { %2999 = vrot.lane.b32.xlu2 %v2991_v58, %s4320_s9  ;;  %v2997_v62 = vmul.f32 %v2995_v61, %v2991_v58 }
0x5512   :  { %v3000_v59 = vpop.permute.xlu2 %2999 }
0x5513   :  { %v3002_v60 = vmul.f32 %v3000_v59, %v2991_v58 }
0x5515   :  { %3004 = vrot.lane.b32.xlu1 %v3002_v60, %s4320_s9 }
0x5587   :  { %v3005_v33 = vpop.permute.xlu1 %3004 }
0x5588   :  { %v3007_v34 = vadd.f32 %v3005_v33, %v2997_v62 }
0x558a   :  { %4254 = vtanh.f32 %v3007_v34 }
0x5590   :  { %v4255_v46 = vpop.eup %4254 }
0x5591   :  { %3010 = vrot.lane.b32.xlu2 %v4255_v46, %s4320_s9 }
0x55eb   :  { %v3011_v49 = vpop.permute.xlu2 %3010 }
0x55ec   :  { %v3013_v47 = vmul.f32 %v3011_v49, %v2991_v58 }
0x55ee   :  { %3015 = vrot.lane.b32.xlu0 %v3013_v47, %s4321_s10 }
0x5660   :  { %v3016_v17 = vpop.permute.xlu0 %3015 }
0x5661   :  { %3018 = vst.msk [vmem:[#allocation2] sm:$0x2] %vm176_vm11, %v3016_v17 }
0x5668   :  { %v3019_v18 = vld [vmem:[#allocation2] sm:$0x3] }
0x5669   :  { %3873 = vmatmul.msk.f32.vlgmr.msrb.gmra.mxu0 %vm41_vm0, %v3019_v18  ;;  %v3932_v18 = vld [vmem:[%s5426_s3] ss:$0 sm:$0xff] }
0x566a   :  { %3643 = vmatpush.msrb.mxu0 %v3620_v15 }
0x56e6   :  { %v3052_v44 = vpop.f32.mrf.mxu0 }
0x56e7   :  { %v3053_v48 = vadd.f32 %v3931_v19, %v3052_v44 }
0x56e9   :  { %v3874_v56 = vmul.f32 -1.442695, %v3053_v48 }
0x56eb   :  { %4256 = vpow2.f32 %v3874_v56 }
0x56f1   :  { %v4257_v10 = vpop.eup %4256 }
0x56f2   :  { %v3059_v11 = vadd.f32 1.0, %v4257_v10 }
0x56f4   :  { %4258 = vrcp.f32 %v3059_v11  ;;  %v3071_v8 = vand.u32 2147483648, %v3059_v11  ;;  %v3069_v2 = vand.u32 2147483647, %v3059_v11  ;;  %vm3065_vm8 = vweird.f32 %v3059_v11 }
0x56f5   :  { %4260 = vtanh.f32 %v3053_v48 }
0x56f6   :  { %v3072_v63 = vor.u32 1.1754944e-38, %v3071_v8  ;;  %vm3070_vm10 = vcmp.eq.f32.partialorder %v3069_v2, 8.507059e+37 }
0x56fa   :  { %v4259_v12 = vpop.eup %4258 }
0x56fb   :  { %v3061_v20 = vmul.f32 %v4259_v12, %v3059_v11  ;;  %vm3066_vm7 = vweird.f32 %v4259_v12  ;;  %v4261_v5 = vpop.eup %4260 }
0x56fc   :  { %vm3067_vm9 = vmor %vm3065_vm8, %vm3066_vm7 }
0x56fd   :  { %v3062_v0 = vsub.f32 1.0, %v3061_v20 }
0x56ff   :  { %v3063_v21 = vmul.f32 %v4259_v12, %v3062_v0 }
0x5701   :  { %v3064_v3 = vadd.f32 %v4259_v12, %v3063_v21 }
0x5703   :  { %v3068_v14 = vsel %vm3067_vm9, %v4259_v12, %v3064_v3 }
0x5704   :  { %v3073_v23 = vsel %vm3070_vm10, %v3072_v63, %v3068_v14 }
0x5705   :  { %v3075_v28 = vsel %vm27_vm3, %v4261_v5, %v3073_v23 }
0x5706   :  { %3077 = vrot.lane.b32.xlu1 %v3075_v28, %s4320_s9 }
0x5778   :  { %v3078_v37 = vpop.permute.xlu1 %3077 }
0x5779   :  { %v3080_v38 = vmul.f32 %v3078_v37, %v3075_v28 }
0x577b   :  { %4262 = vtanh.f32 %v3080_v38  ;;  %v3140_v40 = vrot.slane %v3080_v38, 7 }
0x5781   :  { %v4263_v39 = vpop.eup %4262 }
0x5782   :  { %3083 = vrot.lane.b32.xlu2 %v4263_v39, %s4321_s10 }
0x578a   :  { %3141 = vrot.lane.b32.xlu2 %v3140_v40, %s4320_s9 }
0x57dc   :  { %v3084_v30 = vpop.permute.xlu2 %3083 }
0x57dd   :  { %v3086_v31 = vmul.f32 %v3084_v30, %v3075_v28 }
0x57df   :  { %3088 = vrot.lane.b32.xlu0 %v3086_v31, %s4321_s10 }
0x57e4   :  { %v3142_v60 = vpop.permute.xlu2 %3141 }
0x5851   :  { %v3089_v32 = vpop.permute.xlu0 %3088 }
0x5852   :  { %3091 = vst.msk [vmem:[#allocation2] sm:$0x1] %vm101_vm6, %v3089_v32  ;;  %3875 = vmatmul.msk.f32.vlgmr.msrb.gmra.mxu1 %vm41_vm0, %v3089_v32 }
0x58cf   :  { %v3111_v36 = vpop.f32.mrf.mxu1 }
0x58d0   :  { %v3115_v6 = vrot.slane %v3111_v36, 7 }
0x58d2   :  { %v3117_v4 = vadd.f32 %v3115_v6, %v3053_v48 }
0x58d4   :  { %v3876_v24 = vmul.f32 -1.442695, %v3117_v4 }
0x58d6   :  { %4264 = vpow2.f32 %v3876_v24 }
0x58dc   :  { %v4265_v13 = vpop.eup %4264 }
0x58dd   :  { %v3122_v26 = vadd.f32 1.0, %v4265_v13 }
0x58df   :  { %4266 = vrcp.f32 %v3122_v26  ;;  %v3134_v25 = vand.u32 2147483648, %v3122_v26  ;;  %v3132_v51 = vand.u32 2147483647, %v3122_v26  ;;  %vm3128_vm13 = vweird.f32 %v3122_v26 }
0x58e0   :  { %4268 = vtanh.f32 %v3117_v4 }
0x58e1   :  { %v3135_v53 = vor.u32 1.1754944e-38, %v3134_v25  ;;  %vm3133_vm15 = vcmp.eq.f32.partialorder %v3132_v51, 8.507059e+37 }
0x58e5   :  { %v4267_v42 = vpop.eup %4266 }
0x58e6   :  { %v3124_v45 = vmul.f32 %v4267_v42, %v3122_v26  ;;  %vm3129_vm12 = vweird.f32 %v4267_v42  ;;  %v4269_v55 = vpop.eup %4268 }
0x58e7   :  { %vm3130_vm14 = vmor %vm3128_vm13, %vm3129_vm12 }
0x58e8   :  { %v3125_v27 = vsub.f32 1.0, %v3124_v45 }
0x58ea   :  { %v3126_v50 = vmul.f32 %v4267_v42, %v3125_v27 }
0x58ec   :  { %v3127_v52 = vadd.f32 %v4267_v42, %v3126_v50 }
0x58ee   :  { %v3131_v54 = vsel %vm3130_vm14, %v4267_v42, %v3127_v52 }
0x58ef   :  { %v3136_v35 = vsel %vm3133_vm15, %v3135_v53, %v3131_v54 }
0x58f0   :  { %v3138_v57 = vsel %vm27_vm3, %v4269_v55, %v3136_v35 }
0x58f1   :  { %3146 = vrot.lane.b32.xlu1 %v3138_v57, %s4320_s9  ;;  %v3144_v61 = vmul.f32 %v3142_v60, %v3138_v57 }
0x5963   :  { %v3147_v58 = vpop.permute.xlu1 %3146 }
0x5964   :  { %v3149_v59 = vmul.f32 %v3147_v58, %v3138_v57 }
0x5966   :  { %3151 = vrot.lane.b32.xlu0 %v3149_v59, %s4320_s9 }
0x59d8   :  { %v3152_v62 = vpop.permute.xlu0 %3151 }
0x59d9   :  { %v3154_v33 = vadd.f32 %v3152_v62, %v3144_v61 }
0x59db   :  { %4270 = vtanh.f32 %v3154_v33 }
0x59e1   :  { %v4271_v34 = vpop.eup %4270 }
0x59e2   :  { %3157 = vrot.lane.b32.xlu1 %v4271_v34, %s4320_s9  ;;  %v3933_v34 = vld [vmem:[%s5426_s3 + $0x1] ss:$0 sm:$0xff] }
0x5a54   :  { %v3158_v46 = vpop.permute.xlu1 %3157 }
0x5a55   :  { %v3160_v49 = vmul.f32 %v3158_v46, %v3138_v57 }
0x5a57   :  { %3162 = vrot.lane.b32.xlu2 %v3160_v49, %s4321_s10 }
0x5ab1   :  { %v3163_v47 = vpop.permute.xlu2 %3162 }
0x5ab2   :  { %3165 = vst.msk [vmem:[#allocation2] sm:$0x2] %vm176_vm11, %v3163_v47 }
0x5ab9   :  { %v3166_v1 = vld [vmem:[#allocation2] sm:$0x3] }
0x5aba   :  { %v3169_v7 = vsub.f32 %v3846_v9, %v3166_v1  ;;  %3167 = vst.msk [vmem:[#allocation3 + $0x6] sm:$0x1] %vm101_vm6, %v3166_v1 }
0x5abb   :  { %3168 = vst.msk [vmem:[#allocation3 + $0xd] sm:$0x2] %vm176_vm11, %v3166_v1 }
0x5abc   :  { %v3170_v16 = vmul.f32 0.5, %v3169_v7 }
0x5abe   :  { %v3171_v17 = vadd.f32 %v3170_v16, %v3166_v1 }
0x5ac0   :  { %3877 = vmatmul.msk.f32.vlgmr.msra.gmra.mxu2 %vm41_vm0, %v3171_v17 }
0x5b43   :  { %v3204_v19 = vpop.f32.mrf.mxu2 }
0x5b44   :  { %v3205_v44 = vadd.f32 %v3932_v18, %v3204_v19 }
0x5b46   :  { %v3878_v48 = vmul.f32 -1.442695, %v3205_v44 }
0x5b48   :  { %4272 = vpow2.f32 %v3878_v48 }
0x5b4e   :  { %v4273_v56 = vpop.eup %4272 }
0x5b4f   :  { %v3211_v10 = vadd.f32 1.0, %v4273_v56 }
0x5b51   :  { %4274 = vrcp.f32 %v3211_v10  ;;  %v3223_v0 = vand.u32 2147483648, %v3211_v10  ;;  %v3221_v21 = vand.u32 2147483647, %v3211_v10  ;;  %vm3217_vm2 = vweird.f32 %v3211_v10 }
0x5b52   :  { %4276 = vtanh.f32 %v3205_v44 }
0x5b53   :  { %v3224_v3 = vor.u32 1.1754944e-38, %v3223_v0  ;;  %vm3222_vm5 = vcmp.eq.f32.partialorder %v3221_v21, 8.507059e+37 }
0x5b57   :  { %v4275_v11 = vpop.eup %4274 }
0x5b58   :  { %v3213_v12 = vmul.f32 %v4275_v11, %v3211_v10  ;;  %vm3218_vm1 = vweird.f32 %v4275_v11  ;;  %v4277_v14 = vpop.eup %4276 }
0x5b59   :  { %vm3219_vm4 = vmor %vm3217_vm2, %vm3218_vm1 }
0x5b5a   :  { %v3214_v20 = vsub.f32 1.0, %v3213_v12 }
0x5b5c   :  { %v3215_v8 = vmul.f32 %v4275_v11, %v3214_v20 }
0x5b5e   :  { %v3216_v2 = vadd.f32 %v4275_v11, %v3215_v8 }
0x5b60   :  { %v3220_v63 = vsel %vm3219_vm4, %v4275_v11, %v3216_v2 }
0x5b61   :  { %v3225_v5 = vsel %vm3222_vm5, %v3224_v3, %v3220_v63 }
0x5b62   :  { %v3227_v23 = vsel %vm27_vm3, %v4277_v14, %v3225_v5 }
0x5b63   :  { %3229 = vrot.lane.b32.xlu0 %v3227_v23, %s4320_s9 }
0x5bd5   :  { %v3230_v28 = vpop.permute.xlu0 %3229 }
0x5bd6   :  { %v3232_v37 = vmul.f32 %v3230_v28, %v3227_v23 }
0x5bd8   :  { %4278 = vtanh.f32 %v3232_v37  ;;  %v3292_v39 = vrot.slane %v3232_v37, 7 }
0x5bde   :  { %v4279_v38 = vpop.eup %4278 }
0x5bdf   :  { %3235 = vrot.lane.b32.xlu1 %v4279_v38, %s4321_s10 }
0x5be7   :  { %3293 = vrot.lane.b32.xlu1 %v3292_v39, %s4320_s9 }
0x5c51   :  { %v3236_v40 = vpop.permute.xlu1 %3235 }
0x5c52   :  { %v3238_v41 = vmul.f32 %v3236_v40, %v3227_v23 }
0x5c54   :  { %3240 = vrot.lane.b32.xlu2 %v3238_v41, %s4321_s10 }
0x5c59   :  { %v3294_v55 = vpop.permute.xlu1 %3293 }
0x5cae   :  { %v3241_v22 = vpop.permute.xlu2 %3240 }
0x5caf   :  { %3243 = vst.msk [vmem:[#allocation2] sm:$0x1] %vm101_vm6, %v3241_v22  ;;  %3879 = vmatmul.msk.f32.vlgmr.msra.gmra.mxu3 %vm41_vm0, %v3241_v22 }
0x5d32   :  { %v3263_v43 = vpop.f32.mrf.mxu3 }
0x5d33   :  { %v3267_v29 = vrot.slane %v3263_v43, 7 }
0x5d35   :  { %v3269_v30 = vadd.f32 %v3267_v29, %v3205_v44 }
0x5d37   :  { %v3880_v31 = vmul.f32 -1.442695, %v3269_v30 }
0x5d39   :  { %4280 = vpow2.f32 %v3880_v31 }
0x5d3f   :  { %v4281_v32 = vpop.eup %4280 }
0x5d40   :  { %v3274_v36 = vadd.f32 1.0, %v4281_v32 }
0x5d42   :  { %4282 = vrcp.f32 %v3274_v36  ;;  %v3286_v13 = vand.u32 2147483648, %v3274_v36  ;;  %v3284_v42 = vand.u32 2147483647, %v3274_v36  ;;  %vm3280_vm8 = vweird.f32 %v3274_v36 }
0x5d43   :  { %4284 = vtanh.f32 %v3269_v30 }
0x5d44   :  { %v3287_v27 = vor.u32 1.1754944e-38, %v3286_v13  ;;  %vm3285_vm10 = vcmp.eq.f32.partialorder %v3284_v42, 8.507059e+37 }
0x5d48   :  { %v4283_v6 = vpop.eup %4282 }
0x5d49   :  { %v3276_v4 = vmul.f32 %v4283_v6, %v3274_v36  ;;  %vm3281_vm7 = vweird.f32 %v4283_v6  ;;  %v4285_v50 = vpop.eup %4284 }
0x5d4a   :  { %vm3282_vm9 = vmor %vm3280_vm8, %vm3281_vm7 }
0x5d4b   :  { %v3277_v24 = vsub.f32 1.0, %v3276_v4 }
0x5d4d   :  { %v3278_v26 = vmul.f32 %v4283_v6, %v3277_v24 }
0x5d4f   :  { %v3279_v45 = vadd.f32 %v4283_v6, %v3278_v26 }
0x5d51   :  { %v3283_v25 = vsel %vm3282_vm9, %v4283_v6, %v3279_v45 }
0x5d52   :  { %v3288_v51 = vsel %vm3285_vm10, %v3287_v27, %v3283_v25 }
0x5d53   :  { %v3290_v52 = vsel %vm27_vm3, %v4285_v50, %v3288_v51 }
0x5d54   :  { %3298 = vrot.lane.b32.xlu0 %v3290_v52, %s4320_s9  ;;  %v3296_v35 = vmul.f32 %v3294_v55, %v3290_v52  ;;  %v3934_v55 = vld [vmem:[%s5426_s3 + $0x2] ss:$0 sm:$0xff] }
0x5dc6   :  { %v3299_v53 = vpop.permute.xlu0 %3298 }
0x5dc7   :  { %v3301_v54 = vmul.f32 %v3299_v53, %v3290_v52 }
0x5dc9   :  { %3303 = vrot.lane.b32.xlu2 %v3301_v54, %s4320_s9 }
0x5e23   :  { %v3304_v57 = vpop.permute.xlu2 %3303 }
0x5e24   :  { %v3306_v58 = vadd.f32 %v3304_v57, %v3296_v35 }
0x5e26   :  { %4286 = vtanh.f32 %v3306_v58 }
0x5e2c   :  { %v4287_v59 = vpop.eup %4286 }
0x5e2d   :  { %3309 = vrot.lane.b32.xlu0 %v4287_v59, %s4320_s9 }
0x5e9f   :  { %v3310_v60 = vpop.permute.xlu0 %3309 }
0x5ea0   :  { %v3312_v61 = vmul.f32 %v3310_v60, %v3290_v52 }
0x5ea2   :  { %3314 = vrot.lane.b32.xlu1 %v3312_v61, %s4321_s10 }
0x5f14   :  { %v3315_v62 = vpop.permute.xlu1 %3314 }
0x5f15   :  { %3317 = vst.msk [vmem:[#allocation2] sm:$0x2] %vm176_vm11, %v3315_v62 }
0x5f1c   :  { %v3318_v33 = vld [vmem:[#allocation2] sm:$0x3] }
0x5f1d   :  { %3890 = vmatmul.msk.f32.vlgmr.msra.gmra.mxu0 %vm41_vm0, %v3318_v33 }
0x5f9a   :  { %v3351_v46 = vpop.f32.mrf.mxu0 }
0x5f9b   :  { %v3352_v49 = vadd.f32 %v3933_v34, %v3351_v46 }
0x5f9d   :  { %v3891_v47 = vmul.f32 -1.442695, %v3352_v49 }
0x5f9f   :  { %4288 = vpow2.f32 %v3891_v47 }
0x5fa5   :  { %v4289_v9 = vpop.eup %4288 }
0x5fa6   :  { %v3358_v1 = vadd.f32 1.0, %v4289_v9 }
0x5fa8   :  { %4290 = vrcp.f32 %v3358_v1  ;;  %v3370_v18 = vand.u32 2147483648, %v3358_v1  ;;  %v3368_v44 = vand.u32 2147483647, %v3358_v1  ;;  %vm3364_vm13 = vweird.f32 %v3358_v1 }
0x5fa9   :  { %4292 = vtanh.f32 %v3352_v49 }
0x5faa   :  { %v3371_v56 = vor.u32 1.1754944e-38, %v3370_v18  ;;  %vm3369_vm15 = vcmp.eq.f32.partialorder %v3368_v44, 8.507059e+37 }
0x5fae   :  { %v4291_v7 = vpop.eup %4290 }
0x5faf   :  { %v3360_v16 = vmul.f32 %v4291_v7, %v3358_v1  ;;  %vm3365_vm12 = vweird.f32 %v4291_v7  ;;  %v4293_v11 = vpop.eup %4292 }
0x5fb0   :  { %vm3366_vm14 = vmor %vm3364_vm13, %vm3365_vm12 }
0x5fb1   :  { %v3361_v17 = vsub.f32 1.0, %v3360_v16 }
0x5fb3   :  { %v3362_v19 = vmul.f32 %v4291_v7, %v3361_v17 }
0x5fb5   :  { %v3363_v48 = vadd.f32 %v4291_v7, %v3362_v19 }
0x5fb7   :  { %v3367_v10 = vsel %vm3366_vm14, %v4291_v7, %v3363_v48 }
0x5fb8   :  { %v3372_v12 = vsel %vm3369_vm15, %v3371_v56, %v3367_v10 }
0x5fb9   :  { %v3374_v20 = vsel %vm27_vm3, %v4293_v11, %v3372_v12 }
0x5fba   :  { %3376 = vrot.lane.b32.xlu2 %v3374_v20, %s4320_s9 }
0x6014   :  { %v3377_v0 = vpop.permute.xlu2 %3376 }
0x6015   :  { %v3379_v8 = vmul.f32 %v3377_v0, %v3374_v20 }
0x6017   :  { %4294 = vtanh.f32 %v3379_v8  ;;  %v3439_v2 = vrot.slane %v3379_v8, 7 }
0x601d   :  { %v4295_v21 = vpop.eup %4294 }
0x601e   :  { %3382 = vrot.lane.b32.xlu0 %v4295_v21, %s4321_s10 }
0x6026   :  { %3440 = vrot.lane.b32.xlu0 %v3439_v2, %s4320_s9 }
0x6090   :  { %v3383_v3 = vpop.permute.xlu0 %3382 }
0x6091   :  { %v3385_v63 = vmul.f32 %v3383_v3, %v3374_v20 }
0x6093   :  { %3387 = vrot.lane.b32.xlu1 %v3385_v63, %s4321_s10 }
0x6098   :  { %v3441_v42 = vpop.permute.xlu0 %3440 }
0x6105   :  { %v3388_v14 = vpop.permute.xlu1 %3387 }
0x6106   :  { %3390 = vst.msk [vmem:[#allocation2] sm:$0x1] %vm101_vm6, %v3388_v14  ;;  %3892 = vmatmul.msk.f32.vlgmr.msra.gmra.mxu1 %vm41_vm0, %v3388_v14 }
0x6183   :  { %v3410_v5 = vpop.f32.mrf.mxu1 }
0x6184   :  { %v3414_v23 = vrot.slane %v3410_v5, 7 }
0x6186   :  { %v3416_v28 = vadd.f32 %v3414_v23, %v3352_v49 }
0x6188   :  { %v3893_v37 = vmul.f32 -1.442695, %v3416_v28 }
0x618a   :  { %4296 = vpow2.f32 %v3893_v37 }
0x6190   :  { %v4297_v38 = vpop.eup %4296 }
0x6191   :  { %v3421_v39 = vadd.f32 1.0, %v4297_v38 }
0x6193   :  { %4298 = vrcp.f32 %v3421_v39  ;;  %v3433_v43 = vand.u32 2147483648, %v3421_v39  ;;  %v3431_v30 = vand.u32 2147483647, %v3421_v39  ;;  %vm3427_vm2 = vweird.f32 %v3421_v39 }
0x6194   :  { %4300 = vtanh.f32 %v3416_v28 }
0x6195   :  { %v3434_v32 = vor.u32 1.1754944e-38, %v3433_v43  ;;  %vm3432_vm5 = vcmp.eq.f32.partialorder %v3431_v30, 8.507059e+37 }
0x6199   :  { %v4299_v40 = vpop.eup %4298 }
0x619a   :  { %v3423_v41 = vmul.f32 %v4299_v40, %v3421_v39  ;;  %vm3428_vm1 = vweird.f32 %v4299_v40  ;;  %v4301_v6 = vpop.eup %4300 }
0x619b   :  { %vm3429_vm4 = vmor %vm3427_vm2, %vm3428_vm1 }
0x619c   :  { %v3424_v22 = vsub.f32 1.0, %v3423_v41 }
0x619e   :  { %v3425_v29 = vmul.f32 %v4299_v40, %v3424_v22 }
0x61a0   :  { %v3426_v31 = vadd.f32 %v4299_v40, %v3425_v29 }
0x61a2   :  { %v3430_v36 = vsel %vm3429_vm4, %v4299_v40, %v3426_v31 }
0x61a3   :  { %v3435_v4 = vsel %vm3432_vm5, %v3434_v32, %v3430_v36 }
0x61a4   :  { %v3437_v24 = vsel %vm27_vm3, %v4301_v6, %v3435_v4 }
0x61a5   :  { %3445 = vrot.lane.b32.xlu2 %v3437_v24, %s4320_s9  ;;  %v3443_v45 = vmul.f32 %v3441_v42, %v3437_v24  ;;  %v3617_v42 = vld [vmem:[%s5428_s4] sm:$0xff] }
0x61ff   :  { %v3446_v13 = vpop.permute.xlu2 %3445 }
0x6200   :  { %v3448_v26 = vmul.f32 %v3446_v13, %v3437_v24  ;;  %v3619_v13 = vld [vmem:[%s5428_s4 + $0x10] sm:$0xff] }
0x6201   :  { %3644 = vmatpush.msrb.mxu0 %v3619_v13 }
0x6202   :  { %3450 = vrot.lane.b32.xlu1 %v3448_v26, %s4320_s9  ;;  %v3618_v26 = vld [vmem:[%s5428_s4 + $0x8] sm:$0xff] }
0x6203   :  { %3645 = vmatpush.msrb.mxu0 %v3618_v26 }
0x6205   :  { %3646 = vmatpush.msrb.mxu0 %v3617_v42 }
0x6274   :  { %v3451_v27 = vpop.permute.xlu1 %3450 }
0x6275   :  { %v3453_v25 = vadd.f32 %v3451_v27, %v3443_v45  ;;  %v11_v45 = vstv %s5429_s5 }
0x6276   :  { %12 = vst [vmem:[#allocation4] sm:$0x1] %v11_v45 }
0x6277   :  { %4302 = vtanh.f32 %v3453_v25 }
0x627d   :  { %v4303_v50 = vpop.eup %4302 }
0x627e   :  { %3456 = vrot.lane.b32.xlu2 %v4303_v50, %s4320_s9 }
0x62d8   :  { %v3457_v51 = vpop.permute.xlu2 %3456 }
0x62d9   :  { %v3459_v52 = vmul.f32 %v3457_v51, %v3437_v24 }
0x62db   :  { %3461 = vrot.lane.b32.xlu0 %v3459_v52, %s4321_s10  ;;  %v3935_v52 = vld [vmem:[#allocation4] ss:$0 sm:$0xff] }
0x634d   :  { %v3462_v53 = vpop.permute.xlu0 %3461 }
0x634e   :  { %3464 = vst.msk [vmem:[#allocation2] sm:$0x2] %vm176_vm11, %v3462_v53 }
0x6355   :  { %v3465_v54 = vld [vmem:[#allocation2] sm:$0x3] }
0x6356   :  { %3903 = vmatmul.msk.f32.vlgmr.msrb.gmra.mxu2 %vm41_vm0, %v3465_v54 }
0x63d9   :  { %v3498_v35 = vpop.f32.mrf.mxu2 }
0x63da   :  { %v3499_v57 = vadd.f32 %v3934_v55, %v3498_v35 }
0x63dc   :  { %v3904_v58 = vmul.f32 -1.442695, %v3499_v57 }
0x63de   :  { %4304 = vpow2.f32 %v3904_v58 }
0x63e4   :  { %v4305_v59 = vpop.eup %4304 }
0x63e5   :  { %v3505_v60 = vadd.f32 1.0, %v4305_v59 }
0x63e7   :  { %4306 = vrcp.f32 %v3505_v60  ;;  %v3517_v34 = vand.u32 2147483648, %v3505_v60  ;;  %v3515_v49 = vand.u32 2147483647, %v3505_v60  ;;  %vm3511_vm8 = vweird.f32 %v3505_v60 }
0x63e8   :  { %4308 = vtanh.f32 %v3499_v57 }
0x63e9   :  { %v3518_v9 = vor.u32 1.1754944e-38, %v3517_v34  ;;  %vm3516_vm10 = vcmp.eq.f32.partialorder %v3515_v49, 8.507059e+37 }
0x63ed   :  { %v4307_v61 = vpop.eup %4306 }
0x63ee   :  { %v3507_v62 = vmul.f32 %v4307_v61, %v3505_v60  ;;  %vm3512_vm7 = vweird.f32 %v4307_v61  ;;  %v4309_v7 = vpop.eup %4308 }
0x63ef   :  { %vm3513_vm9 = vmor %vm3511_vm8, %vm3512_vm7 }
0x63f0   :  { %v3508_v33 = vsub.f32 1.0, %v3507_v62 }
0x63f2   :  { %v3509_v46 = vmul.f32 %v4307_v61, %v3508_v33 }
0x63f4   :  { %v3510_v47 = vadd.f32 %v4307_v61, %v3509_v46 }
0x63f6   :  { %v3514_v1 = vsel %vm3513_vm9, %v4307_v61, %v3510_v47 }
0x63f7   :  { %v3519_v16 = vsel %vm3516_vm10, %v3518_v9, %v3514_v1 }
0x63f8   :  { %v3521_v17 = vsel %vm27_vm3, %v4309_v7, %v3519_v16 }
0x63f9   :  { %3523 = vrot.lane.b32.xlu1 %v3521_v17, %s4320_s9 }
0x646b   :  { %v3524_v18 = vpop.permute.xlu1 %3523 }
0x646c   :  { %v3526_v19 = vmul.f32 %v3524_v18, %v3521_v17 }
0x646e   :  { %4310 = vtanh.f32 %v3526_v19  ;;  %v3586_v48 = vrot.slane %v3526_v19, 7 }
0x6474   :  { %v4311_v44 = vpop.eup %4310 }
0x6475   :  { %3529 = vrot.lane.b32.xlu2 %v4311_v44, %s4321_s10 }
0x647d   :  { %3587 = vrot.lane.b32.xlu2 %v3586_v48, %s4320_s9 }
0x64cf   :  { %v3530_v56 = vpop.permute.xlu2 %3529 }
0x64d0   :  { %v3532_v10 = vmul.f32 %v3530_v56, %v3521_v17 }
0x64d2   :  { %3534 = vrot.lane.b32.xlu0 %v3532_v10, %s4321_s10 }
0x64d7   :  { %v3588_v30 = vpop.permute.xlu2 %3587 }
0x6544   :  { %v3535_v11 = vpop.permute.xlu0 %3534 }
0x6545   :  { %3537 = vst.msk [vmem:[#allocation2] sm:$0x1] %vm101_vm6, %v3535_v11  ;;  %3905 = vmatmul.msk.f32.vlgmr.msrb.gmra.mxu3 %vm41_vm0, %v3535_v11 }
0x65c8   :  { %v3557_v12 = vpop.f32.mrf.mxu3 }
0x65c9   :  { %v3561_v20 = vrot.slane %v3557_v12, 7 }
0x65cb   :  { %v3563_v0 = vadd.f32 %v3561_v20, %v3499_v57 }
0x65cd   :  { %v3906_v8 = vmul.f32 -1.442695, %v3563_v0 }
0x65cf   :  { %4312 = vpow2.f32 %v3906_v8 }
0x65d5   :  { %v4313_v21 = vpop.eup %4312 }
0x65d6   :  { %v3568_v2 = vadd.f32 1.0, %v4313_v21 }
0x65d8   :  { %4314 = vrcp.f32 %v3568_v2  ;;  %v3580_v5 = vand.u32 2147483648, %v3568_v2  ;;  %v3578_v28 = vand.u32 2147483647, %v3568_v2  ;;  %vm3574_vm13 = vweird.f32 %v3568_v2 }
0x65d9   :  { %4316 = vtanh.f32 %v3563_v0 }
0x65da   :  { %v3581_v38 = vor.u32 1.1754944e-38, %v3580_v5  ;;  %vm3579_vm15 = vcmp.eq.f32.partialorder %v3578_v28, 8.507059e+37 }
0x65de   :  { %v4315_v3 = vpop.eup %4314 }
0x65df   :  { %v3570_v63 = vmul.f32 %v4315_v3, %v3568_v2  ;;  %vm3575_vm12 = vweird.f32 %v4315_v3  ;;  %v4317_v40 = vpop.eup %4316 }
0x65e0   :  { %vm3576_vm14 = vmor %vm3574_vm13, %vm3575_vm12 }
0x65e1   :  { %v3571_v14 = vsub.f32 1.0, %v3570_v63 }
0x65e3   :  { %v3572_v23 = vmul.f32 %v4315_v3, %v3571_v14 }
0x65e5   :  { %v3573_v37 = vadd.f32 %v4315_v3, %v3572_v23 }
0x65e7   :  { %v3577_v39 = vsel %vm3576_vm14, %v4315_v3, %v3573_v37 }
0x65e8   :  { %v3582_v41 = vsel %vm3579_vm15, %v3581_v38, %v3577_v39 }
0x65e9   :  { %v3584_v22 = vsel %vm27_vm3, %v4317_v40, %v3582_v41  ;;  %vm3654_vm3 = vcmask 7168  }
0x65ea   :  { %3592 = vrot.lane.b32.xlu1 %v3584_v22, %s4320_s9  ;;  %v3590_v31 = vmul.f32 %v3588_v30, %v3584_v22 }
0x665c   :  { %v3593_v43 = vpop.permute.xlu1 %3592 }
0x665d   :  { %v3595_v29 = vmul.f32 %v3593_v43, %v3584_v22 }
0x665f   :  { %3597 = vrot.lane.b32.xlu0 %v3595_v29, %s4320_s9 }
0x66d1   :  { %v3598_v32 = vpop.permute.xlu0 %3597 }
0x66d2   :  { %v3600_v36 = vadd.f32 %v3598_v32, %v3590_v31 }
0x66d4   :  { %4318 = vtanh.f32 %v3600_v36 }
0x66da   :  { %v4319_v6 = vpop.eup %4318 }
0x66db   :  { %3603 = vrot.lane.b32.xlu1 %v4319_v6, %s4320_s9 }
0x674d   :  { %v3604_v4 = vpop.permute.xlu1 %3603 }
0x674e   :  { %v3606_v24 = vmul.f32 %v3604_v4, %v3584_v22 }
0x6750   :  { %3608 = vrot.lane.b32.xlu2 %v3606_v24, %s4321_s10 }
0x67aa   :  { %v3609_v27 = vpop.permute.xlu2 %3608 }
0x67ab   :  { %3611 = vst.msk [vmem:[#allocation2] sm:$0x2] %vm176_vm11, %v3609_v27 }
0x67b2   :  { %v3612_v25 = vld [vmem:[#allocation2] sm:$0x3] }
0x67b3   :  { %3613 = vst.msk [vmem:[#allocation3 + $0x7] sm:$0x1] %vm101_vm6, %v3612_v25 }
0x67b4   :  { %3614 = vst.msk [vmem:[#allocation3 + $0xe] sm:$0x2] %vm176_vm11, %v3612_v25 }
0x67ba   :  { %v3615_v50 = vld [vmem:[#allocation3] sm:$0xff] }
0x67bb   :  { %3907 = vmatmul.msk.f32.vlgmr.msrb.gmra.mxu0 %vm41_vm0, %v3615_v50  ;;  %v3616_v51 = vld [vmem:[#allocation3 + $0x8] sm:$0xff] }
0x67c3   :  { %3908 = vmatmul.msk.f32.gmra.mxu0 %vm41_vm0, %v3616_v51 }
0x6838   :  { %v3648_v53 = vpop.f32.mrf.mxu0 }
0x6839   :  { %v3649_v54 = vadd.f32 %v3935_v52, %v3648_v53 }
0x683b   :  { %3655 = vst.msk [vmem:[%s5430_s6] sm:$0xff] %vm3654_vm3, %v3649_v54 }
0x6840   :  { %v3651_v55 = vpop.f32.mrf.mxu0 }
0x6841   :  { %v3652_v35 = vadd.f32 %v3935_v52, %v3651_v55 }
0x6843   :  { %3656 = vst.msk [vmem:[%s5430_s6 + $0x8] sm:$0xff] %vm3654_vm3, %v3652_v35 }

</bundles_post_ra>
